<compile_context>
chip_gen: v6e
topology: v6e:2x2x1
jax: 0.10.0
libtpu: 0.0.40
codegen_flags: <defaults>
</compile_context>

<pallas_src>
import math
import functools

import jax
import jax.numpy as jnp
from jax import lax
from jax.experimental import pallas as pl
from jax.experimental.pallas import tpu as pltpu


def _round_up(x, m):
    return ((x + m - 1) // m) * m


# -----------------------------------------------------------------------------
# Pallas kernel: one invocation == full T-step decode for one batch block
# -----------------------------------------------------------------------------
def _gru_decoder_kernel(
    emb_ref,    # (T, BBLK, E)     embedded teacher-forced inputs, time-major
    h0_ref,     # (BBLK, Hp)       initial hidden state (f32)
    ctx_ref,    # (BBLK, Hp)       encoder context (f32, constant over time)
    w_x_ref,    # (E, 3Hp+Op)      [W_ir | W_iz | W_in | fcW_emb]  (emb rows)
    w_c_ref,    # (Hp, 3Hp)        [W_ir | W_iz | W_in]            (context rows)
    w_hh_ref,   # (Hp, 3Hp)        [W_hr | W_hz | W_hn]
    fcw_h_ref,  # (Hp, Op)         fc_out rows for hidden
    fcw_c_ref,  # (Hp, Op)         fc_out rows for context
    b_g_ref,    # (1, 3Hp)         [b_ir+b_hr | b_iz+b_hz | b_in]
    b_hn_ref,   # (1, Hp)          b_hn (stays inside the r*() product)
    fcb_ref,    # (1, Op)
    out_ref,    # (T, BBLK, Op)    per-step logits
    gx_scr,     # (T*BBLK, 3Hp+Op) f32 scratch: emb contributions, all timesteps
    *, unroll, mxu_dtype,
):
    T, BBLK, E = emb_ref.shape
    Hp = h0_ref.shape[1]
    H2, H3 = 2 * Hp, 3 * Hp
    f32 = jnp.float32

    # ---- hoisted: single fused matmul over all timesteps (M = T*BBLK) ----
    emb2 = emb_ref[...].reshape(T * BBLK, E)
    gx_scr[...] = jnp.dot(emb2, w_x_ref[...], preferred_element_type=f32)

    # ---- time-invariant context contributions (biases folded once) ----
    ctx = ctx_ref[...].astype(mxu_dtype)
    gic = jnp.dot(ctx, w_c_ref[...], preferred_element_type=f32) + b_g_ref[...]
    gic_rz, gic_n = gic[:, :H2], gic[:, H2:]
    fcc = jnp.dot(ctx, fcw_c_ref[...], preferred_element_type=f32) + fcb_ref[...]
    b_hn = b_hn_ref[...]

    # ---- recurrent decode loop: 2 fused dots + gates per step ----
    def step(t, h):
        row = pl.multiple_of(t * BBLK, BBLK)
        gx = gx_scr[pl.ds(row, BBLK), :]                        # (BBLK, 3Hp+Op)
        gh = jnp.dot(h.astype(mxu_dtype), w_hh_ref[...],
                     preferred_element_type=f32)                # (BBLK, 3Hp)
        rz = jax.nn.sigmoid(gx[:, :H2] + gic_rz + gh[:, :H2])
        r, z = rz[:, :Hp], rz[:, Hp:]
        n = jnp.tanh(gx[:, H2:H3] + gic_n + r * (gh[:, H2:] + b_hn))
        h_new = (1.0 - z) * n + z * h
        out_ref[t] = (jnp.dot(h_new.astype(mxu_dtype), fcw_h_ref[...],
                              preferred_element_type=f32)
                      + gx[:, H3:] + fcc)
        return h_new

    lax.fori_loop(0, T, step, h0_ref[...], unroll=unroll)


# -----------------------------------------------------------------------------
# Wrapper
# -----------------------------------------------------------------------------
def _full_spec(shape):
    nd = len(shape)
    return pl.BlockSpec(shape, lambda b, _nd=nd: (0,) * _nd)


def _vmem_need_bytes(bblk, T, E, Hp, Op, mxu_bytes):
    c = 3 * Hp + Op
    scratch = T * bblk * c * 4
    io = 2 * T * bblk * E * mxu_bytes + 2 * T * bblk * Op * 4 + 2 * 2 * bblk * Hp * 4
    w = 2 * (E * c + 2 * Hp * 3 * Hp + 2 * Hp * Op) * mxu_bytes \
        + 2 * (3 * Hp + Hp + Op) * 4
    return scratch + io + w


def _choose_bblk(B, T, E, Hp, Op, mxu_bytes, budget):
    bblk = min(_round_up(B, 8), 256)           # fill the MXU rows, cap at 256
    while bblk > 8 and _vmem_need_bytes(bblk, T, E, Hp, Op, mxu_bytes) > budget:
        bblk -= 8
    return bblk


@functools.partial(jax.jit, static_argnames=("teacher_forcing_ratio", "mxu_dtype"))
def gru_decoder(target, hidden, context, params, teacher_forcing_ratio=1.0,
                mxu_dtype=jnp.float32):
    """target: (B, T+1) int32; hidden, context: (1, B, H) f32.  Returns (B, O, T)."""
    assert teacher_forcing_ratio >= 1.0, \
        "only the deterministic teacher-forcing path is implemented"
    B, Tp1 = target.shape
    T = Tp1 - 1
    O = params["emb_table"].shape[0]           # vocab == output_size
    E = params["w_x"].shape[0]
    Hp = params["w_hh"].shape[0]
    Op = params["fcb"].shape[-1]

    h0 = hidden[0].astype(jnp.float32)         # (B, H)
    ctx = context[0].astype(jnp.float32)       # (B, H)
    H = h0.shape[-1]
    if Hp != H:                                # lane-dense hidden dim
        h0 = jnp.pad(h0, ((0, 0), (0, Hp - H)))
        ctx = jnp.pad(ctx, ((0, 0), (0, Hp - H)))

    # plain-JAX glue: embedding gather of the teacher-forced inputs, time-major.
    emb = params["emb_table"][target[:, :T]]              # (B, T, E)
    emb = jnp.transpose(emb, (1, 0, 2)).astype(mxu_dtype)  # (T, B, E)

    mxu_bytes = jnp.dtype(mxu_dtype).itemsize
    # v7x-safe budget (64 MiB physical); can be raised toward ~96 MiB on v5e/v6e.
    budget = 40 * 1024 * 1024
    BBLK = _choose_bblk(B, T, E, Hp, Op, mxu_bytes, budget)
    Bp = _round_up(B, BBLK)
    if Bp != B:
        pad = Bp - B
        emb = jnp.pad(emb, ((0, 0), (0, pad), (0, 0)))
        h0 = jnp.pad(h0, ((0, pad), (0, 0)))
        ctx = jnp.pad(ctx, ((0, pad), (0, 0)))
    nb = Bp // BBLK

    weights = (params["w_x"].astype(mxu_dtype),
               params["w_c"].astype(mxu_dtype),
               params["w_hh"].astype(mxu_dtype),
               params["fcw_h"].astype(mxu_dtype),
               params["fcw_c"].astype(mxu_dtype),
               params["b_g"], params["b_hn"], params["fcb"])

    need = _vmem_need_bytes(BBLK, T, E, Hp, Op, mxu_bytes)
    vmem_limit = int(min(max(need * 5 // 4 + (4 << 20), 32 << 20), 100 << 20))

    kernel = functools.partial(_gru_decoder_kernel,
                               unroll=min(T, 8), mxu_dtype=mxu_dtype)

    out = pl.pallas_call(
        kernel,
        out_shape=jax.ShapeDtypeStruct((T, Bp, Op), jnp.float32),
        grid_spec=pltpu.PrefetchScalarGridSpec(
            num_scalar_prefetch=0,
            grid=(nb,),
            in_specs=(
                [pl.BlockSpec((T, BBLK, E), lambda b: (0, b, 0)),
                 pl.BlockSpec((BBLK, Hp), lambda b: (b, 0)),
                 pl.BlockSpec((BBLK, Hp), lambda b: (b, 0))]
                + [_full_spec(w.shape) for w in weights]),
            out_specs=pl.BlockSpec((T, BBLK, Op), lambda b: (0, b, 0)),
            scratch_shapes=[pltpu.VMEM((T * BBLK, 3 * Hp + Op), jnp.float32)],
        ),
        compiler_params=pltpu.CompilerParams(
            dimension_semantics=("parallel",),
            vmem_limit_bytes=vmem_limit,
        ),
    )(emb, h0, ctx, *weights)

    out = out[:, :B, :O]                       # strip batch / lane padding
    return jnp.transpose(out, (1, 2, 0))       # (B, O, T)


# -----------------------------------------------------------------------------
# Parameter init (PyTorch layout, mirroring init_weights) and the one-time
# split / transpose / lane-pad into the kernel layout.
# -----------------------------------------------------------------------------
def _xavier_uniform(key, shape):
    fan_out, fan_in = shape
    bound = math.sqrt(6.0 / (fan_in + fan_out))
    return jax.random.uniform(key, shape, jnp.float32, -bound, bound)


def init_torch_params(key, output_size, embedding_size, hidden_size):
    O, E, H = output_size, embedding_size, hidden_size
    k0, k1, k2, k3 = jax.random.split(key, 4)
    return {
        "emb_table": _xavier_uniform(k0, (O, E)),        # nn.Embedding.weight
        "wih": _xavier_uniform(k1, (3 * H, E + H)),      # GRU weight_ih_l0
        "whh": _xavier_uniform(k2, (3 * H, H)),          # GRU weight_hh_l0
        "bih": jnp.zeros((3 * H,), jnp.float32),
        "bhh": jnp.zeros((3 * H,), jnp.float32),
        "fcw": _xavier_uniform(k3, (O, E + 2 * H)),      # fc_out.weight ([emb, hid, ctx])
        "fcb": jnp.zeros((O,), jnp.float32),
    }


def prepare_kernel_params(tp, output_size, embedding_size, hidden_size):
    O, E, H = output_size, embedding_size, hidden_size
    Hp = _round_up(H, 128)
    Op = _round_up(O, 128)

    def pad_cols(w, n_to):
        return jnp.pad(w, ((0, 0), (0, n_to - w.shape[1])))

    def pad_rows(w, n_to):
        return jnp.pad(w, ((0, n_to - w.shape[0]), (0, 0)))

    def pad1(v, n_to):
        return jnp.pad(v, (0, n_to - v.shape[0]))

    def gate_cols(w_t):     # (rows, 3H) -> (rows, 3Hp), each gate lane-padded
        return jnp.concatenate([pad_cols(w_t[:, :H], Hp),
                                pad_cols(w_t[:, H:2 * H], Hp),
                                pad_cols(w_t[:, 2 * H:], Hp)], axis=1)

    wih_t = tp["wih"].T             # (E+H, 3H)
    whh_t = tp["whh"].T             # (H, 3H)
    fcw_t = tp["fcw"].T             # (E+2H, O)
    bih, bhh = tp["bih"], tp["bhh"]

    b_r = bih[:H] + bhh[:H]                     # b_ir + b_hr (foldable)
    b_z = bih[H:2 * H] + bhh[H:2 * H]           # b_iz + b_hz (foldable)
    b_ni = bih[2 * H:]                          # b_in (foldable)
    b_hn = bhh[2 * H:]                          # b_hn (stays inside r*())

    return {
        "emb_table": tp["emb_table"],                                   # (O, E)
        "w_x": jnp.concatenate([gate_cols(wih_t[:E]),
                                pad_cols(fcw_t[:E], Op)], axis=1),      # (E, 3Hp+Op)
        "w_c": pad_rows(gate_cols(wih_t[E:]), Hp),                      # (Hp, 3Hp)
        "w_hh": pad_rows(gate_cols(whh_t), Hp),                         # (Hp, 3Hp)
        "fcw_h": pad_rows(pad_cols(fcw_t[E:E + H], Op), Hp),            # (Hp, Op)
        "fcw_c": pad_rows(pad_cols(fcw_t[E + H:], Op), Hp),             # (Hp, Op)
        "b_g": jnp.concatenate([pad1(b_r, Hp), pad1(b_z, Hp),
                                pad1(b_ni, Hp)]).reshape(1, 3 * Hp),    # (1, 3Hp)
        "b_hn": pad1(b_hn, Hp).reshape(1, Hp),                          # (1, Hp)
        "fcb": pad1(tp["fcb"], Op).reshape(1, Op),                      # (1, Op)
    }


# -----------------------------------------------------------------------------
# Pure-JAX reference mirroring the PyTorch forward (teacher forcing ratio 1.0)
# -----------------------------------------------------------------------------
def reference(target, hidden, context, tp, hidden_size):
    B, Tp1 = target.shape
    H = hidden_size
    h = hidden[0]
    ctx = context[0]
    inp = target[:, 0]
    outs = []
    for t in range(1, Tp1):
        e = tp["emb_table"][inp]                       # (B, E)
        x = jnp.concatenate([e, ctx], axis=1)          # (B, E+H)
        gi = x @ tp["wih"].T + tp["bih"]
        gh = h @ tp["whh"].T + tp["bhh"]
        r = jax.nn.sigmoid(gi[:, :H] + gh[:, :H])
        z = jax.nn.sigmoid(gi[:, H:2 * H] + gh[:, H:2 * H])
        n = jnp.tanh(gi[:, 2 * H:] + r * gh[:, 2 * H:])
        h = (1.0 - z) * n + z * h
        o = jnp.concatenate([e, h, ctx], axis=1) @ tp["fcw"].T + tp["fcb"]
        outs.append(o)
        inp = target[:, t]                              # teacher forcing (ratio == 1.0)
    return jnp.stack(outs, axis=2)                      # (B, O, T)


if __name__ == "__main__":
    B, T = 8, 8            # target has T+1 = 9 tokens per row
    O, E, H = 16, 16, 32   # output_size, embedding_size, hidden_size

    key = jax.random.PRNGKey(0)
    k_tgt, k_hid, k_ctx, k_par = jax.random.split(key, 4)

    target = jax.random.randint(k_tgt, (B, T + 1), 0, O, dtype=jnp.int32)
    hidden = jax.random.normal(k_hid, (1, B, H), jnp.float32)
    context = jax.random.normal(k_ctx, (1, B, H), jnp.float32)

    torch_params = init_torch_params(k_par, O, E, H)
    kparams = prepare_kernel_params(torch_params, O, E, H)

    outputs = gru_decoder(target, hidden, context, kparams, teacher_forcing_ratio=1.0)
    jax.block_until_ready(outputs)
    assert outputs.shape == (B, O, T), outputs.shape

    ref = reference(target, hidden, context, torch_params, H)
    assert jnp.allclose(outputs, ref, atol=1e-2, rtol=1e-2), \
        float(jnp.max(jnp.abs(outputs - ref)))

    # bf16 MXU-operand path (production option for v6e/v7x): h carry stays f32.
    out_bf16 = gru_decoder(target, hidden, context, kparams,
                           teacher_forcing_ratio=1.0, mxu_dtype=jnp.bfloat16)
    jax.block_until_ready(out_bf16)
    assert out_bf16.shape == (B, O, T)
    assert bool(jnp.all(jnp.isfinite(out_bf16)))

    print("KERNEL_OK")
</pallas_src>

<mosaic_0001>
module attributes {stable_mosaic.version = 11 : i64} {
  func.func @_gru_decoder_kernel(%arg0: i32, %arg1: memref<8x8x16xf32, #tpu.memory_space<vmem>>, %arg2: memref<8x128xf32, #tpu.memory_space<vmem>>, %arg3: memref<8x128xf32, #tpu.memory_space<vmem>>, %arg4: memref<16x512xf32, #tpu.memory_space<vmem>>, %arg5: memref<128x384xf32, #tpu.memory_space<vmem>>, %arg6: memref<128x384xf32, #tpu.memory_space<vmem>>, %arg7: memref<128x128xf32, #tpu.memory_space<vmem>>, %arg8: memref<128x128xf32, #tpu.memory_space<vmem>>, %arg9: memref<1x384xf32, #tpu.memory_space<vmem>>, %arg10: memref<1x128xf32, #tpu.memory_space<vmem>>, %arg11: memref<1x128xf32, #tpu.memory_space<vmem>>, %arg12: memref<8x8x128xf32, #tpu.memory_space<vmem>>, %arg13: memref<64x512xf32, #tpu.memory_space<vmem>>) attributes {dimension_semantics = [#tpu.dimension_semantics<parallel>], iteration_bounds = array<i64: 1>, scalar_prefetch = 0 : i64, scratch_operands = 1 : i64, tpu.core_type = #tpu.core_type<tc>, window_params = [{transform_indices = @transform_0, window_bounds = array<i64: 8, 8, 16>}, {transform_indices = @transform_1, window_bounds = array<i64: 8, 128>}, {transform_indices = @transform_2, window_bounds = array<i64: 8, 128>}, {pipeline_mode = #tpu.pipeline_mode<synchronous>, transform_indices = @transform_3, window_bounds = array<i64: 16, 512>}, {pipeline_mode = #tpu.pipeline_mode<synchronous>, transform_indices = @transform_4, window_bounds = array<i64: 128, 384>}, {pipeline_mode = #tpu.pipeline_mode<synchronous>, transform_indices = @transform_5, window_bounds = array<i64: 128, 384>}, {pipeline_mode = #tpu.pipeline_mode<synchronous>, transform_indices = @transform_6, window_bounds = array<i64: 128, 128>}, {pipeline_mode = #tpu.pipeline_mode<synchronous>, transform_indices = @transform_7, window_bounds = array<i64: 128, 128>}, {pipeline_mode = #tpu.pipeline_mode<synchronous>, transform_indices = @transform_8, window_bounds = array<i64: 1, 384>}, {pipeline_mode = #tpu.pipeline_mode<synchronous>, transform_indices = @transform_9, window_bounds = array<i64: 1, 128>}, {pipeline_mode = #tpu.pipeline_mode<synchronous>, transform_indices = @transform_10, window_bounds = array<i64: 1, 128>}, {transform_indices = @transform_11, window_bounds = array<i64: 8, 8, 128>}]} {
    %c0 = arith.constant 0 : index
    %c0_0 = arith.constant 0 : index
    %c0_1 = arith.constant 0 : index
    %0 = vector.load %arg1[%c0, %c0_0, %c0_1] : memref<8x8x16xf32, #tpu.memory_space<vmem>>, vector<8x8x16xf32>
    %1 = vector.shape_cast %0 : vector<8x8x16xf32> to vector<64x16xf32>
    %c0_2 = arith.constant 0 : index
    %c0_3 = arith.constant 0 : index
    %2 = vector.load %arg4[%c0_2, %c0_3] : memref<16x512xf32, #tpu.memory_space<vmem>>, vector<16x512xf32>
    %cst = arith.constant dense<0.000000e+00> : vector<64x512xf32>
    %3 = tpu.matmul %1, %2, %cst {dimension_numbers = #tpu.dot_dimension_numbers<[1], [0], [0], [1], [0, 0, 1, 1], [], []>} : vector<64x16xf32>, vector<16x512xf32>, vector<64x512xf32> -> vector<64x512xf32>
    %c0_4 = arith.constant 0 : index
    %c0_5 = arith.constant 0 : index
    %4 = vector.load %arg13[%c0_4, %c0_5] : memref<64x512xf32, #tpu.memory_space<vmem>>, vector<64x512xf32>
    tpu.vector_store %arg13[%c0_4, %c0_5], %3 {strides = array<i32>} : memref<64x512xf32, #tpu.memory_space<vmem>>, vector<64x512xf32>,
    %c0_6 = arith.constant 0 : index
    %c0_7 = arith.constant 0 : index
    %5 = vector.load %arg3[%c0_6, %c0_7] : memref<8x128xf32, #tpu.memory_space<vmem>>, vector<8x128xf32>
    %c0_8 = arith.constant 0 : index
    %c0_9 = arith.constant 0 : index
    %6 = vector.load %arg5[%c0_8, %c0_9] : memref<128x384xf32, #tpu.memory_space<vmem>>, vector<128x384xf32>
    %cst_10 = arith.constant dense<0.000000e+00> : vector<8x384xf32>
    %7 = tpu.matmul %5, %6, %cst_10 {dimension_numbers = #tpu.dot_dimension_numbers<[1], [0], [0], [1], [0, 0, 1, 1], [], []>} : vector<8x128xf32>, vector<128x384xf32>, vector<8x384xf32> -> vector<8x384xf32>
    %c0_11 = arith.constant 0 : index
    %c0_12 = arith.constant 0 : index
    %8 = vector.load %arg9[%c0_11, %c0_12] : memref<1x384xf32, #tpu.memory_space<vmem>>, vector<1x384xf32>
    %9 = vector.broadcast %8 : vector<1x384xf32> to vector<8x384xf32>
    %10 = arith.addf %7, %9 : vector<8x384xf32>
    %11 = vector.extract_strided_slice %10 {offsets = [0, 0], sizes = [8, 256], strides = [1, 1]} : vector<8x384xf32> to vector<8x256xf32>
    %12 = vector.extract_strided_slice %10 {offsets = [0, 256], sizes = [8, 128], strides = [1, 1]} : vector<8x384xf32> to vector<8x128xf32>
    %c0_13 = arith.constant 0 : index
    %c0_14 = arith.constant 0 : index
    %13 = vector.load %arg8[%c0_13, %c0_14] : memref<128x128xf32, #tpu.memory_space<vmem>>, vector<128x128xf32>
    %cst_15 = arith.constant dense<0.000000e+00> : vector<8x128xf32>
    %14 = tpu.matmul %5, %13, %cst_15 {dimension_numbers = #tpu.dot_dimension_numbers<[1], [0], [0], [1], [0, 0, 1, 1], [], []>} : vector<8x128xf32>, vector<128x128xf32>, vector<8x128xf32> -> vector<8x128xf32>
    %c0_16 = arith.constant 0 : index
    %c0_17 = arith.constant 0 : index
    %15 = vector.load %arg11[%c0_16, %c0_17] : memref<1x128xf32, #tpu.memory_space<vmem>>, vector<1x128xf32>
    %16 = vector.broadcast %15 : vector<1x128xf32> to vector<8x128xf32>
    %17 = arith.addf %14, %16 : vector<8x128xf32>
    %c0_18 = arith.constant 0 : index
    %c0_19 = arith.constant 0 : index
    %18 = vector.load %arg10[%c0_18, %c0_19] : memref<1x128xf32, #tpu.memory_space<vmem>>, vector<1x128xf32>
    %c0_20 = arith.constant 0 : index
    %c0_21 = arith.constant 0 : index
    %19 = vector.load %arg2[%c0_20, %c0_21] : memref<8x128xf32, #tpu.memory_space<vmem>>, vector<8x128xf32>
    %c0_i32 = arith.constant 0 : i32
    %c8_i32 = arith.constant 8 : i32
    %20 = arith.muli %c0_i32, %c8_i32 : i32
    %21 = tpu.assume_multiple %20, 8 : i32
    %22 = arith.index_cast %21 : i32 to index
    %c0_22 = arith.constant 0 : index
    %23 = vector.load %arg13[%22, %c0_22] : memref<64x512xf32, #tpu.memory_space<vmem>>, vector<8x512xf32>
    %c0_23 = arith.constant 0 : index
    %c0_24 = arith.constant 0 : index
    %24 = vector.load %arg6[%c0_23, %c0_24] : memref<128x384xf32, #tpu.memory_space<vmem>>, vector<128x384xf32>
    %cst_25 = arith.constant dense<0.000000e+00> : vector<8x384xf32>
    %25 = tpu.matmul %19, %24, %cst_25 {dimension_numbers = #tpu.dot_dimension_numbers<[1], [0], [0], [1], [0, 0, 1, 1], [], []>} : vector<8x128xf32>, vector<128x384xf32>, vector<8x384xf32> -> vector<8x384xf32>
    %26 = vector.extract_strided_slice %23 {offsets = [0, 0], sizes = [8, 256], strides = [1, 1]} : vector<8x512xf32> to vector<8x256xf32>
    %27 = arith.addf %26, %11 : vector<8x256xf32>
    %28 = vector.extract_strided_slice %25 {offsets = [0, 0], sizes = [8, 256], strides = [1, 1]} : vector<8x384xf32> to vector<8x256xf32>
    %29 = arith.addf %27, %28 : vector<8x256xf32>
    %30 = arith.negf %29 : vector<8x256xf32>
    %31 = math.exp %30 : vector<8x256xf32>
    %cst_26 = arith.constant 1.000000e+00 : f32
    %32 = vector.broadcast %cst_26 : f32 to vector<8x256xf32>
    %33 = arith.addf %32, %31 : vector<8x256xf32>
    %34 = arith.divf %32, %33 : vector<8x256xf32>
    %35 = vector.extract_strided_slice %34 {offsets = [0, 0], sizes = [8, 128], strides = [1, 1]} : vector<8x256xf32> to vector<8x128xf32>
    %36 = vector.extract_strided_slice %34 {offsets = [0, 128], sizes = [8, 128], strides = [1, 1]} : vector<8x256xf32> to vector<8x128xf32>
    %37 = vector.extract_strided_slice %23 {offsets = [0, 256], sizes = [8, 128], strides = [1, 1]} : vector<8x512xf32> to vector<8x128xf32>
    %38 = arith.addf %37, %12 : vector<8x128xf32>
    %39 = vector.extract_strided_slice %25 {offsets = [0, 256], sizes = [8, 128], strides = [1, 1]} : vector<8x384xf32> to vector<8x128xf32>
    %40 = vector.broadcast %18 : vector<1x128xf32> to vector<8x128xf32>
    %41 = arith.addf %39, %40 : vector<8x128xf32>
    %42 = arith.mulf %35, %41 : vector<8x128xf32>
    %43 = arith.addf %38, %42 : vector<8x128xf32>
    %44 = math.tanh %43 : vector<8x128xf32>
    %cst_27 = arith.constant 1.000000e+00 : f32
    %45 = vector.broadcast %cst_27 : f32 to vector<8x128xf32>
    %46 = arith.subf %45, %36 : vector<8x128xf32>
    %47 = arith.mulf %46, %44 : vector<8x128xf32>
    %48 = arith.mulf %36, %19 : vector<8x128xf32>
    %49 = arith.addf %47, %48 : vector<8x128xf32>
    %c0_28 = arith.constant 0 : index
    %c0_29 = arith.constant 0 : index
    %50 = vector.load %arg7[%c0_28, %c0_29] : memref<128x128xf32, #tpu.memory_space<vmem>>, vector<128x128xf32>
    %cst_30 = arith.constant dense<0.000000e+00> : vector<8x128xf32>
    %51 = tpu.matmul %49, %50, %cst_30 {dimension_numbers = #tpu.dot_dimension_numbers<[1], [0], [0], [1], [0, 0, 1, 1], [], []>} : vector<8x128xf32>, vector<128x128xf32>, vector<8x128xf32> -> vector<8x128xf32>
    %52 = vector.extract_strided_slice %23 {offsets = [0, 384], sizes = [8, 128], strides = [1, 1]} : vector<8x512xf32> to vector<8x128xf32>
    %53 = arith.addf %51, %52 : vector<8x128xf32>
    %54 = arith.addf %53, %17 : vector<8x128xf32>
    %55 = arith.index_cast %c0_i32 : i32 to index
    %c0_31 = arith.constant 0 : index
    %c0_32 = arith.constant 0 : index
    %56 = vector.load %arg12[%55, %c0_31, %c0_32] : memref<8x8x128xf32, #tpu.memory_space<vmem>>, vector<1x8x128xf32>
    %57 = vector.shape_cast %56 : vector<1x8x128xf32> to vector<8x128xf32>
    %58 = vector.shape_cast %54 : vector<8x128xf32> to vector<1x8x128xf32>
    tpu.vector_store %arg12[%55, %c0_31, %c0_32], %58 {strides = array<i32>} : memref<8x8x128xf32, #tpu.memory_space<vmem>>, vector<1x8x128xf32>,
    %c1_i32 = arith.constant 1 : i32
    %c8_i32_33 = arith.constant 8 : i32
    %59 = arith.muli %c1_i32, %c8_i32_33 : i32
    %60 = tpu.assume_multiple %59, 8 : i32
    %61 = arith.index_cast %60 : i32 to index
    %c0_34 = arith.constant 0 : index
    %62 = vector.load %arg13[%61, %c0_34] : memref<64x512xf32, #tpu.memory_space<vmem>>, vector<8x512xf32>
    %c0_35 = arith.constant 0 : index
    %c0_36 = arith.constant 0 : index
    %63 = vector.load %arg6[%c0_35, %c0_36] : memref<128x384xf32, #tpu.memory_space<vmem>>, vector<128x384xf32>
    %cst_37 = arith.constant dense<0.000000e+00> : vector<8x384xf32>
    %64 = tpu.matmul %49, %63, %cst_37 {dimension_numbers = #tpu.dot_dimension_numbers<[1], [0], [0], [1], [0, 0, 1, 1], [], []>} : vector<8x128xf32>, vector<128x384xf32>, vector<8x384xf32> -> vector<8x384xf32>
    %65 = vector.extract_strided_slice %62 {offsets = [0, 0], sizes = [8, 256], strides = [1, 1]} : vector<8x512xf32> to vector<8x256xf32>
    %66 = arith.addf %65, %11 : vector<8x256xf32>
    %67 = vector.extract_strided_slice %64 {offsets = [0, 0], sizes = [8, 256], strides = [1, 1]} : vector<8x384xf32> to vector<8x256xf32>
    %68 = arith.addf %66, %67 : vector<8x256xf32>
    %69 = arith.negf %68 : vector<8x256xf32>
    %70 = math.exp %69 : vector<8x256xf32>
    %cst_38 = arith.constant 1.000000e+00 : f32
    %71 = vector.broadcast %cst_38 : f32 to vector<8x256xf32>
    %72 = arith.addf %71, %70 : vector<8x256xf32>
    %73 = arith.divf %71, %72 : vector<8x256xf32>
    %74 = vector.extract_strided_slice %73 {offsets = [0, 0], sizes = [8, 128], strides = [1, 1]} : vector<8x256xf32> to vector<8x128xf32>
    %75 = vector.extract_strided_slice %73 {offsets = [0, 128], sizes = [8, 128], strides = [1, 1]} : vector<8x256xf32> to vector<8x128xf32>
    %76 = vector.extract_strided_slice %62 {offsets = [0, 256], sizes = [8, 128], strides = [1, 1]} : vector<8x512xf32> to vector<8x128xf32>
    %77 = arith.addf %76, %12 : vector<8x128xf32>
    %78 = vector.extract_strided_slice %64 {offsets = [0, 256], sizes = [8, 128], strides = [1, 1]} : vector<8x384xf32> to vector<8x128xf32>
    %79 = vector.broadcast %18 : vector<1x128xf32> to vector<8x128xf32>
    %80 = arith.addf %78, %79 : vector<8x128xf32>
    %81 = arith.mulf %74, %80 : vector<8x128xf32>
    %82 = arith.addf %77, %81 : vector<8x128xf32>
    %83 = math.tanh %82 : vector<8x128xf32>
    %cst_39 = arith.constant 1.000000e+00 : f32
    %84 = vector.broadcast %cst_39 : f32 to vector<8x128xf32>
    %85 = arith.subf %84, %75 : vector<8x128xf32>
    %86 = arith.mulf %85, %83 : vector<8x128xf32>
    %87 = arith.mulf %75, %49 : vector<8x128xf32>
    %88 = arith.addf %86, %87 : vector<8x128xf32>
    %c0_40 = arith.constant 0 : index
    %c0_41 = arith.constant 0 : index
    %89 = vector.load %arg7[%c0_40, %c0_41] : memref<128x128xf32, #tpu.memory_space<vmem>>, vector<128x128xf32>
    %cst_42 = arith.constant dense<0.000000e+00> : vector<8x128xf32>
    %90 = tpu.matmul %88, %89, %cst_42 {dimension_numbers = #tpu.dot_dimension_numbers<[1], [0], [0], [1], [0, 0, 1, 1], [], []>} : vector<8x128xf32>, vector<128x128xf32>, vector<8x128xf32> -> vector<8x128xf32>
    %91 = vector.extract_strided_slice %62 {offsets = [0, 384], sizes = [8, 128], strides = [1, 1]} : vector<8x512xf32> to vector<8x128xf32>
    %92 = arith.addf %90, %91 : vector<8x128xf32>
    %93 = arith.addf %92, %17 : vector<8x128xf32>
    %94 = arith.index_cast %c1_i32 : i32 to index
    %c0_43 = arith.constant 0 : index
    %c0_44 = arith.constant 0 : index
    %95 = vector.load %arg12[%94, %c0_43, %c0_44] : memref<8x8x128xf32, #tpu.memory_space<vmem>>, vector<1x8x128xf32>
    %96 = vector.shape_cast %95 : vector<1x8x128xf32> to vector<8x128xf32>
    %97 = vector.shape_cast %93 : vector<8x128xf32> to vector<1x8x128xf32>
    tpu.vector_store %arg12[%94, %c0_43, %c0_44], %97 {strides = array<i32>} : memref<8x8x128xf32, #tpu.memory_space<vmem>>, vector<1x8x128xf32>,
    %c2_i32 = arith.constant 2 : i32
    %c8_i32_45 = arith.constant 8 : i32
    %98 = arith.muli %c2_i32, %c8_i32_45 : i32
    %99 = tpu.assume_multiple %98, 8 : i32
    %100 = arith.index_cast %99 : i32 to index
    %c0_46 = arith.constant 0 : index
    %101 = vector.load %arg13[%100, %c0_46] : memref<64x512xf32, #tpu.memory_space<vmem>>, vector<8x512xf32>
    %c0_47 = arith.constant 0 : index
    %c0_48 = arith.constant 0 : index
    %102 = vector.load %arg6[%c0_47, %c0_48] : memref<128x384xf32, #tpu.memory_space<vmem>>, vector<128x384xf32>
    %cst_49 = arith.constant dense<0.000000e+00> : vector<8x384xf32>
    %103 = tpu.matmul %88, %102, %cst_49 {dimension_numbers = #tpu.dot_dimension_numbers<[1], [0], [0], [1], [0, 0, 1, 1], [], []>} : vector<8x128xf32>, vector<128x384xf32>, vector<8x384xf32> -> vector<8x384xf32>
    %104 = vector.extract_strided_slice %101 {offsets = [0, 0], sizes = [8, 256], strides = [1, 1]} : vector<8x512xf32> to vector<8x256xf32>
    %105 = arith.addf %104, %11 : vector<8x256xf32>
    %106 = vector.extract_strided_slice %103 {offsets = [0, 0], sizes = [8, 256], strides = [1, 1]} : vector<8x384xf32> to vector<8x256xf32>
    %107 = arith.addf %105, %106 : vector<8x256xf32>
    %108 = arith.negf %107 : vector<8x256xf32>
    %109 = math.exp %108 : vector<8x256xf32>
    %cst_50 = arith.constant 1.000000e+00 : f32
    %110 = vector.broadcast %cst_50 : f32 to vector<8x256xf32>
    %111 = arith.addf %110, %109 : vector<8x256xf32>
    %112 = arith.divf %110, %111 : vector<8x256xf32>
    %113 = vector.extract_strided_slice %112 {offsets = [0, 0], sizes = [8, 128], strides = [1, 1]} : vector<8x256xf32> to vector<8x128xf32>
    %114 = vector.extract_strided_slice %112 {offsets = [0, 128], sizes = [8, 128], strides = [1, 1]} : vector<8x256xf32> to vector<8x128xf32>
    %115 = vector.extract_strided_slice %101 {offsets = [0, 256], sizes = [8, 128], strides = [1, 1]} : vector<8x512xf32> to vector<8x128xf32>
    %116 = arith.addf %115, %12 : vector<8x128xf32>
    %117 = vector.extract_strided_slice %103 {offsets = [0, 256], sizes = [8, 128], strides = [1, 1]} : vector<8x384xf32> to vector<8x128xf32>
    %118 = vector.broadcast %18 : vector<1x128xf32> to vector<8x128xf32>
    %119 = arith.addf %117, %118 : vector<8x128xf32>
    %120 = arith.mulf %113, %119 : vector<8x128xf32>
    %121 = arith.addf %116, %120 : vector<8x128xf32>
    %122 = math.tanh %121 : vector<8x128xf32>
    %cst_51 = arith.constant 1.000000e+00 : f32
    %123 = vector.broadcast %cst_51 : f32 to vector<8x128xf32>
    %124 = arith.subf %123, %114 : vector<8x128xf32>
    %125 = arith.mulf %124, %122 : vector<8x128xf32>
    %126 = arith.mulf %114, %88 : vector<8x128xf32>
    %127 = arith.addf %125, %126 : vector<8x128xf32>
    %c0_52 = arith.constant 0 : index
    %c0_53 = arith.constant 0 : index
    %128 = vector.load %arg7[%c0_52, %c0_53] : memref<128x128xf32, #tpu.memory_space<vmem>>, vector<128x128xf32>
    %cst_54 = arith.constant dense<0.000000e+00> : vector<8x128xf32>
    %129 = tpu.matmul %127, %128, %cst_54 {dimension_numbers = #tpu.dot_dimension_numbers<[1], [0], [0], [1], [0, 0, 1, 1], [], []>} : vector<8x128xf32>, vector<128x128xf32>, vector<8x128xf32> -> vector<8x128xf32>
    %130 = vector.extract_strided_slice %101 {offsets = [0, 384], sizes = [8, 128], strides = [1, 1]} : vector<8x512xf32> to vector<8x128xf32>
    %131 = arith.addf %129, %130 : vector<8x128xf32>
    %132 = arith.addf %131, %17 : vector<8x128xf32>
    %133 = arith.index_cast %c2_i32 : i32 to index
    %c0_55 = arith.constant 0 : index
    %c0_56 = arith.constant 0 : index
    %134 = vector.load %arg12[%133, %c0_55, %c0_56] : memref<8x8x128xf32, #tpu.memory_space<vmem>>, vector<1x8x128xf32>
    %135 = vector.shape_cast %134 : vector<1x8x128xf32> to vector<8x128xf32>
    %136 = vector.shape_cast %132 : vector<8x128xf32> to vector<1x8x128xf32>
    tpu.vector_store %arg12[%133, %c0_55, %c0_56], %136 {strides = array<i32>} : memref<8x8x128xf32, #tpu.memory_space<vmem>>, vector<1x8x128xf32>,
    %c3_i32 = arith.constant 3 : i32
    %c8_i32_57 = arith.constant 8 : i32
    %137 = arith.muli %c3_i32, %c8_i32_57 : i32
    %138 = tpu.assume_multiple %137, 8 : i32
    %139 = arith.index_cast %138 : i32 to index
    %c0_58 = arith.constant 0 : index
    %140 = vector.load %arg13[%139, %c0_58] : memref<64x512xf32, #tpu.memory_space<vmem>>, vector<8x512xf32>
    %c0_59 = arith.constant 0 : index
    %c0_60 = arith.constant 0 : index
    %141 = vector.load %arg6[%c0_59, %c0_60] : memref<128x384xf32, #tpu.memory_space<vmem>>, vector<128x384xf32>
    %cst_61 = arith.constant dense<0.000000e+00> : vector<8x384xf32>
    %142 = tpu.matmul %127, %141, %cst_61 {dimension_numbers = #tpu.dot_dimension_numbers<[1], [0], [0], [1], [0, 0, 1, 1], [], []>} : vector<8x128xf32>, vector<128x384xf32>, vector<8x384xf32> -> vector<8x384xf32>
    %143 = vector.extract_strided_slice %140 {offsets = [0, 0], sizes = [8, 256], strides = [1, 1]} : vector<8x512xf32> to vector<8x256xf32>
    %144 = arith.addf %143, %11 : vector<8x256xf32>
    %145 = vector.extract_strided_slice %142 {offsets = [0, 0], sizes = [8, 256], strides = [1, 1]} : vector<8x384xf32> to vector<8x256xf32>
    %146 = arith.addf %144, %145 : vector<8x256xf32>
    %147 = arith.negf %146 : vector<8x256xf32>
    %148 = math.exp %147 : vector<8x256xf32>
    %cst_62 = arith.constant 1.000000e+00 : f32
    %149 = vector.broadcast %cst_62 : f32 to vector<8x256xf32>
    %150 = arith.addf %149, %148 : vector<8x256xf32>
    %151 = arith.divf %149, %150 : vector<8x256xf32>
    %152 = vector.extract_strided_slice %151 {offsets = [0, 0], sizes = [8, 128], strides = [1, 1]} : vector<8x256xf32> to vector<8x128xf32>
    %153 = vector.extract_strided_slice %151 {offsets = [0, 128], sizes = [8, 128], strides = [1, 1]} : vector<8x256xf32> to vector<8x128xf32>
    %154 = vector.extract_strided_slice %140 {offsets = [0, 256], sizes = [8, 128], strides = [1, 1]} : vector<8x512xf32> to vector<8x128xf32>
    %155 = arith.addf %154, %12 : vector<8x128xf32>
    %156 = vector.extract_strided_slice %142 {offsets = [0, 256], sizes = [8, 128], strides = [1, 1]} : vector<8x384xf32> to vector<8x128xf32>
    %157 = vector.broadcast %18 : vector<1x128xf32> to vector<8x128xf32>
    %158 = arith.addf %156, %157 : vector<8x128xf32>
    %159 = arith.mulf %152, %158 : vector<8x128xf32>
    %160 = arith.addf %155, %159 : vector<8x128xf32>
    %161 = math.tanh %160 : vector<8x128xf32>
    %cst_63 = arith.constant 1.000000e+00 : f32
    %162 = vector.broadcast %cst_63 : f32 to vector<8x128xf32>
    %163 = arith.subf %162, %153 : vector<8x128xf32>
    %164 = arith.mulf %163, %161 : vector<8x128xf32>
    %165 = arith.mulf %153, %127 : vector<8x128xf32>
    %166 = arith.addf %164, %165 : vector<8x128xf32>
    %c0_64 = arith.constant 0 : index
    %c0_65 = arith.constant 0 : index
    %167 = vector.load %arg7[%c0_64, %c0_65] : memref<128x128xf32, #tpu.memory_space<vmem>>, vector<128x128xf32>
    %cst_66 = arith.constant dense<0.000000e+00> : vector<8x128xf32>
    %168 = tpu.matmul %166, %167, %cst_66 {dimension_numbers = #tpu.dot_dimension_numbers<[1], [0], [0], [1], [0, 0, 1, 1], [], []>} : vector<8x128xf32>, vector<128x128xf32>, vector<8x128xf32> -> vector<8x128xf32>
    %169 = vector.extract_strided_slice %140 {offsets = [0, 384], sizes = [8, 128], strides = [1, 1]} : vector<8x512xf32> to vector<8x128xf32>
    %170 = arith.addf %168, %169 : vector<8x128xf32>
    %171 = arith.addf %170, %17 : vector<8x128xf32>
    %172 = arith.index_cast %c3_i32 : i32 to index
    %c0_67 = arith.constant 0 : index
    %c0_68 = arith.constant 0 : index
    %173 = vector.load %arg12[%172, %c0_67, %c0_68] : memref<8x8x128xf32, #tpu.memory_space<vmem>>, vector<1x8x128xf32>
    %174 = vector.shape_cast %173 : vector<1x8x128xf32> to vector<8x128xf32>
    %175 = vector.shape_cast %171 : vector<8x128xf32> to vector<1x8x128xf32>
    tpu.vector_store %arg12[%172, %c0_67, %c0_68], %175 {strides = array<i32>} : memref<8x8x128xf32, #tpu.memory_space<vmem>>, vector<1x8x128xf32>,
    %c4_i32 = arith.constant 4 : i32
    %c8_i32_69 = arith.constant 8 : i32
    %176 = arith.muli %c4_i32, %c8_i32_69 : i32
    %177 = tpu.assume_multiple %176, 8 : i32
    %178 = arith.index_cast %177 : i32 to index
    %c0_70 = arith.constant 0 : index
    %179 = vector.load %arg13[%178, %c0_70] : memref<64x512xf32, #tpu.memory_space<vmem>>, vector<8x512xf32>
    %c0_71 = arith.constant 0 : index
    %c0_72 = arith.constant 0 : index
    %180 = vector.load %arg6[%c0_71, %c0_72] : memref<128x384xf32, #tpu.memory_space<vmem>>, vector<128x384xf32>
    %cst_73 = arith.constant dense<0.000000e+00> : vector<8x384xf32>
    %181 = tpu.matmul %166, %180, %cst_73 {dimension_numbers = #tpu.dot_dimension_numbers<[1], [0], [0], [1], [0, 0, 1, 1], [], []>} : vector<8x128xf32>, vector<128x384xf32>, vector<8x384xf32> -> vector<8x384xf32>
    %182 = vector.extract_strided_slice %179 {offsets = [0, 0], sizes = [8, 256], strides = [1, 1]} : vector<8x512xf32> to vector<8x256xf32>
    %183 = arith.addf %182, %11 : vector<8x256xf32>
    %184 = vector.extract_strided_slice %181 {offsets = [0, 0], sizes = [8, 256], strides = [1, 1]} : vector<8x384xf32> to vector<8x256xf32>
    %185 = arith.addf %183, %184 : vector<8x256xf32>
    %186 = arith.negf %185 : vector<8x256xf32>
    %187 = math.exp %186 : vector<8x256xf32>
    %cst_74 = arith.constant 1.000000e+00 : f32
    %188 = vector.broadcast %cst_74 : f32 to vector<8x256xf32>
    %189 = arith.addf %188, %187 : vector<8x256xf32>
    %190 = arith.divf %188, %189 : vector<8x256xf32>
    %191 = vector.extract_strided_slice %190 {offsets = [0, 0], sizes = [8, 128], strides = [1, 1]} : vector<8x256xf32> to vector<8x128xf32>
    %192 = vector.extract_strided_slice %190 {offsets = [0, 128], sizes = [8, 128], strides = [1, 1]} : vector<8x256xf32> to vector<8x128xf32>
    %193 = vector.extract_strided_slice %179 {offsets = [0, 256], sizes = [8, 128], strides = [1, 1]} : vector<8x512xf32> to vector<8x128xf32>
    %194 = arith.addf %193, %12 : vector<8x128xf32>
    %195 = vector.extract_strided_slice %181 {offsets = [0, 256], sizes = [8, 128], strides = [1, 1]} : vector<8x384xf32> to vector<8x128xf32>
    %196 = vector.broadcast %18 : vector<1x128xf32> to vector<8x128xf32>
    %197 = arith.addf %195, %196 : vector<8x128xf32>
    %198 = arith.mulf %191, %197 : vector<8x128xf32>
    %199 = arith.addf %194, %198 : vector<8x128xf32>
    %200 = math.tanh %199 : vector<8x128xf32>
    %cst_75 = arith.constant 1.000000e+00 : f32
    %201 = vector.broadcast %cst_75 : f32 to vector<8x128xf32>
    %202 = arith.subf %201, %192 : vector<8x128xf32>
    %203 = arith.mulf %202, %200 : vector<8x128xf32>
    %204 = arith.mulf %192, %166 : vector<8x128xf32>
    %205 = arith.addf %203, %204 : vector<8x128xf32>
    %c0_76 = arith.constant 0 : index
    %c0_77 = arith.constant 0 : index
    %206 = vector.load %arg7[%c0_76, %c0_77] : memref<128x128xf32, #tpu.memory_space<vmem>>, vector<128x128xf32>
    %cst_78 = arith.constant dense<0.000000e+00> : vector<8x128xf32>
    %207 = tpu.matmul %205, %206, %cst_78 {dimension_numbers = #tpu.dot_dimension_numbers<[1], [0], [0], [1], [0, 0, 1, 1], [], []>} : vector<8x128xf32>, vector<128x128xf32>, vector<8x128xf32> -> vector<8x128xf32>
    %208 = vector.extract_strided_slice %179 {offsets = [0, 384], sizes = [8, 128], strides = [1, 1]} : vector<8x512xf32> to vector<8x128xf32>
    %209 = arith.addf %207, %208 : vector<8x128xf32>
    %210 = arith.addf %209, %17 : vector<8x128xf32>
    %211 = arith.index_cast %c4_i32 : i32 to index
    %c0_79 = arith.constant 0 : index
    %c0_80 = arith.constant 0 : index
    %212 = vector.load %arg12[%211, %c0_79, %c0_80] : memref<8x8x128xf32, #tpu.memory_space<vmem>>, vector<1x8x128xf32>
    %213 = vector.shape_cast %212 : vector<1x8x128xf32> to vector<8x128xf32>
    %214 = vector.shape_cast %210 : vector<8x128xf32> to vector<1x8x128xf32>
    tpu.vector_store %arg12[%211, %c0_79, %c0_80], %214 {strides = array<i32>} : memref<8x8x128xf32, #tpu.memory_space<vmem>>, vector<1x8x128xf32>,
    %c5_i32 = arith.constant 5 : i32
    %c8_i32_81 = arith.constant 8 : i32
    %215 = arith.muli %c5_i32, %c8_i32_81 : i32
    %216 = tpu.assume_multiple %215, 8 : i32
    %217 = arith.index_cast %216 : i32 to index
    %c0_82 = arith.constant 0 : index
    %218 = vector.load %arg13[%217, %c0_82] : memref<64x512xf32, #tpu.memory_space<vmem>>, vector<8x512xf32>
    %c0_83 = arith.constant 0 : index
    %c0_84 = arith.constant 0 : index
    %219 = vector.load %arg6[%c0_83, %c0_84] : memref<128x384xf32, #tpu.memory_space<vmem>>, vector<128x384xf32>
    %cst_85 = arith.constant dense<0.000000e+00> : vector<8x384xf32>
    %220 = tpu.matmul %205, %219, %cst_85 {dimension_numbers = #tpu.dot_dimension_numbers<[1], [0], [0], [1], [0, 0, 1, 1], [], []>} : vector<8x128xf32>, vector<128x384xf32>, vector<8x384xf32> -> vector<8x384xf32>
    %221 = vector.extract_strided_slice %218 {offsets = [0, 0], sizes = [8, 256], strides = [1, 1]} : vector<8x512xf32> to vector<8x256xf32>
    %222 = arith.addf %221, %11 : vector<8x256xf32>
    %223 = vector.extract_strided_slice %220 {offsets = [0, 0], sizes = [8, 256], strides = [1, 1]} : vector<8x384xf32> to vector<8x256xf32>
    %224 = arith.addf %222, %223 : vector<8x256xf32>
    %225 = arith.negf %224 : vector<8x256xf32>
    %226 = math.exp %225 : vector<8x256xf32>
    %cst_86 = arith.constant 1.000000e+00 : f32
    %227 = vector.broadcast %cst_86 : f32 to vector<8x256xf32>
    %228 = arith.addf %227, %226 : vector<8x256xf32>
    %229 = arith.divf %227, %228 : vector<8x256xf32>
    %230 = vector.extract_strided_slice %229 {offsets = [0, 0], sizes = [8, 128], strides = [1, 1]} : vector<8x256xf32> to vector<8x128xf32>
    %231 = vector.extract_strided_slice %229 {offsets = [0, 128], sizes = [8, 128], strides = [1, 1]} : vector<8x256xf32> to vector<8x128xf32>
    %232 = vector.extract_strided_slice %218 {offsets = [0, 256], sizes = [8, 128], strides = [1, 1]} : vector<8x512xf32> to vector<8x128xf32>
    %233 = arith.addf %232, %12 : vector<8x128xf32>
    %234 = vector.extract_strided_slice %220 {offsets = [0, 256], sizes = [8, 128], strides = [1, 1]} : vector<8x384xf32> to vector<8x128xf32>
    %235 = vector.broadcast %18 : vector<1x128xf32> to vector<8x128xf32>
    %236 = arith.addf %234, %235 : vector<8x128xf32>
    %237 = arith.mulf %230, %236 : vector<8x128xf32>
    %238 = arith.addf %233, %237 : vector<8x128xf32>
    %239 = math.tanh %238 : vector<8x128xf32>
    %cst_87 = arith.constant 1.000000e+00 : f32
    %240 = vector.broadcast %cst_87 : f32 to vector<8x128xf32>
    %241 = arith.subf %240, %231 : vector<8x128xf32>
    %242 = arith.mulf %241, %239 : vector<8x128xf32>
    %243 = arith.mulf %231, %205 : vector<8x128xf32>
    %244 = arith.addf %242, %243 : vector<8x128xf32>
    %c0_88 = arith.constant 0 : index
    %c0_89 = arith.constant 0 : index
    %245 = vector.load %arg7[%c0_88, %c0_89] : memref<128x128xf32, #tpu.memory_space<vmem>>, vector<128x128xf32>
    %cst_90 = arith.constant dense<0.000000e+00> : vector<8x128xf32>
    %246 = tpu.matmul %244, %245, %cst_90 {dimension_numbers = #tpu.dot_dimension_numbers<[1], [0], [0], [1], [0, 0, 1, 1], [], []>} : vector<8x128xf32>, vector<128x128xf32>, vector<8x128xf32> -> vector<8x128xf32>
    %247 = vector.extract_strided_slice %218 {offsets = [0, 384], sizes = [8, 128], strides = [1, 1]} : vector<8x512xf32> to vector<8x128xf32>
    %248 = arith.addf %246, %247 : vector<8x128xf32>
    %249 = arith.addf %248, %17 : vector<8x128xf32>
    %250 = arith.index_cast %c5_i32 : i32 to index
    %c0_91 = arith.constant 0 : index
    %c0_92 = arith.constant 0 : index
    %251 = vector.load %arg12[%250, %c0_91, %c0_92] : memref<8x8x128xf32, #tpu.memory_space<vmem>>, vector<1x8x128xf32>
    %252 = vector.shape_cast %251 : vector<1x8x128xf32> to vector<8x128xf32>
    %253 = vector.shape_cast %249 : vector<8x128xf32> to vector<1x8x128xf32>
    tpu.vector_store %arg12[%250, %c0_91, %c0_92], %253 {strides = array<i32>} : memref<8x8x128xf32, #tpu.memory_space<vmem>>, vector<1x8x128xf32>,
    %c6_i32 = arith.constant 6 : i32
    %c8_i32_93 = arith.constant 8 : i32
    %254 = arith.muli %c6_i32, %c8_i32_93 : i32
    %255 = tpu.assume_multiple %254, 8 : i32
    %256 = arith.index_cast %255 : i32 to index
    %c0_94 = arith.constant 0 : index
    %257 = vector.load %arg13[%256, %c0_94] : memref<64x512xf32, #tpu.memory_space<vmem>>, vector<8x512xf32>
    %c0_95 = arith.constant 0 : index
    %c0_96 = arith.constant 0 : index
    %258 = vector.load %arg6[%c0_95, %c0_96] : memref<128x384xf32, #tpu.memory_space<vmem>>, vector<128x384xf32>
    %cst_97 = arith.constant dense<0.000000e+00> : vector<8x384xf32>
    %259 = tpu.matmul %244, %258, %cst_97 {dimension_numbers = #tpu.dot_dimension_numbers<[1], [0], [0], [1], [0, 0, 1, 1], [], []>} : vector<8x128xf32>, vector<128x384xf32>, vector<8x384xf32> -> vector<8x384xf32>
    %260 = vector.extract_strided_slice %257 {offsets = [0, 0], sizes = [8, 256], strides = [1, 1]} : vector<8x512xf32> to vector<8x256xf32>
    %261 = arith.addf %260, %11 : vector<8x256xf32>
    %262 = vector.extract_strided_slice %259 {offsets = [0, 0], sizes = [8, 256], strides = [1, 1]} : vector<8x384xf32> to vector<8x256xf32>
    %263 = arith.addf %261, %262 : vector<8x256xf32>
    %264 = arith.negf %263 : vector<8x256xf32>
    %265 = math.exp %264 : vector<8x256xf32>
    %cst_98 = arith.constant 1.000000e+00 : f32
    %266 = vector.broadcast %cst_98 : f32 to vector<8x256xf32>
    %267 = arith.addf %266, %265 : vector<8x256xf32>
    %268 = arith.divf %266, %267 : vector<8x256xf32>
    %269 = vector.extract_strided_slice %268 {offsets = [0, 0], sizes = [8, 128], strides = [1, 1]} : vector<8x256xf32> to vector<8x128xf32>
    %270 = vector.extract_strided_slice %268 {offsets = [0, 128], sizes = [8, 128], strides = [1, 1]} : vector<8x256xf32> to vector<8x128xf32>
    %271 = vector.extract_strided_slice %257 {offsets = [0, 256], sizes = [8, 128], strides = [1, 1]} : vector<8x512xf32> to vector<8x128xf32>
    %272 = arith.addf %271, %12 : vector<8x128xf32>
    %273 = vector.extract_strided_slice %259 {offsets = [0, 256], sizes = [8, 128], strides = [1, 1]} : vector<8x384xf32> to vector<8x128xf32>
    %274 = vector.broadcast %18 : vector<1x128xf32> to vector<8x128xf32>
    %275 = arith.addf %273, %274 : vector<8x128xf32>
    %276 = arith.mulf %269, %275 : vector<8x128xf32>
    %277 = arith.addf %272, %276 : vector<8x128xf32>
    %278 = math.tanh %277 : vector<8x128xf32>
    %cst_99 = arith.constant 1.000000e+00 : f32
    %279 = vector.broadcast %cst_99 : f32 to vector<8x128xf32>
    %280 = arith.subf %279, %270 : vector<8x128xf32>
    %281 = arith.mulf %280, %278 : vector<8x128xf32>
    %282 = arith.mulf %270, %244 : vector<8x128xf32>
    %283 = arith.addf %281, %282 : vector<8x128xf32>
    %c0_100 = arith.constant 0 : index
    %c0_101 = arith.constant 0 : index
    %284 = vector.load %arg7[%c0_100, %c0_101] : memref<128x128xf32, #tpu.memory_space<vmem>>, vector<128x128xf32>
    %cst_102 = arith.constant dense<0.000000e+00> : vector<8x128xf32>
    %285 = tpu.matmul %283, %284, %cst_102 {dimension_numbers = #tpu.dot_dimension_numbers<[1], [0], [0], [1], [0, 0, 1, 1], [], []>} : vector<8x128xf32>, vector<128x128xf32>, vector<8x128xf32> -> vector<8x128xf32>
    %286 = vector.extract_strided_slice %257 {offsets = [0, 384], sizes = [8, 128], strides = [1, 1]} : vector<8x512xf32> to vector<8x128xf32>
    %287 = arith.addf %285, %286 : vector<8x128xf32>
    %288 = arith.addf %287, %17 : vector<8x128xf32>
    %289 = arith.index_cast %c6_i32 : i32 to index
    %c0_103 = arith.constant 0 : index
    %c0_104 = arith.constant 0 : index
    %290 = vector.load %arg12[%289, %c0_103, %c0_104] : memref<8x8x128xf32, #tpu.memory_space<vmem>>, vector<1x8x128xf32>
    %291 = vector.shape_cast %290 : vector<1x8x128xf32> to vector<8x128xf32>
    %292 = vector.shape_cast %288 : vector<8x128xf32> to vector<1x8x128xf32>
    tpu.vector_store %arg12[%289, %c0_103, %c0_104], %292 {strides = array<i32>} : memref<8x8x128xf32, #tpu.memory_space<vmem>>, vector<1x8x128xf32>,
    %c7_i32 = arith.constant 7 : i32
    %c8_i32_105 = arith.constant 8 : i32
    %293 = arith.muli %c7_i32, %c8_i32_105 : i32
    %294 = tpu.assume_multiple %293, 8 : i32
    %295 = arith.index_cast %294 : i32 to index
    %c0_106 = arith.constant 0 : index
    %296 = vector.load %arg13[%295, %c0_106] : memref<64x512xf32, #tpu.memory_space<vmem>>, vector<8x512xf32>
    %c0_107 = arith.constant 0 : index
    %c0_108 = arith.constant 0 : index
    %297 = vector.load %arg6[%c0_107, %c0_108] : memref<128x384xf32, #tpu.memory_space<vmem>>, vector<128x384xf32>
    %cst_109 = arith.constant dense<0.000000e+00> : vector<8x384xf32>
    %298 = tpu.matmul %283, %297, %cst_109 {dimension_numbers = #tpu.dot_dimension_numbers<[1], [0], [0], [1], [0, 0, 1, 1], [], []>} : vector<8x128xf32>, vector<128x384xf32>, vector<8x384xf32> -> vector<8x384xf32>
    %299 = vector.extract_strided_slice %296 {offsets = [0, 0], sizes = [8, 256], strides = [1, 1]} : vector<8x512xf32> to vector<8x256xf32>
    %300 = arith.addf %299, %11 : vector<8x256xf32>
    %301 = vector.extract_strided_slice %298 {offsets = [0, 0], sizes = [8, 256], strides = [1, 1]} : vector<8x384xf32> to vector<8x256xf32>
    %302 = arith.addf %300, %301 : vector<8x256xf32>
    %303 = arith.negf %302 : vector<8x256xf32>
    %304 = math.exp %303 : vector<8x256xf32>
    %cst_110 = arith.constant 1.000000e+00 : f32
    %305 = vector.broadcast %cst_110 : f32 to vector<8x256xf32>
    %306 = arith.addf %305, %304 : vector<8x256xf32>
    %307 = arith.divf %305, %306 : vector<8x256xf32>
    %308 = vector.extract_strided_slice %307 {offsets = [0, 0], sizes = [8, 128], strides = [1, 1]} : vector<8x256xf32> to vector<8x128xf32>
    %309 = vector.extract_strided_slice %307 {offsets = [0, 128], sizes = [8, 128], strides = [1, 1]} : vector<8x256xf32> to vector<8x128xf32>
    %310 = vector.extract_strided_slice %296 {offsets = [0, 256], sizes = [8, 128], strides = [1, 1]} : vector<8x512xf32> to vector<8x128xf32>
    %311 = arith.addf %310, %12 : vector<8x128xf32>
    %312 = vector.extract_strided_slice %298 {offsets = [0, 256], sizes = [8, 128], strides = [1, 1]} : vector<8x384xf32> to vector<8x128xf32>
    %313 = vector.broadcast %18 : vector<1x128xf32> to vector<8x128xf32>
    %314 = arith.addf %312, %313 : vector<8x128xf32>
    %315 = arith.mulf %308, %314 : vector<8x128xf32>
    %316 = arith.addf %311, %315 : vector<8x128xf32>
    %317 = math.tanh %316 : vector<8x128xf32>
    %cst_111 = arith.constant 1.000000e+00 : f32
    %318 = vector.broadcast %cst_111 : f32 to vector<8x128xf32>
    %319 = arith.subf %318, %309 : vector<8x128xf32>
    %320 = arith.mulf %319, %317 : vector<8x128xf32>
    %321 = arith.mulf %309, %283 : vector<8x128xf32>
    %322 = arith.addf %320, %321 : vector<8x128xf32>
    %c0_112 = arith.constant 0 : index
    %c0_113 = arith.constant 0 : index
    %323 = vector.load %arg7[%c0_112, %c0_113] : memref<128x128xf32, #tpu.memory_space<vmem>>, vector<128x128xf32>
    %cst_114 = arith.constant dense<0.000000e+00> : vector<8x128xf32>
    %324 = tpu.matmul %322, %323, %cst_114 {dimension_numbers = #tpu.dot_dimension_numbers<[1], [0], [0], [1], [0, 0, 1, 1], [], []>} : vector<8x128xf32>, vector<128x128xf32>, vector<8x128xf32> -> vector<8x128xf32>
    %325 = vector.extract_strided_slice %296 {offsets = [0, 384], sizes = [8, 128], strides = [1, 1]} : vector<8x512xf32> to vector<8x128xf32>
    %326 = arith.addf %324, %325 : vector<8x128xf32>
    %327 = arith.addf %326, %17 : vector<8x128xf32>
    %328 = arith.index_cast %c7_i32 : i32 to index
    %c0_115 = arith.constant 0 : index
    %c0_116 = arith.constant 0 : index
    %329 = vector.load %arg12[%328, %c0_115, %c0_116] : memref<8x8x128xf32, #tpu.memory_space<vmem>>, vector<1x8x128xf32>
    %330 = vector.shape_cast %329 : vector<1x8x128xf32> to vector<8x128xf32>
    %331 = vector.shape_cast %327 : vector<8x128xf32> to vector<1x8x128xf32>
    tpu.vector_store %arg12[%328, %c0_115, %c0_116], %331 {strides = array<i32>} : memref<8x8x128xf32, #tpu.memory_space<vmem>>, vector<1x8x128xf32>,
    %c8_i32_117 = arith.constant 8 : i32
    return
  }
  func.func @transform_0(%arg0: i32) -> (i32, i32, i32) {
    %c0_i32 = arith.constant 0 : i32
    %c0_i32_0 = arith.constant 0 : i32
    %c0_i32_1 = arith.constant 0 : i32
    return %c0_i32, %arg0, %c0_i32_0 : i32, i32, i32
  }
  func.func @transform_1(%arg0: i32) -> (i32, i32) {
    %c0_i32 = arith.constant 0 : i32
    %c0_i32_0 = arith.constant 0 : i32
    return %arg0, %c0_i32 : i32, i32
  }
  func.func @transform_2(%arg0: i32) -> (i32, i32) {
    %c0_i32 = arith.constant 0 : i32
    %c0_i32_0 = arith.constant 0 : i32
    return %arg0, %c0_i32 : i32, i32
  }
  func.func @transform_3(%arg0: i32) -> (i32, i32) {
    %c0_i32 = arith.constant 0 : i32
    %c0_i32_0 = arith.constant 0 : i32
    %c0_i32_1 = arith.constant 0 : i32
    return %c0_i32, %c0_i32_0 : i32, i32
  }
  func.func @transform_4(%arg0: i32) -> (i32, i32) {
    %c0_i32 = arith.constant 0 : i32
    %c0_i32_0 = arith.constant 0 : i32
    %c0_i32_1 = arith.constant 0 : i32
    return %c0_i32, %c0_i32_0 : i32, i32
  }
  func.func @transform_5(%arg0: i32) -> (i32, i32) {
    %c0_i32 = arith.constant 0 : i32
    %c0_i32_0 = arith.constant 0 : i32
    %c0_i32_1 = arith.constant 0 : i32
    return %c0_i32, %c0_i32_0 : i32, i32
  }
  func.func @transform_6(%arg0: i32) -> (i32, i32) {
    %c0_i32 = arith.constant 0 : i32
    %c0_i32_0 = arith.constant 0 : i32
    %c0_i32_1 = arith.constant 0 : i32
    return %c0_i32, %c0_i32_0 : i32, i32
  }
  func.func @transform_7(%arg0: i32) -> (i32, i32) {
    %c0_i32 = arith.constant 0 : i32
    %c0_i32_0 = arith.constant 0 : i32
    %c0_i32_1 = arith.constant 0 : i32
    return %c0_i32, %c0_i32_0 : i32, i32
  }
  func.func @transform_8(%arg0: i32) -> (i32, i32) {
    %c0_i32 = arith.constant 0 : i32
    %c0_i32_0 = arith.constant 0 : i32
    %c0_i32_1 = arith.constant 0 : i32
    return %c0_i32, %c0_i32_0 : i32, i32
  }
  func.func @transform_9(%arg0: i32) -> (i32, i32) {
    %c0_i32 = arith.constant 0 : i32
    %c0_i32_0 = arith.constant 0 : i32
    %c0_i32_1 = arith.constant 0 : i32
    return %c0_i32, %c0_i32_0 : i32, i32
  }
  func.func @transform_10(%arg0: i32) -> (i32, i32) {
    %c0_i32 = arith.constant 0 : i32
    %c0_i32_0 = arith.constant 0 : i32
    %c0_i32_1 = arith.constant 0 : i32
    return %c0_i32, %c0_i32_0 : i32, i32
  }
  func.func @transform_11(%arg0: i32) -> (i32, i32, i32) {
    %c0_i32 = arith.constant 0 : i32
    %c0_i32_0 = arith.constant 0 : i32
    %c0_i32_1 = arith.constant 0 : i32
    return %c0_i32, %arg0, %c0_i32_0 : i32, i32, i32
  }
}

</mosaic_0001>

<bundles_post_ra>
// kernel: gru_decoder.1
= control target key start
LH: loop header
LB: loop body
LE: loop exit
PB: predicated region body
PF: predicated region fallthrough
CT: control target
= control target key end

     0   :  { %16 = vsyncpa [#allocation4], 0  ;;  %s6463_s0 = inlined_call_operand.vmem [shape: f32[8,8,16], index: 0, kind: input, shape index: {}]   ;;  %s6464_s1 = inlined_call_operand.vmem [shape: f32[8,128], index: 1, kind: input, shape index: {}]   ;;  %s6465_s2 = inlined_call_operand.vmem [shape: f32[8,128], index: 2, kind: input, shape index: {}]   ;;  %s6466_s3 = inlined_call_operand.hbm [shape: f32[16,512], index: 3, kind: input, shape index: {}]   ;;  %s6467_s4 = inlined_call_operand.vmem [shape: f32[128,384], index: 4, kind: input, shape index: {}]   ;;  %s6468_s5 = inlined_call_operand.vmem [shape: f32[128,384], index: 5, kind: input, shape index: {}]   ;;  %s6469_s6 = inlined_call_operand.hbm [shape: f32[128,128], index: 6, kind: input, shape index: {}]   ;;  %s6470_s7 = inlined_call_operand.hbm [shape: f32[128,128], index: 7, kind: input, shape index: {}]   ;;  %s6471_s8 = inlined_call_operand.vmem [shape: f32[1,384], index: 8, kind: input, shape index: {}]   ;;  %s6472_s9 = inlined_call_operand.vmem [shape: f32[1,128], index: 9, kind: input, shape index: {}]   ;;  %s6473_s10 = inlined_call_operand.vmem [shape: f32[1,128], index: 10, kind: input, shape index: {}]   ;;  %s6474_s11 = inlined_call_operand.vmem [shape: f32[8,8,128], index: 11, kind: output, shape index: {}]  }
   0x1   :  { %17 = vsyncpa [#allocation6], 0  ;;  %s4309_s17 = smov [#allocation5]  }
   0x2   :  { %s45_s18 = sshll.u32 %s4309_s17, 4  ;;  %s46_s18 = int_to_ptr.vmem [resolvable:$true] %s45_s18 }
   0x3   :  { %s4253_s19 = scalar_lea.vmem %s46_s18, 2048  ;;  %p4258_p1 = scmp.lt.s32.totalorder %s46_s18, %s46_s18 }
   0x4   :  { %p4254_p0 = scmp.ne.s32.totalorder %s46_s18, %s4253_s19  ;;  %p4259_p2 = scmp.lt.s32.totalorder %s4253_s19, %s4253_s19 }
   0x6   :  { %p4260_p3 = por %p4259_p2, %p4258_p1 }
   0x8   :  { %p4261_p4 = pnand %p4260_p3, %p4254_p0 }
   0xa   :  { %4264 = shalt.err (!%p4261_p4)
}
   0xb   :  { %s4310_s20 = smov 128   ;;  %s4311_s21 = smov 8  }
   0xc   :  { %51 = dma.hbm_to_vmem [thread:$0]  %s6469_s6, 2048, %s46_s18, [#allocation6], %s4310_s20, %s4310_s20, %s4311_s21  }
   0xd   :  { %s4312_s24 = smov [#allocation3]  }
   0xe   :  { %s29_s25 = sshll.u32 %s4312_s24, 4  ;;  %s30_s25 = int_to_ptr.vmem [resolvable:$true] %s29_s25 }
   0xf   :  { %s4273_s26 = scalar_lea.vmem %s30_s25, 1024  ;;  %p4278_p6 = scmp.lt.s32.totalorder %s30_s25, %s30_s25 }
  0x10   :  { %p4274_p5 = scmp.ne.s32.totalorder %s30_s25, %s4273_s26  ;;  %p4279_p7 = scmp.lt.s32.totalorder %s4273_s26, %s4273_s26 }
  0x12   :  { %p4280_p8 = por %p4279_p7, %p4278_p6 }
  0x14   :  { %p4281_p9 = pnand %p4280_p8, %p4274_p5 }
  0x16   :  { %4284 = shalt.err (!%p4281_p9)
}
  0x17   :  { %s4313_s27 = smov 512   ;;  %s4314_s28 = smov 32  }
  0x18   :  { %35 = dma.hbm_to_vmem [thread:$0]  %s6466_s3, 1024, %s30_s25, [#allocation4], %s4313_s27, %s4313_s27, %s4314_s28  }
  0x19   :  { %s4315_s12 = smov [#allocation7]  }
  0x1a   :  { %s57_s13 = sshll.u32 %s4315_s12, 4  ;;  %s58_s13 = int_to_ptr.vmem [resolvable:$true] %s57_s13 }
  0x1b   :  { %s4293_s6 = scalar_lea.vmem %s58_s13, 2048  ;;  %p4298_p11 = scmp.lt.s32.totalorder %s58_s13, %s58_s13 }
  0x1c   :  { %p4294_p10 = scmp.ne.s32.totalorder %s58_s13, %s4293_s6  ;;  %p4299_p12 = scmp.lt.s32.totalorder %s4293_s6, %s4293_s6 }
  0x1e   :  { %p4300_p13 = por %p4299_p12, %p4298_p11 }
  0x20   :  { %p4301_p0 = pnand %p4300_p13, %p4294_p10 }
  0x22   :  { %4304 = shalt.err (!%p4301_p0)
}
  0x23   :  { %63 = dma.hbm_to_vmem [thread:$0]  %s6470_s7, 2048, %s58_s13, [#allocation6], %s4310_s20, %s4310_s20, %s4311_s21  }
  0x24   :  { %4305 = dma.done.wait [#allocation4], 1024  }
  0x25   :  { %4306 = vsyncadd [#allocation4], 4294966272 }
  0x26   :  { %4307 = dma.done.wait [#allocation6], 4096  }
  0x27   :  { %4308 = vsyncadd [#allocation6], 4294963200  ;;  %v6499_v0 = vmov 0.0   ;;  %v92_v1 = vld [vmem:[#allocation3 + $0x28] sm:$0xff]  ;;  %v94_v2 = vld [vmem:[#allocation3 + $0x38] sm:$0xff]  ;;  %vm95_vm0 = vcmask 130048  }
  0x28   :  { %184 = vmatprep.mubr.f32.mxu0 %v6499_v0  ;;  %297 = vmatprep.mubr.f32.mxu1 %v6499_v0  ;;  %v91_v3 = vld [vmem:[#allocation3 + $0x20] sm:$0xff]  ;;  %v93_v4 = vld [vmem:[#allocation3 + $0x30] sm:$0xff]  ;;  %v88_v5 = vld [vmem:[#allocation3 + $0x8] sm:$0xff]  ;;  %vm4317_vm1 = vmmov 0  }
  0x29   :  { %148 = vmatprep.subr.mxu0 %v92_v1  ;;  %261 = vmatprep.subr.mxu1 %v94_v2  ;;  %v90_v6 = vld [vmem:[#allocation3 + $0x18] sm:$0xff]  ;;  %v87_v7 = vld [vmem:[#allocation3] sm:$0xff]  ;;  %v89_v8 = vld [vmem:[#allocation3 + $0x10] sm:$0xff] }
  0x2a   :  { %149 = vmatpush1.msra.mxu0 %v91_v3  ;;  %262 = vmatpush1.msra.mxu1 %v93_v4  ;;  %v79_v9 = vld [vmem:[%s6463_s0] sm:$0xff]  ;;  %v425_v10 = vld [vmem:[%s6467_s4 + $0x170] sm:$0xff]  ;;  %v424_v11 = vld [vmem:[%s6467_s4 + $0x168] sm:$0xff] }
  0x2b   :  { %150 = vmatprep.subr.mxu0 %v88_v5  ;;  %263 = vmatprep.subr.mxu1 %v90_v6  ;;  %v426_v12 = vld [vmem:[%s6467_s4 + $0x178] sm:$0xff]  ;;  %v421_v14 = vld [vmem:[%s6467_s4 + $0x150] sm:$0xff]  ;;  %v423_v15 = vld [vmem:[%s6467_s4 + $0x160] sm:$0xff] }
  0x2c   :  { %151 = vmatpush1.msra.mxu0 %v87_v7  ;;  %264 = vmatpush1.msra.mxu1 %v89_v8  ;;  %v422_v13 = vld [vmem:[%s6467_s4 + $0x158] sm:$0xff]  ;;  %v80_v16 = vld [vmem:[%s6463_s0 + $0x8] sm:$0xff]  ;;  %v419_v17 = vld [vmem:[%s6467_s4 + $0x140] sm:$0xff] }
  0x2d   :  { %3178 = vmatmul.mubr.msk.f32.vlgmr.msra.gmra.mxu0 %vm95_vm0, %v79_v9  ;;  %3186 = vmatmul.mubr.msk.f32.vlgmr.msra.gmra.mxu1 %vm95_vm0, %v79_v9  ;;  %v418_v18 = vld [vmem:[%s6467_s4 + $0x138] sm:$0xff]  ;;  %v420_v19 = vld [vmem:[%s6467_s4 + $0x148] sm:$0xff]  ;;  %v415_v21 = vld [vmem:[%s6467_s4 + $0x120] sm:$0xff] }
  0x2e   :  { %444 = vmatprep.subr.mxu0 %v425_v10  ;;  %3525 = vmatprep.subr.mxu1 %v6499_v0  ;;  %v416_v20 = vld [vmem:[%s6467_s4 + $0x128] sm:$0xff]  ;;  %v417_v22 = vld [vmem:[%s6467_s4 + $0x130] sm:$0xff]  ;;  %v414_v26 = vld [vmem:[%s6467_s4 + $0x118] sm:$0xff] }
  0x2f   :  { %445 = vmatpush1.msra.mxu0 %v424_v11  ;;  %3526 = vmatpush3.msra.mxu1 %v426_v12  ;;  %v81_v23 = vld [vmem:[%s6463_s0 + $0x10] sm:$0xff]  ;;  %v412_v25 = vld [vmem:[%s6467_s4 + $0x108] sm:$0xff]  ;;  %v410_v27 = vld [vmem:[%s6467_s4 + $0xf8] sm:$0xff] }
  0x30   :  { %446 = vmatprep.subr.mxu0 %v422_v13  ;;  %3527 = vmatprep.subr.mxu1 %v6499_v0  ;;  %v413_v24 = vld [vmem:[%s6467_s4 + $0x110] sm:$0xff]  ;;  %v411_v29 = vld [vmem:[%s6467_s4 + $0x100] sm:$0xff]  ;;  %v82_v30 = vld [vmem:[%s6463_s0 + $0x18] sm:$0xff] }
  0x31   :  { %190 = vmatprep.mubr.f32.mxu0 %v6499_v0  ;;  %303 = vmatprep.mubr.f32.mxu1 %v6499_v0  ;;  %v409_v28 = vld [vmem:[%s6467_s4 + $0xf0] sm:$0xff]  ;;  %v407_v31 = vld [vmem:[%s6467_s4 + $0xe0] sm:$0xff]  ;;  %v406_v32 = vld [vmem:[%s6467_s4 + $0xd8] sm:$0xff] }
  0x32   :  { %447 = vmatpush1.msra.mxu0 %v421_v14  ;;  %3528 = vmatpush3.msra.mxu1 %v423_v15  ;;  %v408_v33 = vld [vmem:[%s6467_s4 + $0xe8] sm:$0xff]  ;;  %v403_v35 = vld [vmem:[%s6467_s4 + $0xc0] sm:$0xff]  ;;  %v405_v36 = vld [vmem:[%s6467_s4 + $0xd0] sm:$0xff] }
  0x33   :  { %3179 = vmatmul.mubr.msk.f32.gmra.mxu0 %vm95_vm0, %v80_v16  ;;  %3187 = vmatmul.mubr.msk.f32.gmra.mxu1 %vm95_vm0, %v80_v16  ;;  %v404_v34 = vld [vmem:[%s6467_s4 + $0xc8] sm:$0xff]  ;;  %v83_v37 = vld [vmem:[%s6463_s0 + $0x20] sm:$0xff]  ;;  %v401_v38 = vld [vmem:[%s6467_s4 + $0xb0] sm:$0xff] }
  0x34   :  { %448 = vmatprep.subr.mxu0 %v419_v17  ;;  %3529 = vmatprep.subr.mxu1 %v6499_v0  ;;  %v400_v39 = vld [vmem:[%s6467_s4 + $0xa8] sm:$0xff]  ;;  %v402_v40 = vld [vmem:[%s6467_s4 + $0xb8] sm:$0xff]  ;;  %v397_v42 = vld [vmem:[%s6467_s4 + $0x90] sm:$0xff] }
  0x35   :  { %449 = vmatpush1.msra.mxu0 %v418_v18  ;;  %3530 = vmatpush3.msra.mxu1 %v420_v19  ;;  %v398_v41 = vld [vmem:[%s6467_s4 + $0x98] sm:$0xff]  ;;  %v399_v43 = vld [vmem:[%s6467_s4 + $0xa0] sm:$0xff]  ;;  %v84_v44 = vld [vmem:[%s6463_s0 + $0x28] sm:$0xff] }
  0x36   :  { %450 = vmatprep.subr.mxu0 %v416_v20  ;;  %3531 = vmatprep.subr.mxu1 %v6499_v0  ;;  %v395_v45 = vld [vmem:[%s6467_s4 + $0x80] sm:$0xff]  ;;  %v394_v46 = vld [vmem:[%s6467_s4 + $0x78] sm:$0xff]  ;;  %v396_v47 = vld [vmem:[%s6467_s4 + $0x88] sm:$0xff] }
  0x37   :  { %196 = vmatprep.mubr.f32.mxu0 %v6499_v0  ;;  %309 = vmatprep.mubr.f32.mxu1 %v6499_v0  ;;  %v392_v48 = vld [vmem:[%s6467_s4 + $0x68] sm:$0xff]  ;;  %v391_v49 = vld [vmem:[%s6467_s4 + $0x60] sm:$0xff]  ;;  %v393_v50 = vld [vmem:[%s6467_s4 + $0x70] sm:$0xff] }
  0x38   :  { %451 = vmatpush1.msra.mxu0 %v415_v21  ;;  %3532 = vmatpush3.msra.mxu1 %v417_v22  ;;  %v85_v51 = vld [vmem:[%s6463_s0 + $0x30] sm:$0xff]  ;;  %v388_v53 = vld [vmem:[%s6467_s4 + $0x48] sm:$0xff]  ;;  %v390_v54 = vld [vmem:[%s6467_s4 + $0x58] sm:$0xff] }
  0x39   :  { %3180 = vmatmul.mubr.msk.f32.gmra.mxu0 %vm95_vm0, %v81_v23  ;;  %3188 = vmatmul.mubr.msk.f32.gmra.mxu1 %vm95_vm0, %v81_v23  ;;  %v389_v52 = vld [vmem:[%s6467_s4 + $0x50] sm:$0xff]  ;;  %v386_v55 = vld [vmem:[%s6467_s4 + $0x38] sm:$0xff]  ;;  %v387_v57 = vld [vmem:[%s6467_s4 + $0x40] sm:$0xff] }
  0x3a   :  { %452 = vmatprep.subr.mxu0 %v413_v24  ;;  %3533 = vmatprep.subr.mxu1 %v6499_v0  ;;  %v385_v56 = vld [vmem:[%s6467_s4 + $0x30] sm:$0xff]  ;;  %v86_v58 = vld [vmem:[%s6463_s0 + $0x38] sm:$0xff]  ;;  %v383_v59 = vld [vmem:[%s6467_s4 + $0x20] sm:$0xff] }
  0x3b   :  { %453 = vmatpush1.msra.mxu0 %v412_v25  ;;  %3534 = vmatpush3.msra.mxu1 %v414_v26  ;;  %v382_v60 = vld [vmem:[%s6467_s4 + $0x18] sm:$0xff]  ;;  %v384_v61 = vld [vmem:[%s6467_s4 + $0x28] sm:$0xff]  ;;  %v379_v63 = vld [vmem:[%s6467_s4] sm:$0xff] }
  0x3c   :  { %454 = vmatprep.subr.mxu0 %v410_v27  ;;  %3535 = vmatprep.subr.mxu1 %v6499_v0  ;;  %v380_v62 = vld [vmem:[%s6467_s4 + $0x8] sm:$0xff]  ;;  %v381_v1 = vld [vmem:[%s6467_s4 + $0x10] sm:$0xff]  ;;  %v4606_v2 = vld [vmem:[%s6465_s2] sm:$0xff] }
  0x3d   :  { %202 = vmatprep.mubr.f32.mxu0 %v6499_v0  ;;  %315 = vmatprep.mubr.f32.mxu1 %v6499_v0  ;;  %v4612_v3 = vld [vmem:[%s6468_s5 + $0x170] sm:$0xff]  ;;  %v600_v4 = vld [vmem:[#allocation7 + $0x78] sm:$0xff]  ;;  %v4619_v5 = vld [vmem:[%s6468_s5 + $0x168] sm:$0xff] }
  0x3e   :  { %455 = vmatpush1.msra.mxu0 %v409_v28  ;;  %3536 = vmatpush3.msra.mxu1 %v411_v29  ;;  %6557 = vst [vmem:[#allocation10_spill] sm:$0xff] %v4612_v3  ;;  %6558 = vst [vmem:[#allocation11_spill] sm:$0xff] %v4619_v5  ;;  %v4626_v6 = vld [vmem:[%s6468_s5 + $0x158] sm:$0xff]  ;;  %v599_v7 = vld [vmem:[#allocation7 + $0x70] sm:$0xff] }
  0x3f   :  { %3181 = vmatmul.mubr.msk.f32.gmra.mxu0 %vm95_vm0, %v82_v30  ;;  %3189 = vmatmul.mubr.msk.f32.gmra.mxu1 %vm95_vm0, %v82_v30  ;;  %6559 = vst [vmem:[#allocation12_spill] sm:$0xff] %v4626_v6  ;;  %v4633_v8 = vld [vmem:[%s6468_s5 + $0x150] sm:$0xff]  ;;  %v4639_v9 = vld [vmem:[%s6468_s5 + $0x140] sm:$0xff]  ;;  %v598_v10 = vld [vmem:[#allocation7 + $0x68] sm:$0xff] }
  0x40   :  { %456 = vmatprep.subr.mxu0 %v407_v31  ;;  %3537 = vmatprep.subr.mxu1 %v6499_v0  ;;  %6560 = vst [vmem:[#allocation13_spill] sm:$0xff] %v4633_v8  ;;  %6561 = vst [vmem:[#allocation14_spill] sm:$0xff] %v4639_v9  ;;  %v4646_v11 = vld [vmem:[%s6468_s5 + $0x138] sm:$0xff]  ;;  %v4652_v12 = vld [vmem:[%s6468_s5 + $0x128] sm:$0xff] }
  0x41   :  { %457 = vmatpush1.msra.mxu0 %v406_v32  ;;  %3538 = vmatpush3.msra.mxu1 %v408_v33  ;;  %6562 = vst [vmem:[#allocation15_spill] sm:$0xff] %v4646_v11  ;;  %6563 = vst [vmem:[#allocation16_spill] sm:$0xff] %v4652_v12  ;;  %v597_v13 = vld [vmem:[#allocation7 + $0x60] sm:$0xff]  ;;  %v4665_v15 = vld [vmem:[%s6468_s5 + $0x110] sm:$0xff] }
  0x42   :  { %458 = vmatprep.subr.mxu0 %v404_v34  ;;  %3539 = vmatprep.subr.mxu1 %v6499_v0  ;;  %v4659_v14 = vld [vmem:[%s6468_s5 + $0x120] sm:$0xff]  ;;  %6565 = vst [vmem:[#allocation18_spill] sm:$0xff] %v4665_v15  ;;  %v596_v16 = vld [vmem:[#allocation7 + $0x58] sm:$0xff]  ;;  %v4672_v17 = vld [vmem:[%s6468_s5 + $0x108] sm:$0xff] }
  0x43   :  { %208 = vmatprep.mubr.f32.mxu0 %v6499_v0  ;;  %321 = vmatprep.mubr.f32.mxu1 %v6499_v0  ;;  %6564 = vst [vmem:[#allocation17_spill] sm:$0xff] %v4659_v14  ;;  %6566 = vst [vmem:[#allocation19_spill] sm:$0xff] %v4672_v17  ;;  %v4678_v18 = vld [vmem:[%s6468_s5 + $0xf8] sm:$0xff]  ;;  %v595_v19 = vld [vmem:[#allocation7 + $0x50] sm:$0xff] }
  0x44   :  { %459 = vmatpush1.msra.mxu0 %v403_v35  ;;  %3540 = vmatpush3.msra.mxu1 %v405_v36  ;;  %6567 = vst [vmem:[#allocation20_spill] sm:$0xff] %v4678_v18  ;;  %v4685_v20 = vld [vmem:[%s6468_s5 + $0xf0] sm:$0xff]  ;;  %v4691_v21 = vld [vmem:[%s6468_s5 + $0xe0] sm:$0xff]  ;;  %v594_v22 = vld [vmem:[#allocation7 + $0x48] sm:$0xff] }
  0x45   :  { %3182 = vmatmul.mubr.msk.f32.gmra.mxu0 %vm95_vm0, %v83_v37  ;;  %3190 = vmatmul.mubr.msk.f32.gmra.mxu1 %vm95_vm0, %v83_v37  ;;  %6568 = vst [vmem:[#allocation21_spill] sm:$0xff] %v4685_v20  ;;  %6569 = vst [vmem:[#allocation22_spill] sm:$0xff] %v4691_v21  ;;  %v4698_v23 = vld [vmem:[%s6468_s5 + $0xd8] sm:$0xff]  ;;  %v4704_v24 = vld [vmem:[%s6468_s5 + $0xc8] sm:$0xff] }
  0x46   :  { %460 = vmatprep.subr.mxu0 %v401_v38  ;;  %3541 = vmatprep.subr.mxu1 %v6499_v0  ;;  %6570 = vst [vmem:[#allocation23_spill] sm:$0xff] %v4698_v23  ;;  %6571 = vst [vmem:[#allocation24_spill] sm:$0xff] %v4704_v24  ;;  %v593_v25 = vld [vmem:[#allocation7 + $0x40] sm:$0xff]  ;;  %v4717_v27 = vld [vmem:[%s6468_s5 + $0xb0] sm:$0xff] }
  0x47   :  { %461 = vmatpush1.msra.mxu0 %v400_v39  ;;  %3542 = vmatpush3.msra.mxu1 %v402_v40  ;;  %v4711_v26 = vld [vmem:[%s6468_s5 + $0xc0] sm:$0xff]  ;;  %6573 = vst [vmem:[#allocation26_spill] sm:$0xff] %v4717_v27  ;;  %v592_v28 = vld [vmem:[#allocation7 + $0x38] sm:$0xff]  ;;  %v4724_v29 = vld [vmem:[%s6468_s5 + $0xa8] sm:$0xff] }
  0x48   :  { %462 = vmatprep.subr.mxu0 %v398_v41  ;;  %3543 = vmatprep.subr.mxu1 %v6499_v0  ;;  %6572 = vst [vmem:[#allocation25_spill] sm:$0xff] %v4711_v26  ;;  %6574 = vst [vmem:[#allocation27_spill] sm:$0xff] %v4724_v29  ;;  %v4730_v30 = vld [vmem:[%s6468_s5 + $0x98] sm:$0xff]  ;;  %v591_v31 = vld [vmem:[#allocation7 + $0x30] sm:$0xff] }
  0x49   :  { %214 = vmatprep.mubr.f32.mxu0 %v6499_v0  ;;  %327 = vmatprep.mubr.f32.mxu1 %v6499_v0  ;;  %6575 = vst [vmem:[#allocation28_spill] sm:$0xff] %v4730_v30  ;;  %v4737_v32 = vld [vmem:[%s6468_s5 + $0x90] sm:$0xff]  ;;  %v4743_v33 = vld [vmem:[%s6468_s5 + $0x80] sm:$0xff]  ;;  %v590_v34 = vld [vmem:[#allocation7 + $0x28] sm:$0xff] }
  0x4a   :  { %463 = vmatpush1.msra.mxu0 %v397_v42  ;;  %3544 = vmatpush3.msra.mxu1 %v399_v43  ;;  %6576 = vst [vmem:[#allocation29_spill] sm:$0xff] %v4737_v32  ;;  %6577 = vst [vmem:[#allocation30_spill] sm:$0xff] %v4743_v33  ;;  %v4750_v35 = vld [vmem:[%s6468_s5 + $0x78] sm:$0xff]  ;;  %v4756_v36 = vld [vmem:[%s6468_s5 + $0x68] sm:$0xff] }
  0x4b   :  { %3183 = vmatmul.mubr.msk.f32.gmra.mxu0 %vm95_vm0, %v84_v44  ;;  %3191 = vmatmul.mubr.msk.f32.gmra.mxu1 %vm95_vm0, %v84_v44  ;;  %6578 = vst [vmem:[#allocation31_spill] sm:$0xff] %v4750_v35  ;;  %6579 = vst [vmem:[#allocation32_spill] sm:$0xff] %v4756_v36  ;;  %v589_v37 = vld [vmem:[#allocation7 + $0x20] sm:$0xff]  ;;  %v4769_v39 = vld [vmem:[%s6468_s5 + $0x50] sm:$0xff] }
  0x4c   :  { %464 = vmatprep.subr.mxu0 %v395_v45  ;;  %3545 = vmatprep.subr.mxu1 %v6499_v0  ;;  %v4763_v38 = vld [vmem:[%s6468_s5 + $0x60] sm:$0xff]  ;;  %6581 = vst [vmem:[#allocation34_spill] sm:$0xff] %v4769_v39  ;;  %v588_v40 = vld [vmem:[#allocation7 + $0x18] sm:$0xff]  ;;  %v4776_v41 = vld [vmem:[%s6468_s5 + $0x48] sm:$0xff] }
  0x4d   :  { %465 = vmatpush1.msra.mxu0 %v394_v46  ;;  %3546 = vmatpush3.msra.mxu1 %v396_v47  ;;  %6580 = vst [vmem:[#allocation33_spill] sm:$0xff] %v4763_v38  ;;  %6582 = vst [vmem:[#allocation35_spill] sm:$0xff] %v4776_v41  ;;  %v4782_v42 = vld [vmem:[%s6468_s5 + $0x38] sm:$0xff]  ;;  %v587_v43 = vld [vmem:[#allocation7 + $0x10] sm:$0xff] }
  0x4e   :  { %466 = vmatprep.subr.mxu0 %v392_v48  ;;  %3547 = vmatprep.subr.mxu1 %v6499_v0  ;;  %6583 = vst [vmem:[#allocation36_spill] sm:$0xff] %v4782_v42  ;;  %v4789_v44 = vld [vmem:[%s6468_s5 + $0x30] sm:$0xff]  ;;  %v4795_v45 = vld [vmem:[%s6468_s5 + $0x20] sm:$0xff]  ;;  %v586_v46 = vld [vmem:[#allocation7 + $0x8] sm:$0xff] }
  0x4f   :  { %220 = vmatprep.mubr.f32.mxu0 %v6499_v0  ;;  %333 = vmatprep.mubr.f32.mxu1 %v6499_v0  ;;  %6584 = vst [vmem:[#allocation37_spill] sm:$0xff] %v4789_v44  ;;  %6585 = vst [vmem:[#allocation38_spill] sm:$0xff] %v4795_v45  ;;  %v4802_v47 = vld [vmem:[%s6468_s5 + $0x18] sm:$0xff]  ;;  %v4808_v48 = vld [vmem:[%s6468_s5 + $0x8] sm:$0xff] }
  0x50   :  { %467 = vmatpush1.msra.mxu0 %v391_v49  ;;  %3548 = vmatpush3.msra.mxu1 %v393_v50  ;;  %6586 = vst [vmem:[#allocation39_spill] sm:$0xff] %v4802_v47  ;;  %6587 = vst [vmem:[#allocation40_spill] sm:$0xff] %v4808_v48  ;;  %v585_v49 = vld [vmem:[#allocation7] sm:$0xff] }
  0x51   :  { %3184 = vmatmul.mubr.msk.f32.gmra.mxu0 %vm95_vm0, %v85_v51  ;;  %3192 = vmatmul.mubr.msk.f32.gmra.mxu1 %vm95_vm0, %v85_v51  ;;  %v4816_v50 = vld [vmem:[%s6468_s5] sm:$0xff] }
  0x52   :  { %468 = vmatprep.subr.mxu0 %v389_v52  ;;  %3549 = vmatprep.subr.mxu1 %v6499_v0  ;;  %6588 = vst [vmem:[#allocation41_spill] sm:$0xff] %v4816_v50  ;;  %v4823_v51 = vld [vmem:[%s6464_s1] sm:$0xff]  ;;  %v4832_v52 = vld [vmem:[%s6468_s5 + $0x178] sm:$0xff] }
  0x53   :  { %469 = vmatpush1.msra.mxu0 %v388_v53  ;;  %3550 = vmatpush3.msra.mxu1 %v390_v54  ;;  %v4840_v53 = vld [vmem:[%s6468_s5 + $0x160] sm:$0xff]  ;;  %v4850_v54 = vld [vmem:[%s6468_s5 + $0x148] sm:$0xff] }
  0x54   :  { %470 = vmatprep.subr.mxu0 %v386_v55  ;;  %3551 = vmatprep.subr.mxu1 %v6499_v0  ;;  %v4859_v55 = vld [vmem:[%s6468_s5 + $0x130] sm:$0xff] }
  0x55   :  { %226 = vmatprep.mubr.f32.mxu0 %v6499_v0  ;;  %339 = vmatprep.mubr.f32.mxu1 %v6499_v0 }
  0x56   :  { %471 = vmatpush1.msra.mxu0 %v385_v56  ;;  %3552 = vmatpush3.msra.mxu1 %v387_v57  ;;  %v4866_v56 = vld [vmem:[%s6468_s5 + $0x118] sm:$0xff]  ;;  %v4873_v57 = vld [vmem:[%s6468_s5 + $0x100] sm:$0xff] }
  0x57   :  { %3185 = vmatmul.mubr.msk.f32.gmra.mxu0 %vm95_vm0, %v86_v58  ;;  %3193 = vmatmul.mubr.msk.f32.gmra.mxu1 %vm95_vm0, %v86_v58  ;;  %v4880_v58 = vld [vmem:[%s6468_s5 + $0xe8] sm:$0xff] }
  0x58   :  { %472 = vmatprep.subr.mxu0 %v383_v59  ;;  %3553 = vmatprep.subr.mxu1 %v6499_v0  ;;  %v4887_v59 = vld [vmem:[%s6468_s5 + $0xd0] sm:$0xff] }
  0x59   :  { %473 = vmatpush1.msra.mxu0 %v382_v60  ;;  %3554 = vmatpush3.msra.mxu1 %v384_v61  ;;  %v4894_v60 = vld [vmem:[%s6468_s5 + $0xb8] sm:$0xff]  ;;  %v4901_v61 = vld [vmem:[%s6468_s5 + $0xa0] sm:$0xff] }
  0x5a   :  { %474 = vmatprep.subr.mxu0 %v380_v62  ;;  %3555 = vmatprep.subr.mxu1 %v6499_v0  ;;  %v4908_v62 = vld [vmem:[%s6468_s5 + $0x88] sm:$0xff] }
  0x5b   :  { %475 = vmatpush1.msra.mxu0 %v379_v63  ;;  %508 = vmatprep.mubr.f32.mxu0 %v6499_v0  ;;  %6589 = vst [vmem:[#allocation42_spill] sm:$0xff] %v4908_v62  ;;  %v4915_v63 = vld [vmem:[%s6468_s5 + $0x70] sm:$0xff] }
  0x5c   :  { %3556 = vmatpush3.msra.mxu1 %v381_v1  ;;  %3557 = vmatprep.mubr.msk.f32.mxu1 %vm4317_vm1, %v6499_v0  ;;  %6590 = vst [vmem:[#allocation43_spill] sm:$0xff] %v4915_v63  ;;  %v4922_v1 = vld [vmem:[%s6468_s5 + $0x58] sm:$0xff] }
  0x5d   :  { %509 = vmatmul.mubr.f32.vlgmr.msra.gmra.mxu0 %v4606_v2  ;;  %3558 = vmatmul.mubr.f32.vlgmr.msra.gmra.mxu1 %v4606_v2  ;;  %6591 = vst [vmem:[#allocation44_spill] sm:$0xff] %v4922_v1 }
  0x5e   :  { %3560 = vmatprep.subr.mxu0 %v6499_v0  ;;  %735 = vmatprep.subr.mxu1 %v4612_v3 }
  0x5f   :  { %3561 = vmatpush3.msra.mxu0 %v600_v4  ;;  %736 = vmatpush1.msra.mxu1 %v4619_v5  ;;  %v4936_v4 = vld [vmem:[%s6468_s5 + $0x28] sm:$0xff] }
  0x60   :  { %3562 = vmatprep.subr.mxu0 %v6499_v0  ;;  %737 = vmatprep.subr.mxu1 %v4626_v6  ;;  %6593 = vst [vmem:[#allocation46_spill] sm:$0xff] %v4936_v4 }
  0x61   :  { %3563 = vmatpush3.msra.mxu0 %v599_v7  ;;  %738 = vmatpush1.msra.mxu1 %v4633_v8  ;;  %v4943_v7 = vld [vmem:[%s6468_s5 + $0x10] sm:$0xff] }
  0x62   :  { %3564 = vmatprep.subr.mxu0 %v6499_v0  ;;  %739 = vmatprep.subr.mxu1 %v4639_v9  ;;  %6594 = vst [vmem:[#allocation47_spill] sm:$0xff] %v4943_v7 }
  0x63   :  { %3565 = vmatpush3.msra.mxu0 %v598_v10  ;;  %740 = vmatpush1.msra.mxu1 %v4646_v11  ;;  %v4983_v10 = vld [vmem:[#allocation5 + $0x78] sm:$0xff] }
  0x64   :  { %3566 = vmatprep.subr.mxu0 %v6499_v0  ;;  %741 = vmatprep.subr.mxu1 %v4652_v12 }
  0x65   :  { %3567 = vmatpush3.msra.mxu0 %v597_v13  ;;  %742 = vmatpush1.msra.mxu1 %v4659_v14  ;;  %v4985_v13 = vld [vmem:[#allocation5 + $0x70] sm:$0xff] }
  0x66   :  { %3568 = vmatprep.subr.mxu0 %v6499_v0  ;;  %743 = vmatprep.subr.mxu1 %v4665_v15 }
  0x67   :  { %3569 = vmatpush3.msra.mxu0 %v596_v16  ;;  %744 = vmatpush1.msra.mxu1 %v4672_v17  ;;  %v4989_v16 = vld [vmem:[#allocation5 + $0x68] sm:$0xff] }
  0x68   :  { %3570 = vmatprep.subr.mxu0 %v6499_v0  ;;  %745 = vmatprep.subr.mxu1 %v4678_v18 }
  0x69   :  { %3571 = vmatpush3.msra.mxu0 %v595_v19  ;;  %746 = vmatpush1.msra.mxu1 %v4685_v20  ;;  %v4993_v19 = vld [vmem:[#allocation5 + $0x60] sm:$0xff] }
  0x6a   :  { %3572 = vmatprep.subr.mxu0 %v6499_v0  ;;  %747 = vmatprep.subr.mxu1 %v4691_v21 }
  0x6b   :  { %3573 = vmatpush3.msra.mxu0 %v594_v22  ;;  %748 = vmatpush1.msra.mxu1 %v4698_v23  ;;  %v4999_v22 = vld [vmem:[#allocation5 + $0x58] sm:$0xff] }
  0x6c   :  { %3574 = vmatprep.subr.mxu0 %v6499_v0  ;;  %749 = vmatprep.subr.mxu1 %v4704_v24 }
  0x6d   :  { %3575 = vmatpush3.msra.mxu0 %v593_v25  ;;  %750 = vmatpush1.msra.mxu1 %v4711_v26  ;;  %v5003_v25 = vld [vmem:[#allocation5 + $0x50] sm:$0xff] }
  0x6e   :  { %3576 = vmatprep.subr.mxu0 %v6499_v0  ;;  %751 = vmatprep.subr.mxu1 %v4717_v27 }
  0x6f   :  { %3577 = vmatpush3.msra.mxu0 %v592_v28  ;;  %752 = vmatpush1.msra.mxu1 %v4724_v29  ;;  %v5007_v28 = vld [vmem:[#allocation5 + $0x48] sm:$0xff] }
  0x70   :  { %3578 = vmatprep.subr.mxu0 %v6499_v0  ;;  %753 = vmatprep.subr.mxu1 %v4730_v30 }
  0x71   :  { %3579 = vmatpush3.msra.mxu0 %v591_v31  ;;  %754 = vmatpush1.msra.mxu1 %v4737_v32  ;;  %v5011_v31 = vld [vmem:[#allocation5 + $0x40] sm:$0xff] }
  0x72   :  { %3580 = vmatprep.subr.mxu0 %v6499_v0  ;;  %755 = vmatprep.subr.mxu1 %v4743_v33 }
  0x73   :  { %3581 = vmatpush3.msra.mxu0 %v590_v34  ;;  %756 = vmatpush1.msra.mxu1 %v4750_v35  ;;  %v5014_v34 = vld [vmem:[#allocation5 + $0x38] sm:$0xff] }
  0x74   :  { %3582 = vmatprep.subr.mxu0 %v6499_v0  ;;  %757 = vmatprep.subr.mxu1 %v4756_v36 }
  0x75   :  { %3583 = vmatpush3.msra.mxu0 %v589_v37  ;;  %758 = vmatpush1.msra.mxu1 %v4763_v38  ;;  %v5017_v37 = vld [vmem:[#allocation5 + $0x30] sm:$0xff] }
  0x76   :  { %3584 = vmatprep.subr.mxu0 %v6499_v0  ;;  %759 = vmatprep.subr.mxu1 %v4769_v39  ;;  %6595 = vst [vmem:[#allocation48_spill] sm:$0xff] %v5017_v37 }
  0x77   :  { %3585 = vmatpush3.msra.mxu0 %v588_v40  ;;  %760 = vmatpush1.msra.mxu1 %v4776_v41  ;;  %v5021_v40 = vld [vmem:[#allocation5 + $0x28] sm:$0xff] }
  0x78   :  { %3586 = vmatprep.subr.mxu0 %v6499_v0  ;;  %761 = vmatprep.subr.mxu1 %v4782_v42  ;;  %6596 = vst [vmem:[#allocation49_spill] sm:$0xff] %v5021_v40 }
  0x79   :  { %3587 = vmatpush3.msra.mxu0 %v587_v43  ;;  %762 = vmatpush1.msra.mxu1 %v4789_v44  ;;  %v5025_v43 = vld [vmem:[#allocation5 + $0x20] sm:$0xff] }
  0x7a   :  { %3588 = vmatprep.subr.mxu0 %v6499_v0  ;;  %763 = vmatprep.subr.mxu1 %v4795_v45  ;;  %6597 = vst [vmem:[#allocation50_spill] sm:$0xff] %v5025_v43 }
  0x7b   :  { %3589 = vmatpush3.msra.mxu0 %v586_v46  ;;  %764 = vmatpush1.msra.mxu1 %v4802_v47 }
  0x7c   :  { %3590 = vmatprep.subr.mxu0 %v6499_v0  ;;  %765 = vmatprep.subr.mxu1 %v4808_v48 }
  0x7d   :  { %3591 = vmatpush3.msra.mxu0 %v585_v49  ;;  %3592 = vmatprep.mubr.msk.f32.mxu0 %vm4317_vm1, %v6499_v0 }
  0x7e   :  { %766 = vmatpush1.msra.mxu1 %v4816_v50  ;;  %799 = vmatprep.mubr.f32.mxu1 %v6499_v0 }
  0x7f   :  { %3593 = vmatmul.mubr.f32.vlgmr.msra.gmra.mxu0 %v4606_v2  ;;  %800 = vmatmul.mubr.f32.vlgmr.msra.gmra.mxu1 %v4823_v51  ;;  %v4929_v2 = vld [vmem:[%s6468_s5 + $0x40] sm:$0xff] }
  0x80   :  { %3595 = vmatprep.subr.mxu0 %v6499_v0  ;;  %3627 = vmatprep.mubr.msk.f32.mxu0 %vm4317_vm1, %v6499_v0  ;;  %6592 = vst [vmem:[#allocation45_spill] sm:$0xff] %v4929_v2 }
  0x81   :  { %3596 = vmatpush3.msra.mxu0 %v4832_v52  ;;  %3630 = vmatprep.subr.mxu1 %v6499_v0 }
  0x82   :  { %3597 = vmatprep.subr.mxu0 %v6499_v0  ;;  %3662 = vmatprep.mubr.msk.f32.mxu1 %vm4317_vm1, %v6499_v0 }
  0x83   :  { %3598 = vmatpush3.msra.mxu0 %v4840_v53  ;;  %3631 = vmatpush3.msra.mxu1 %v4983_v10 }
  0x84   :  { %3599 = vmatprep.subr.mxu0 %v6499_v0  ;;  %3632 = vmatprep.subr.mxu1 %v6499_v0 }
  0x85   :  { %3600 = vmatpush3.msra.mxu0 %v4850_v54  ;;  %3633 = vmatpush3.msra.mxu1 %v4985_v13 }
  0x86   :  { %3601 = vmatprep.subr.mxu0 %v6499_v0  ;;  %3634 = vmatprep.subr.mxu1 %v6499_v0 }
  0x87   :  { %3602 = vmatpush3.msra.mxu0 %v4859_v55  ;;  %3635 = vmatpush3.msra.mxu1 %v4989_v16 }
  0x88   :  { %3603 = vmatprep.subr.mxu0 %v6499_v0  ;;  %3636 = vmatprep.subr.mxu1 %v6499_v0 }
  0x89   :  { %3604 = vmatpush3.msra.mxu0 %v4866_v56  ;;  %3637 = vmatpush3.msra.mxu1 %v4993_v19 }
  0x8a   :  { %3605 = vmatprep.subr.mxu0 %v6499_v0  ;;  %3638 = vmatprep.subr.mxu1 %v6499_v0 }
  0x8b   :  { %3606 = vmatpush3.msra.mxu0 %v4873_v57  ;;  %3639 = vmatpush3.msra.mxu1 %v4999_v22 }
  0x8c   :  { %3607 = vmatprep.subr.mxu0 %v6499_v0  ;;  %3640 = vmatprep.subr.mxu1 %v6499_v0 }
  0x8d   :  { %3608 = vmatpush3.msra.mxu0 %v4880_v58  ;;  %3641 = vmatpush3.msra.mxu1 %v5003_v25 }
  0x8e   :  { %3609 = vmatprep.subr.mxu0 %v6499_v0  ;;  %3642 = vmatprep.subr.mxu1 %v6499_v0 }
  0x8f   :  { %3610 = vmatpush3.msra.mxu0 %v4887_v59  ;;  %3643 = vmatpush3.msra.mxu1 %v5007_v28 }
  0x90   :  { %3611 = vmatprep.subr.mxu0 %v6499_v0  ;;  %3644 = vmatprep.subr.mxu1 %v6499_v0 }
  0x91   :  { %3612 = vmatpush3.msra.mxu0 %v4894_v60  ;;  %3645 = vmatpush3.msra.mxu1 %v5011_v31 }
  0x92   :  { %3613 = vmatprep.subr.mxu0 %v6499_v0  ;;  %3646 = vmatprep.subr.mxu1 %v6499_v0 }
  0x93   :  { %3614 = vmatpush3.msra.mxu0 %v4901_v61  ;;  %3647 = vmatpush3.msra.mxu1 %v5014_v34 }
  0x94   :  { %3615 = vmatprep.subr.mxu0 %v6499_v0  ;;  %3648 = vmatprep.subr.mxu1 %v6499_v0 }
  0x95   :  { %3616 = vmatpush3.msra.mxu0 %v4908_v62  ;;  %3649 = vmatpush3.msra.mxu1 %v5017_v37 }
  0x96   :  { %3617 = vmatprep.subr.mxu0 %v6499_v0  ;;  %3650 = vmatprep.subr.mxu1 %v6499_v0 }
  0x97   :  { %3618 = vmatpush3.msra.mxu0 %v4915_v63  ;;  %3651 = vmatpush3.msra.mxu1 %v5021_v40 }
  0x98   :  { %3619 = vmatprep.subr.mxu0 %v6499_v0  ;;  %3652 = vmatprep.subr.mxu1 %v6499_v0 }
  0x99   :  { %3620 = vmatpush3.msra.mxu0 %v4922_v1  ;;  %3653 = vmatpush3.msra.mxu1 %v5025_v43 }
  0x9a   :  { %3621 = vmatprep.subr.mxu0 %v6499_v0  ;;  %3654 = vmatprep.subr.mxu1 %v6499_v0 }
  0x9b   :  { %3622 = vmatpush3.msra.mxu0 %v4929_v2 }
  0x9c   :  { %3623 = vmatprep.subr.mxu0 %v6499_v0 }
  0x9d   :  { %3624 = vmatpush3.msra.mxu0 %v4936_v4 }
  0x9e   :  { %3625 = vmatprep.subr.mxu0 %v6499_v0 }
  0x9f   :  { %3626 = vmatpush3.msra.mxu0 %v4943_v7 }
  0xa0   :  { %3628 = vmatmul.mubr.f32.vlgmr.msra.gmra.mxu0 %v4823_v51  ;;  %1050 = vmatprep.subr.mxu0 %v4612_v3 }
  0xa1   :  { %1051 = vmatpush1.msra.mxu0 %v4619_v5  ;;  %1114 = vmatprep.mubr.f32.mxu0 %v6499_v0 }
  0xa2   :  { %1052 = vmatprep.subr.mxu0 %v4626_v6 }
  0xa3   :  { %1053 = vmatpush1.msra.mxu0 %v4633_v8 }
  0xa4   :  { %1054 = vmatprep.subr.mxu0 %v4639_v9 }
  0xa5   :  { %1055 = vmatpush1.msra.mxu0 %v4646_v11 }
  0xa6   :  { %1056 = vmatprep.subr.mxu0 %v4652_v12 }
  0xa7   :  { %1057 = vmatpush1.msra.mxu0 %v4659_v14 }
  0xa8   :  { %1058 = vmatprep.subr.mxu0 %v4665_v15 }
  0xa9   :  { %1059 = vmatpush1.msra.mxu0 %v4672_v17 }
  0xaa   :  { %1060 = vmatprep.subr.mxu0 %v4678_v18 }
  0xab   :  { %1061 = vmatpush1.msra.mxu0 %v4685_v20 }
  0xac   :  { %1062 = vmatprep.subr.mxu0 %v4691_v21 }
  0xad   :  { %1063 = vmatpush1.msra.mxu0 %v4698_v23 }
  0xae   :  { %1064 = vmatprep.subr.mxu0 %v4704_v24 }
  0xaf   :  { %1065 = vmatpush1.msra.mxu0 %v4711_v26 }
  0xb0   :  { %1066 = vmatprep.subr.mxu0 %v4717_v27 }
  0xb1   :  { %1067 = vmatpush1.msra.mxu0 %v4724_v29 }
  0xb2   :  { %1068 = vmatprep.subr.mxu0 %v4730_v30 }
  0xb3   :  { %1069 = vmatpush1.msra.mxu0 %v4737_v32 }
  0xb4   :  { %1070 = vmatprep.subr.mxu0 %v4743_v33 }
  0xb5   :  { %1071 = vmatpush1.msra.mxu0 %v4750_v35 }
  0xb6   :  { %1072 = vmatprep.subr.mxu0 %v4756_v36 }
  0xb7   :  { %1073 = vmatpush1.msra.mxu0 %v4763_v38 }
  0xb8   :  { %1074 = vmatprep.subr.mxu0 %v4769_v39  ;;  %v5049_v39 = vld [vmem:[#allocation5] sm:$0xff] }
  0xb9   :  { %1075 = vmatpush1.msra.mxu0 %v4776_v41  ;;  %6602 = vst [vmem:[#allocation55_spill] sm:$0xff] %v5049_v39 }
  0xba   :  { %1076 = vmatprep.subr.mxu0 %v4782_v42 }
  0xbb   :  { %1077 = vmatpush1.msra.mxu0 %v4789_v44  ;;  %v5045_v44 = vld [vmem:[#allocation5 + $0x8] sm:$0xff] }
  0xbc   :  { %1078 = vmatprep.subr.mxu0 %v4795_v45  ;;  %v5041_v45 = vld [vmem:[#allocation5 + $0x10] sm:$0xff]  ;;  %6601 = vst [vmem:[#allocation54_spill] sm:$0xff] %v5045_v44 }
  0xbd   :  { %1079 = vmatpush1.msra.mxu0 %v4802_v47  ;;  %6600 = vst [vmem:[#allocation53_spill] sm:$0xff] %v5041_v45 }
  0xbe   :  { %1080 = vmatprep.subr.mxu0 %v4808_v48 }
  0xbf   :  { %1081 = vmatpush1.msra.mxu0 %v4816_v50  ;;  %v5033_v50 = vld [vmem:[#allocation5 + $0x18] sm:$0xff] }
  0xc0   :  { %3700 = vmatprep.subr.mxu0 %v6499_v0  ;;  %6598 = vst [vmem:[#allocation51_spill] sm:$0xff] %v5033_v50  ;;  %3655 = vmatpush3.msra.mxu1 %v5033_v50 }
  0xc1   :  { %3656 = vmatprep.subr.mxu1 %v6499_v0 }
  0xc2   :  { %3657 = vmatpush3.msra.mxu1 %v5041_v45 }
  0xc3   :  { %3658 = vmatprep.subr.mxu1 %v6499_v0 }
  0xc4   :  { %3659 = vmatpush3.msra.mxu1 %v5045_v44 }
  0xc5   :  { %3660 = vmatprep.subr.mxu1 %v6499_v0 }
  0xc6   :  { %3661 = vmatpush3.msra.mxu1 %v5049_v39 }
  0xc7   :  { %3665 = vmatprep.subr.mxu1 %v6499_v0  ;;  %v429_v0 = vlaneseq }
  0xc9   :  { %v430_v11 = vshrl.u32 %v429_v0, 7 }
  0xcb   :  { %v431_v8 = vsub.s32 0, %v430_v11  ;;  %v439_v6 = vsub.s32 2, %v430_v11  ;;  %v435_v5 = vsub.s32 1, %v430_v11 }
  0xed   :  { %v5027_v46 = vpop.f32.mrf.mxu0  ;;  %v5029_v49 = vpop.f32.mrf.mxu1 }
  0xef   :  { %v5035_v48 = vpop.f32.mrf.mxu0  ;;  %v5037_v47 = vpop.f32.mrf.mxu1 }
  0xf0   :  { %6599 = vst [vmem:[#allocation52_spill] sm:$0xff] %v5037_v47 }
  0xf3   :  { %v192_v42 = vpop.f32.mrf.mxu0  ;;  %v305_v41 = vpop.f32.mrf.mxu1 }
  0xf5   :  { %v194_v47 = vpop.f32.mrf.mxu0  ;;  %v5051_v38 = vpop.f32.mrf.mxu1 }
  0xf6   :  { %6603 = vst [vmem:[#allocation56_spill] sm:$0xff] %v5051_v38 }
  0xf9   :  { %v198_v36 = vpop.f32.mrf.mxu0  ;;  %v311_v35 = vpop.f32.mrf.mxu1 }
  0xfb   :  { %v200_v33 = vpop.f32.mrf.mxu0  ;;  %v5057_v32 = vpop.f32.mrf.mxu1 }
  0xfc   :  { %6604 = vst [vmem:[#allocation57_spill] sm:$0xff] %v5057_v32 }
  0xff   :  { %v204_v30 = vpop.f32.mrf.mxu0  ;;  %v317_v29 = vpop.f32.mrf.mxu1 }
 0x101   :  { %v206_v27 = vpop.f32.mrf.mxu0  ;;  %v5059_v26 = vpop.f32.mrf.mxu1 }
 0x102   :  { %6605 = vst [vmem:[#allocation58_spill] sm:$0xff] %v5059_v26 }
 0x105   :  { %v210_v24 = vpop.f32.mrf.mxu0  ;;  %v323_v38 = vpop.f32.mrf.mxu1 }
 0x107   :  { %v212_v23 = vpop.f32.mrf.mxu0  ;;  %v5061_v21 = vpop.f32.mrf.mxu1 }
 0x108   :  { %6606 = vst [vmem:[#allocation59_spill] sm:$0xff] %v5061_v21  ;;  %v427_v21 = vld [vmem:[%s6471_s8] sm:$0x7] }
 0x109   :  { %v440_v44 = vrot.slane %v427_v21, %v439_v6  ;;  %v436_v4 = vrot.slane %v427_v21, %v435_v5 }
 0x10b   :  { %v216_v20 = vpop.f32.mrf.mxu0  ;;  %v329_v18 = vpop.f32.mrf.mxu1 }
 0x10d   :  { %v218_v17 = vpop.f32.mrf.mxu0  ;;  %v5063_v15 = vpop.f32.mrf.mxu1 }
 0x10e   :  { %6607 = vst [vmem:[#allocation60_spill] sm:$0xff] %v5063_v15  ;;  %v432_v15 = vrot.slane %v427_v21, %v431_v8 }
 0x111   :  { %v222_v14 = vpop.f32.mrf.mxu0  ;;  %v335_v12 = vpop.f32.mrf.mxu1 }
 0x113   :  { %v224_v32 = vpop.f32.mrf.mxu0  ;;  %v5065_v9 = vpop.f32.mrf.mxu1 }
 0x114   :  { %6608 = vst [vmem:[#allocation61_spill] sm:$0xff] %v5065_v9 }
 0x117   :  { %v228_v26 = vpop.f32.mrf.mxu0  ;;  %v341_v39 = vpop.f32.mrf.mxu1 }
 0x119   :  { %v230_v3 = vpop.f32.mrf.mxu0  ;;  %v5070_v7 = vpop.f32.mrf.mxu1 }
 0x11a   :  { %6609 = vst [vmem:[#allocation62_spill] sm:$0xff] %v5070_v7  ;;  %v6644_v7 = vld [vmem:[#allocation18_spill] sm:$0xff] }
 0x11d   :  { %v510_v45 = vpop.f32.mrf.mxu0  ;;  %v581_v0 = vpop.f32.mrf.mxu1 }
 0x11e   :  { %v511_v2 = vadd.f32 %v510_v45, %v432_v15  ;;  %v582_v50 = vadd.f32 %v581_v0, %v440_v44 }
 0x11f   :  { %v512_v9 = vpop.f32.mrf.mxu0  ;;  %v3559_v1 = vpop.f32.mrf.mxu1 }
 0x120   :  { %v513_v43 = vadd.f32 %v512_v9, %v436_v4  ;;  %v892_v63 = vadd.f32 %v582_v50, %v5029_v49  ;;  %v5073_v40 = vadd.f32 %v511_v2, %v192_v42  ;;  %v5075_v62 = vadd.f32 %v582_v50, %v305_v41 }
 0x121   :  { %v5077_v11 = vadd.f32 %v511_v2, %v198_v36  ;;  %v5079_v37 = vadd.f32 %v582_v50, %v311_v35  ;;  %v5081_v8 = vadd.f32 %v511_v2, %v204_v30  ;;  %v5089_v21 = vadd.f32 %v582_v50, %v317_v29 }
 0x122   :  { %v5083_v5 = vadd.f32 %v513_v43, %v194_v47  ;;  %v5085_v6 = vadd.f32 %v513_v43, %v200_v33  ;;  %v5087_v15 = vadd.f32 %v513_v43, %v206_v27  ;;  %v5091_v9 = vadd.f32 %v511_v2, %v210_v24 }
 0x123   :  { %v5093_v42 = vadd.f32 %v513_v43, %v212_v23  ;;  %v5095_v41 = vadd.f32 %v582_v50, %v323_v38  ;;  %v5097_v36 = vadd.f32 %v511_v2, %v216_v20  ;;  %v5099_v35 = vadd.f32 %v513_v43, %v218_v17 }
 0x124   :  { %6610 = vst [vmem:[#allocation63_spill] sm:$0xff] %v5091_v9  ;;  %v5101_v30 = vadd.f32 %v582_v50, %v329_v18  ;;  %v5103_v44 = vadd.f32 %v511_v2, %v222_v14  ;;  %v5105_v33 = vadd.f32 %v513_v43, %v224_v32  ;;  %v5107_v27 = vadd.f32 %v582_v50, %v335_v12  ;;  %v5708_v9 = vld [vmem:[#allocation5 + $0x38] sm:$0xff] }
 0x125   :  { %6611 = vst [vmem:[#allocation64_spill] sm:$0xff] %v5093_v42  ;;  %6612 = vst [vmem:[#allocation65_spill] sm:$0xff] %v5095_v41  ;;  %v5109_v29 = vadd.f32 %v511_v2, %v228_v26  ;;  %v5111_v24 = vadd.f32 %v513_v43, %v230_v3  ;;  %v5113_v23 = vadd.f32 %v582_v50, %v341_v39  ;;  %v5122_v50 = vld [vmem:[%s6472_s9] ss:$0 sm:$0xff]  ;;  %v5702_v41 = vld [vmem:[#allocation5 + $0x48] sm:$0xff] }
 0x126   :  { %6613 = vst [vmem:[#allocation66_spill] sm:$0xff] %v5097_v36  ;;  %6614 = vst [vmem:[#allocation67_spill] sm:$0xff] %v5099_v35  ;;  %v876_v38 = vadd.f32 %v511_v2, %v5027_v46  ;;  %v877_v32 = vadd.f32 %v513_v43, %v5035_v48  ;;  %v5694_v35 = vld [vmem:[#allocation5 + $0x58] sm:$0xff]  ;;  %v5698_v36 = vld [vmem:[#allocation5 + $0x50] sm:$0xff] }
 0x127   :  { %6615 = vst [vmem:[#allocation68_spill] sm:$0xff] %v5101_v30  ;;  %6616 = vst [vmem:[#allocation69_spill] sm:$0xff] %v5103_v44  ;;  %v5706_v42 = vld [vmem:[#allocation5 + $0x40] sm:$0xff] }
 0x128   :  { %6617 = vst [vmem:[#allocation70_spill] sm:$0xff] %v5105_v33  ;;  %6618 = vst [vmem:[#allocation71_spill] sm:$0xff] %v5107_v27  ;;  %v6651_v27 = vld [vmem:[#allocation25_spill] sm:$0xff] }
 0x129   :  { %6619 = vst [vmem:[#allocation72_spill] sm:$0xff] %v5109_v29  ;;  %6620 = vst [vmem:[#allocation73_spill] sm:$0xff] %v5111_v24  ;;  %v6647_v24 = vld [vmem:[#allocation21_spill] sm:$0xff]  ;;  %v6649_v29 = vld [vmem:[#allocation23_spill] sm:$0xff] }
 0x12a   :  { %6621 = vst [vmem:[#allocation74_spill] sm:$0xff] %v5113_v23  ;;  %v6646_v23 = vld [vmem:[#allocation20_spill] sm:$0xff] }
 0x13f   :  { %v5116_v20 = vpop.f32.mrf.mxu0  ;;  %v801_v17 = vpop.f32.mrf.mxu1 }
 0x140   :  { %v878_v45 = vadd.f32 %v876_v38, %v801_v17 }
 0x141   :  { %v3594_v18 = vpop.f32.mrf.mxu0  ;;  %v803_v14 = vpop.f32.mrf.mxu1 }
 0x142   :  { %v3195_v47 = vmul.f32 -1.442695, %v878_v45  ;;  %v879_v12 = vadd.f32 %v877_v32, %v803_v14  ;;  %v6622_v32 = vmov 0.0  }
 0x144   :  { %4164 = vpow2.f32 %v3195_v47  ;;  %v3196_v1 = vmul.f32 -1.442695, %v879_v12  ;;  %v6625_v12 = vld [vmem:[#allocation49_spill] sm:$0xff] }
 0x146   :  { %4166 = vpow2.f32 %v3196_v1  ;;  %v6626_v1 = vld [vmem:[#allocation43_spill] sm:$0xff] }
 0x151   :  { %v4165_v26 = vpop.eup %4164 }
 0x152   :  { %v886_v3 = vadd.f32 1.0, %v4165_v26  ;;  %v6627_v26 = vld [vmem:[#allocation50_spill] sm:$0xff] }
 0x153   :  { %v4167_v39 = vpop.eup %4166 }
 0x154   :  { %4168 = vrcp.f32 %v886_v3  ;;  %v887_v2 = vadd.f32 1.0, %v4167_v39  ;;  %v6628_v3 = vld [vmem:[#allocation44_spill] sm:$0xff]  ;;  %v6629_v39 = vld [vmem:[#allocation51_spill] sm:$0xff] }
 0x156   :  { %4170 = vrcp.f32 %v887_v2  ;;  %v6630_v2 = vld [vmem:[#allocation45_spill] sm:$0xff] }
 0x160   :  { %v872_v4 = vpop.f32.mrf.mxu0 }
 0x161   :  { %v4169_v46 = vpop.eup %4168  ;;  %v899_v49 = vadd.f32 %v5122_v50, %v872_v4  ;;  %v6631_v4 = vld [vmem:[#allocation53_spill] sm:$0xff] }
 0x162   :  { %v3629_v0 = vpop.f32.mrf.mxu0 }
 0x163   :  { %v900_v48 = vmul.f32 %v4169_v46, %v899_v49  ;;  %v4171_v38 = vpop.eup %4170  ;;  %v6632_v46 = vld [vmem:[#allocation46_spill] sm:$0xff]  ;;  %v6634_v0 = vld [vmem:[#allocation47_spill] sm:$0xff] }
 0x164   :  { %v903_v17 = vsub.f32 1.0, %v4171_v38  ;;  %v905_v47 = vmul.f32 %v4171_v38, %v4823_v51  ;;  %v6623_v51 = vld [vmem:[#allocation48_spill] sm:$0xff]  ;;  %v6633_v49 = vld [vmem:[#allocation54_spill] sm:$0xff]  ;;  %v6637_v38 = vld [vmem:[#allocation55_spill] sm:$0xff] }
 0x165   :  { %v901_v43 = vadd.f32 %v900_v48, %v892_v63  ;;  %v6624_v63 = vld [vmem:[#allocation42_spill] sm:$0xff] }
 0x166   :  { %v6635_v48 = vld [vmem:[#allocation10_spill] sm:$0xff] }
 0x167   :  { %4172 = vtanh.f32 %v901_v43  ;;  %v6636_v43 = vld [vmem:[#allocation11_spill] sm:$0xff] }
 0x174   :  { %v4173_v45 = vpop.eup %4172 }
 0x175   :  { %v904_v18 = vmul.f32 %v4173_v45, %v903_v17  ;;  %v6638_v17 = vld [vmem:[#allocation12_spill] sm:$0xff]  ;;  %v6639_v45 = vld [vmem:[#allocation13_spill] sm:$0xff] }
 0x177   :  { %v5126_v14 = vadd.f32 %v905_v47, %v904_v18  ;;  %v6640_v18 = vld [vmem:[#allocation14_spill] sm:$0xff]  ;;  %v6641_v47 = vld [vmem:[#allocation15_spill] sm:$0xff] }
 0x179   :  { %3663 = vmatmul.mubr.f32.vlgmr.msra.gmra.mxu1 %v5126_v14  ;;  %1115 = vmatmul.mubr.f32.vlgmr.msra.gmra.mxu0 %v5126_v14 }
 0x17a   :  { %3666 = vmatpush3.msra.mxu1 %v4832_v52  ;;  %3697 = vmatprep.mubr.msk.f32.mxu1 %vm4317_vm1, %v6622_v32 }
 0x17b   :  { %3667 = vmatprep.subr.mxu1 %v6622_v32  ;;  %3701 = vmatpush3.msra.mxu0 %v4983_v10 }
 0x17c   :  { %3668 = vmatpush3.msra.mxu1 %v4840_v53  ;;  %3702 = vmatprep.subr.mxu0 %v6622_v32 }
 0x17d   :  { %3669 = vmatprep.subr.mxu1 %v6622_v32  ;;  %3703 = vmatpush3.msra.mxu0 %v4985_v13 }
 0x17e   :  { %3670 = vmatpush3.msra.mxu1 %v4850_v54  ;;  %3704 = vmatprep.subr.mxu0 %v6622_v32 }
 0x17f   :  { %3671 = vmatprep.subr.mxu1 %v6622_v32  ;;  %3705 = vmatpush3.msra.mxu0 %v4989_v16 }
 0x180   :  { %3672 = vmatpush3.msra.mxu1 %v4859_v55  ;;  %3706 = vmatprep.subr.mxu0 %v6622_v32 }
 0x181   :  { %3673 = vmatprep.subr.mxu1 %v6622_v32  ;;  %3707 = vmatpush3.msra.mxu0 %v4993_v19 }
 0x182   :  { %3674 = vmatpush3.msra.mxu1 %v4866_v56  ;;  %3708 = vmatprep.subr.mxu0 %v6622_v32 }
 0x183   :  { %3675 = vmatprep.subr.mxu1 %v6622_v32  ;;  %3709 = vmatpush3.msra.mxu0 %v4999_v22 }
 0x184   :  { %3676 = vmatpush3.msra.mxu1 %v4873_v57  ;;  %3710 = vmatprep.subr.mxu0 %v6622_v32 }
 0x185   :  { %3677 = vmatprep.subr.mxu1 %v6622_v32  ;;  %3711 = vmatpush3.msra.mxu0 %v5003_v25 }
 0x186   :  { %3678 = vmatpush3.msra.mxu1 %v4880_v58  ;;  %3712 = vmatprep.subr.mxu0 %v6622_v32 }
 0x187   :  { %3679 = vmatprep.subr.mxu1 %v6622_v32  ;;  %3713 = vmatpush3.msra.mxu0 %v5007_v28 }
 0x188   :  { %3680 = vmatpush3.msra.mxu1 %v4887_v59  ;;  %3714 = vmatprep.subr.mxu0 %v6622_v32 }
 0x189   :  { %3681 = vmatprep.subr.mxu1 %v6622_v32  ;;  %3715 = vmatpush3.msra.mxu0 %v5011_v31 }
 0x18a   :  { %3682 = vmatpush3.msra.mxu1 %v4894_v60  ;;  %3716 = vmatprep.subr.mxu0 %v6622_v32 }
 0x18b   :  { %3683 = vmatprep.subr.mxu1 %v6622_v32  ;;  %3717 = vmatpush3.msra.mxu0 %v5014_v34 }
 0x18c   :  { %3684 = vmatpush3.msra.mxu1 %v4901_v61  ;;  %3718 = vmatprep.subr.mxu0 %v6622_v32 }
 0x18d   :  { %3685 = vmatprep.subr.mxu1 %v6622_v32  ;;  %3719 = vmatpush3.msra.mxu0 %v6623_v51 }
 0x18e   :  { %3686 = vmatpush3.msra.mxu1 %v6624_v63  ;;  %3720 = vmatprep.subr.mxu0 %v6622_v32 }
 0x18f   :  { %3687 = vmatprep.subr.mxu1 %v6622_v32  ;;  %3721 = vmatpush3.msra.mxu0 %v6625_v12 }
 0x190   :  { %3688 = vmatpush3.msra.mxu1 %v6626_v1  ;;  %3722 = vmatprep.subr.mxu0 %v6622_v32 }
 0x191   :  { %3689 = vmatprep.subr.mxu1 %v6622_v32  ;;  %3723 = vmatpush3.msra.mxu0 %v6627_v26 }
 0x192   :  { %3690 = vmatpush3.msra.mxu1 %v6628_v3  ;;  %3724 = vmatprep.subr.mxu0 %v6622_v32 }
 0x193   :  { %3691 = vmatprep.subr.mxu1 %v6622_v32  ;;  %3725 = vmatpush3.msra.mxu0 %v6629_v39 }
 0x194   :  { %3692 = vmatpush3.msra.mxu1 %v6630_v2  ;;  %3726 = vmatprep.subr.mxu0 %v6622_v32 }
 0x195   :  { %3693 = vmatprep.subr.mxu1 %v6622_v32  ;;  %3727 = vmatpush3.msra.mxu0 %v6631_v4 }
 0x196   :  { %3694 = vmatpush3.msra.mxu1 %v6632_v46  ;;  %3728 = vmatprep.subr.mxu0 %v6622_v32 }
 0x197   :  { %3695 = vmatprep.subr.mxu1 %v6622_v32  ;;  %3729 = vmatpush3.msra.mxu0 %v6633_v49 }
 0x198   :  { %3696 = vmatpush3.msra.mxu1 %v6634_v0  ;;  %3730 = vmatprep.subr.mxu0 %v6622_v32 }
 0x199   :  { %3698 = vmatmul.mubr.f32.vlgmr.msra.gmra.mxu1 %v5126_v14  ;;  %1360 = vmatprep.subr.mxu1 %v6635_v48  ;;  %v6642_v48 = vld [vmem:[#allocation16_spill] sm:$0xff] }
 0x19a   :  { %1361 = vmatpush1.msra.mxu1 %v6636_v43  ;;  %3731 = vmatpush3.msra.mxu0 %v6637_v38  ;;  %v6643_v43 = vld [vmem:[#allocation17_spill] sm:$0xff] }
 0x19b   :  { %1362 = vmatprep.subr.mxu1 %v6638_v17  ;;  %3732 = vmatprep.mubr.msk.f32.mxu0 %vm4317_vm1, %v6622_v32  ;;  %v6645_v17 = vld [vmem:[#allocation19_spill] sm:$0xff] }
 0x19c   :  { %1363 = vmatpush1.msra.mxu1 %v6639_v45  ;;  %1424 = vmatprep.mubr.f32.mxu1 %v6622_v32  ;;  %v6648_v45 = vld [vmem:[#allocation22_spill] sm:$0xff] }
 0x19d   :  { %1364 = vmatprep.subr.mxu1 %v6640_v18  ;;  %3735 = vmatprep.subr.mxu0 %v6622_v32  ;;  %v6650_v18 = vld [vmem:[#allocation24_spill] sm:$0xff] }
 0x19e   :  { %1365 = vmatpush1.msra.mxu1 %v6641_v47  ;;  %v6652_v47 = vld [vmem:[#allocation26_spill] sm:$0xff] }
 0x19f   :  { %1366 = vmatprep.subr.mxu1 %v6642_v48  ;;  %v6653_v48 = vld [vmem:[#allocation27_spill] sm:$0xff] }
 0x1a0   :  { %1367 = vmatpush1.msra.mxu1 %v6643_v43  ;;  %v6654_v43 = vld [vmem:[#allocation28_spill] sm:$0xff] }
 0x1a1   :  { %1368 = vmatprep.subr.mxu1 %v6644_v7  ;;  %v6655_v7 = vld [vmem:[#allocation29_spill] sm:$0xff] }
 0x1a2   :  { %1369 = vmatpush1.msra.mxu1 %v6645_v17  ;;  %v6656_v17 = vld [vmem:[#allocation30_spill] sm:$0xff] }
 0x1a3   :  { %1370 = vmatprep.subr.mxu1 %v6646_v23  ;;  %v6657_v23 = vld [vmem:[#allocation31_spill] sm:$0xff] }
 0x1a4   :  { %1371 = vmatpush1.msra.mxu1 %v6647_v24  ;;  %v6658_v24 = vld [vmem:[#allocation32_spill] sm:$0xff] }
 0x1a5   :  { %1372 = vmatprep.subr.mxu1 %v6648_v45  ;;  %v6659_v45 = vld [vmem:[#allocation33_spill] sm:$0xff] }
 0x1a6   :  { %1373 = vmatpush1.msra.mxu1 %v6649_v29  ;;  %v6660_v29 = vld [vmem:[#allocation34_spill] sm:$0xff] }
 0x1a7   :  { %1374 = vmatprep.subr.mxu1 %v6650_v18  ;;  %v6661_v18 = vld [vmem:[#allocation35_spill] sm:$0xff] }
 0x1a8   :  { %1375 = vmatpush1.msra.mxu1 %v6651_v27  ;;  %v6662_v27 = vld [vmem:[#allocation36_spill] sm:$0xff] }
 0x1a9   :  { %1376 = vmatprep.subr.mxu1 %v6652_v47  ;;  %v6663_v47 = vld [vmem:[#allocation37_spill] sm:$0xff] }
 0x1aa   :  { %1377 = vmatpush1.msra.mxu1 %v6653_v48  ;;  %v6664_v48 = vld [vmem:[#allocation38_spill] sm:$0xff] }
 0x1ab   :  { %1378 = vmatprep.subr.mxu1 %v6654_v43  ;;  %v6665_v43 = vld [vmem:[#allocation39_spill] sm:$0xff] }
 0x1ac   :  { %1379 = vmatpush1.msra.mxu1 %v6655_v7  ;;  %v6666_v7 = vld [vmem:[#allocation40_spill] sm:$0xff] }
 0x1ad   :  { %1380 = vmatprep.subr.mxu1 %v6656_v17  ;;  %v6667_v17 = vld [vmem:[#allocation41_spill] sm:$0xff] }
 0x1ae   :  { %1381 = vmatpush1.msra.mxu1 %v6657_v23  ;;  %v3194_v23 = vld [vmem:[%s6473_s10] ss:$0 sm:$0xff] }
 0x1af   :  { %1382 = vmatprep.subr.mxu1 %v6658_v24 }
 0x1b0   :  { %1383 = vmatpush1.msra.mxu1 %v6659_v45 }
 0x1b1   :  { %1384 = vmatprep.subr.mxu1 %v6660_v29  ;;  %v5236_v29 = vadd.f32 %v3194_v23, %v5116_v20 }
 0x1b2   :  { %1385 = vmatpush1.msra.mxu1 %v6661_v18  ;;  %v6669_v18 = vld [vmem:[#allocation52_spill] sm:$0xff] }
 0x1b3   :  { %1386 = vmatprep.subr.mxu1 %v6662_v27  ;;  %6668 = vst [vmem:[#allocation48_spill] sm:$0xff] %v5236_v29 }
 0x1b4   :  { %1387 = vmatpush1.msra.mxu1 %v6663_v47 }
 0x1b5   :  { %1388 = vmatprep.subr.mxu1 %v6664_v48 }
 0x1b6   :  { %1389 = vmatpush1.msra.mxu1 %v6665_v43 }
 0x1b7   :  { %1390 = vmatprep.subr.mxu1 %v6666_v7 }
 0x1b8   :  { %1391 = vmatpush1.msra.mxu1 %v6667_v17 }
 0x1b9   :  { %3770 = vmatprep.subr.mxu1 %v6622_v32 }
 0x239   :  { %v989_v24 = vpop.f32.mrf.mxu1  ;;  %v1116_v45 = vpop.f32.mrf.mxu0 }
 0x23a   :  { %v990_v27 = vadd.f32 %v989_v24, %v6669_v18  ;;  %v1193_v47 = vadd.f32 %v5073_v40, %v1116_v45 }
 0x23b   :  { %v3664_v48 = vpop.f32.mrf.mxu1  ;;  %v1118_v17 = vpop.f32.mrf.mxu0 }
 0x23c   :  { %v993_v43 = vadd.f32 %v990_v27, %v5236_v29  ;;  %v3198_v7 = vmul.f32 -1.442695, %v1193_v47  ;;  %v1194_v33 = vadd.f32 %v5083_v5, %v1118_v17 }
 0x23e   :  { %994 = vst [vmem:[%s6474_s11] sm:$0xff] %v993_v43  ;;  %4174 = vpow2.f32 %v3198_v7  ;;  %v3199_v44 = vmul.f32 -1.442695, %v1194_v33 }
 0x240   :  { %4176 = vpow2.f32 %v3199_v44 }
 0x24b   :  { %v4175_v20 = vpop.eup %4174 }
 0x24c   :  { %v1201_v23 = vadd.f32 1.0, %v4175_v20 }
 0x24d   :  { %v4177_v24 = vpop.eup %4176 }
 0x24e   :  { %4178 = vrcp.f32 %v1201_v23  ;;  %v1202_v18 = vadd.f32 1.0, %v4177_v24 }
 0x250   :  { %4180 = vrcp.f32 %v1202_v18 }
 0x259   :  { %v1187_v40 = vpop.f32.mrf.mxu1 }
 0x25a   :  { %v1208_v45 = vadd.f32 %v5122_v50, %v1187_v40 }
 0x25b   :  { %v4179_v27 = vpop.eup %4178  ;;  %v3699_v47 = vpop.f32.mrf.mxu1 }
 0x25c   :  { %v1209_v48 = vmul.f32 %v4179_v27, %v1208_v45 }
 0x25d   :  { %v4181_v43 = vpop.eup %4180 }
 0x25e   :  { %v1210_v30 = vadd.f32 %v1209_v48, %v5075_v62  ;;  %v1212_v7 = vsub.f32 1.0, %v4181_v43  ;;  %v1214_v44 = vmul.f32 %v4181_v43, %v5126_v14  ;;  %v5384_v62 = vld [vmem:[%s6468_s5 + $0xf8] sm:$0xff] }
 0x25f   :  { %v5448_v14 = vld [vmem:[%s6468_s5 + $0x78] sm:$0xff] }
 0x260   :  { %4182 = vtanh.f32 %v1210_v30  ;;  %v5442_v30 = vld [vmem:[%s6468_s5 + $0x80] sm:$0xff]  ;;  %6679 = vst [vmem:[#allocation54_spill] sm:$0xff] %v5448_v14 }
 0x261   :  { %6678 = vst [vmem:[#allocation46_spill] sm:$0xff] %v5442_v30 }
 0x26d   :  { %v4183_v5 = vpop.eup %4182 }
 0x26e   :  { %v1213_v33 = vmul.f32 %v4183_v5, %v1212_v7 }
 0x270   :  { %v5248_v17 = vadd.f32 %v1214_v44, %v1213_v33 }
 0x272   :  { %3733 = vmatmul.mubr.f32.vlgmr.msra.gmra.mxu0 %v5248_v17  ;;  %1425 = vmatmul.mubr.f32.vlgmr.msra.gmra.mxu1 %v5248_v17 }
 0x273   :  { %3736 = vmatpush3.msra.mxu0 %v4832_v52  ;;  %3767 = vmatprep.mubr.msk.f32.mxu0 %vm4317_vm1, %v6622_v32  ;;  %v5324_v52 = vld [vmem:[%s6468_s5 + $0x170] sm:$0xff] }
 0x274   :  { %3737 = vmatprep.subr.mxu0 %v6622_v32  ;;  %3771 = vmatpush3.msra.mxu1 %v4983_v10  ;;  %v5390_v10 = vld [vmem:[%s6468_s5 + $0xf0] sm:$0xff] }
 0x275   :  { %3738 = vmatpush3.msra.mxu0 %v4840_v53  ;;  %3772 = vmatprep.subr.mxu1 %v6622_v32  ;;  %v5329_v53 = vld [vmem:[%s6468_s5 + $0x168] sm:$0xff] }
 0x276   :  { %3739 = vmatprep.subr.mxu0 %v6622_v32  ;;  %3773 = vmatpush3.msra.mxu1 %v4985_v13  ;;  %v5396_v13 = vld [vmem:[%s6468_s5 + $0xe0] sm:$0xff] }
 0x277   :  { %3740 = vmatpush3.msra.mxu0 %v4850_v54  ;;  %3774 = vmatprep.subr.mxu1 %v6622_v32  ;;  %v5334_v54 = vld [vmem:[%s6468_s5 + $0x158] sm:$0xff]  ;;  %6670 = vst [vmem:[#allocation42_spill] sm:$0xff] %v5396_v13 }
 0x278   :  { %3741 = vmatprep.subr.mxu0 %v6622_v32  ;;  %3775 = vmatpush3.msra.mxu1 %v4989_v16  ;;  %v5402_v16 = vld [vmem:[%s6468_s5 + $0xd8] sm:$0xff] }
 0x279   :  { %3742 = vmatpush3.msra.mxu0 %v4859_v55  ;;  %3776 = vmatprep.subr.mxu1 %v6622_v32  ;;  %v5340_v55 = vld [vmem:[%s6468_s5 + $0x150] sm:$0xff]  ;;  %6671 = vst [vmem:[#allocation49_spill] sm:$0xff] %v5402_v16 }
 0x27a   :  { %3743 = vmatprep.subr.mxu0 %v6622_v32  ;;  %3777 = vmatpush3.msra.mxu1 %v4993_v19  ;;  %v5408_v19 = vld [vmem:[%s6468_s5 + $0xc8] sm:$0xff] }
 0x27b   :  { %3744 = vmatpush3.msra.mxu0 %v4866_v56  ;;  %3778 = vmatprep.subr.mxu1 %v6622_v32  ;;  %v5346_v56 = vld [vmem:[%s6468_s5 + $0x140] sm:$0xff]  ;;  %6672 = vst [vmem:[#allocation43_spill] sm:$0xff] %v5408_v19 }
 0x27c   :  { %3745 = vmatprep.subr.mxu0 %v6622_v32  ;;  %3779 = vmatpush3.msra.mxu1 %v4999_v22  ;;  %v5413_v22 = vld [vmem:[%s6468_s5 + $0xc0] sm:$0xff] }
 0x27d   :  { %3746 = vmatpush3.msra.mxu0 %v4873_v57  ;;  %3780 = vmatprep.subr.mxu1 %v6622_v32  ;;  %v5352_v57 = vld [vmem:[%s6468_s5 + $0x138] sm:$0xff]  ;;  %6673 = vst [vmem:[#allocation50_spill] sm:$0xff] %v5413_v22 }
 0x27e   :  { %3747 = vmatprep.subr.mxu0 %v6622_v32  ;;  %3781 = vmatpush3.msra.mxu1 %v5003_v25  ;;  %v5418_v25 = vld [vmem:[%s6468_s5 + $0xb0] sm:$0xff] }
 0x27f   :  { %3748 = vmatpush3.msra.mxu0 %v4880_v58  ;;  %3782 = vmatprep.subr.mxu1 %v6622_v32  ;;  %v5360_v58 = vld [vmem:[%s6468_s5 + $0x128] sm:$0xff]  ;;  %6674 = vst [vmem:[#allocation44_spill] sm:$0xff] %v5418_v25 }
 0x280   :  { %3749 = vmatprep.subr.mxu0 %v6622_v32  ;;  %3783 = vmatpush3.msra.mxu1 %v5007_v28  ;;  %v5424_v28 = vld [vmem:[%s6468_s5 + $0xa8] sm:$0xff] }
 0x281   :  { %3750 = vmatpush3.msra.mxu0 %v4887_v59  ;;  %3784 = vmatprep.subr.mxu1 %v6622_v32  ;;  %v5366_v59 = vld [vmem:[%s6468_s5 + $0x120] sm:$0xff]  ;;  %6675 = vst [vmem:[#allocation51_spill] sm:$0xff] %v5424_v28 }
 0x282   :  { %3751 = vmatprep.subr.mxu0 %v6622_v32  ;;  %3785 = vmatpush3.msra.mxu1 %v5011_v31  ;;  %v5430_v31 = vld [vmem:[%s6468_s5 + $0x98] sm:$0xff] }
 0x283   :  { %3752 = vmatpush3.msra.mxu0 %v4894_v60  ;;  %3786 = vmatprep.subr.mxu1 %v6622_v32  ;;  %v5372_v60 = vld [vmem:[%s6468_s5 + $0x110] sm:$0xff]  ;;  %6676 = vst [vmem:[#allocation45_spill] sm:$0xff] %v5430_v31 }
 0x284   :  { %3753 = vmatprep.subr.mxu0 %v6622_v32  ;;  %3787 = vmatpush3.msra.mxu1 %v5014_v34  ;;  %v5436_v34 = vld [vmem:[%s6468_s5 + $0x90] sm:$0xff] }
 0x285   :  { %3754 = vmatpush3.msra.mxu0 %v4901_v61  ;;  %3788 = vmatprep.subr.mxu1 %v6622_v32  ;;  %v5378_v61 = vld [vmem:[%s6468_s5 + $0x108] sm:$0xff]  ;;  %6677 = vst [vmem:[#allocation53_spill] sm:$0xff] %v5436_v34 }
 0x286   :  { %3755 = vmatprep.subr.mxu0 %v6622_v32  ;;  %3789 = vmatpush3.msra.mxu1 %v6623_v51  ;;  %v5454_v51 = vld [vmem:[%s6468_s5 + $0x68] sm:$0xff] }
 0x287   :  { %3756 = vmatpush3.msra.mxu0 %v6624_v63  ;;  %3790 = vmatprep.subr.mxu1 %v6622_v32  ;;  %6680 = vst [vmem:[#allocation47_spill] sm:$0xff] %v5454_v51  ;;  %v5460_v63 = vld [vmem:[%s6468_s5 + $0x60] sm:$0xff] }
 0x288   :  { %3757 = vmatprep.subr.mxu0 %v6622_v32  ;;  %3791 = vmatpush3.msra.mxu1 %v6625_v12  ;;  %6681 = vst [vmem:[#allocation10_spill] sm:$0xff] %v5460_v63  ;;  %v5466_v12 = vld [vmem:[%s6468_s5 + $0x50] sm:$0xff] }
 0x289   :  { %3758 = vmatpush3.msra.mxu0 %v6626_v1  ;;  %3792 = vmatprep.subr.mxu1 %v6622_v32  ;;  %6682 = vst [vmem:[#allocation11_spill] sm:$0xff] %v5466_v12  ;;  %v5472_v1 = vld [vmem:[%s6468_s5 + $0x48] sm:$0xff] }
 0x28a   :  { %3759 = vmatprep.subr.mxu0 %v6622_v32  ;;  %3793 = vmatpush3.msra.mxu1 %v6627_v26  ;;  %6683 = vst [vmem:[#allocation55_spill] sm:$0xff] %v5472_v1  ;;  %v5478_v26 = vld [vmem:[%s6468_s5 + $0x38] sm:$0xff] }
 0x28b   :  { %3760 = vmatpush3.msra.mxu0 %v6628_v3  ;;  %3794 = vmatprep.subr.mxu1 %v6622_v32  ;;  %6684 = vst [vmem:[#allocation12_spill] sm:$0xff] %v5478_v26  ;;  %v5484_v3 = vld [vmem:[%s6468_s5 + $0x30] sm:$0xff] }
 0x28c   :  { %3761 = vmatprep.subr.mxu0 %v6622_v32  ;;  %3795 = vmatpush3.msra.mxu1 %v6629_v39  ;;  %6685 = vst [vmem:[#allocation13_spill] sm:$0xff] %v5484_v3  ;;  %v5490_v39 = vld [vmem:[%s6468_s5 + $0x20] sm:$0xff] }
 0x28d   :  { %3762 = vmatpush3.msra.mxu0 %v6630_v2  ;;  %3796 = vmatprep.subr.mxu1 %v6622_v32  ;;  %6686 = vst [vmem:[#allocation14_spill] sm:$0xff] %v5490_v39  ;;  %v5496_v2 = vld [vmem:[%s6468_s5 + $0x18] sm:$0xff] }
 0x28e   :  { %3763 = vmatprep.subr.mxu0 %v6622_v32  ;;  %3797 = vmatpush3.msra.mxu1 %v6631_v4  ;;  %6687 = vst [vmem:[#allocation15_spill] sm:$0xff] %v5496_v2  ;;  %v5502_v4 = vld [vmem:[%s6468_s5 + $0x8] sm:$0xff] }
 0x28f   :  { %3764 = vmatpush3.msra.mxu0 %v6632_v46  ;;  %3798 = vmatprep.subr.mxu1 %v6622_v32  ;;  %6688 = vst [vmem:[#allocation16_spill] sm:$0xff] %v5502_v4  ;;  %v5508_v46 = vld [vmem:[%s6468_s5] sm:$0xff] }
 0x290   :  { %3765 = vmatprep.subr.mxu0 %v6622_v32  ;;  %3799 = vmatpush3.msra.mxu1 %v6633_v49  ;;  %6689 = vst [vmem:[#allocation17_spill] sm:$0xff] %v5508_v46 }
 0x291   :  { %3766 = vmatpush3.msra.mxu0 %v6634_v0  ;;  %3800 = vmatprep.subr.mxu1 %v6622_v32 }
 0x292   :  { %3768 = vmatmul.mubr.f32.vlgmr.msra.gmra.mxu0 %v5248_v17  ;;  %3801 = vmatpush3.msra.mxu1 %v6637_v38  ;;  %v6690_v38 = vld [vmem:[#allocation56_spill] sm:$0xff] }
 0x293   :  { %3802 = vmatprep.mubr.msk.f32.mxu1 %vm4317_vm1, %v6622_v32  ;;  %1734 = vmatprep.mubr.f32.mxu0 %v6622_v32 }
 0x294   :  { %3805 = vmatprep.subr.mxu1 %v6622_v32  ;;  %1670 = vmatprep.subr.mxu0 %v5324_v52 }
 0x295   :  { %1671 = vmatpush1.msra.mxu0 %v5329_v53 }
 0x296   :  { %1672 = vmatprep.subr.mxu0 %v5334_v54 }
 0x297   :  { %1673 = vmatpush1.msra.mxu0 %v5340_v55 }
 0x298   :  { %1674 = vmatprep.subr.mxu0 %v5346_v56 }
 0x299   :  { %1675 = vmatpush1.msra.mxu0 %v5352_v57 }
 0x29a   :  { %1676 = vmatprep.subr.mxu0 %v5360_v58 }
 0x29b   :  { %1677 = vmatpush1.msra.mxu0 %v5366_v59 }
 0x29c   :  { %1678 = vmatprep.subr.mxu0 %v5372_v60 }
 0x29d   :  { %1679 = vmatpush1.msra.mxu0 %v5378_v61 }
 0x29e   :  { %1680 = vmatprep.subr.mxu0 %v5384_v62 }
 0x29f   :  { %1681 = vmatpush1.msra.mxu0 %v5390_v10 }
 0x2a0   :  { %1682 = vmatprep.subr.mxu0 %v5396_v13 }
 0x2a1   :  { %1683 = vmatpush1.msra.mxu0 %v5402_v16 }
 0x2a2   :  { %1684 = vmatprep.subr.mxu0 %v5408_v19 }
 0x2a3   :  { %1685 = vmatpush1.msra.mxu0 %v5413_v22 }
 0x2a4   :  { %1686 = vmatprep.subr.mxu0 %v5418_v25 }
 0x2a5   :  { %1687 = vmatpush1.msra.mxu0 %v5424_v28 }
 0x2a6   :  { %1688 = vmatprep.subr.mxu0 %v5430_v31 }
 0x2a7   :  { %1689 = vmatpush1.msra.mxu0 %v5436_v34 }
 0x2a8   :  { %1690 = vmatprep.subr.mxu0 %v5442_v30 }
 0x2a9   :  { %1691 = vmatpush1.msra.mxu0 %v5448_v14 }
 0x2aa   :  { %1692 = vmatprep.subr.mxu0 %v5454_v51 }
 0x2ab   :  { %1693 = vmatpush1.msra.mxu0 %v5460_v63 }
 0x2ac   :  { %1694 = vmatprep.subr.mxu0 %v5466_v12 }
 0x2ad   :  { %1695 = vmatpush1.msra.mxu0 %v5472_v1 }
 0x2ae   :  { %1696 = vmatprep.subr.mxu0 %v5478_v26 }
 0x2af   :  { %1697 = vmatpush1.msra.mxu0 %v5484_v3 }
 0x2b0   :  { %1698 = vmatprep.subr.mxu0 %v5490_v39 }
 0x2b1   :  { %1699 = vmatpush1.msra.mxu0 %v5496_v2 }
 0x2b2   :  { %1700 = vmatprep.subr.mxu0 %v5502_v4 }
 0x2b3   :  { %1701 = vmatpush1.msra.mxu0 %v5508_v46 }
 0x2b4   :  { %3840 = vmatprep.subr.mxu0 %v6622_v32 }
 0x332   :  { %v1298_v49 = vpop.f32.mrf.mxu0  ;;  %v1426_v0 = vpop.f32.mrf.mxu1 }
 0x333   :  { %v1299_v20 = vadd.f32 %v1298_v49, %v6690_v38  ;;  %v1503_v23 = vadd.f32 %v5077_v11, %v1426_v0 }
 0x334   :  { %v3734_v24 = vpop.f32.mrf.mxu0  ;;  %v1428_v45 = vpop.f32.mrf.mxu1 }
 0x335   :  { %v1302_v18 = vadd.f32 %v1299_v20, %v5236_v29  ;;  %v3201_v40 = vmul.f32 -1.442695, %v1503_v23  ;;  %v1504_v27 = vadd.f32 %v5085_v6, %v1428_v45  ;;  %v5529_v45 = vld [vmem:[%s6468_s5 + $0x178] sm:$0xff] }
 0x337   :  { %3200 = vst [vmem:[%s6474_s11 + $0x8] sm:$0xff] %v1302_v18  ;;  %4184 = vpow2.f32 %v3201_v40  ;;  %v3202_v47 = vmul.f32 -1.442695, %v1504_v27  ;;  %v5554_v27 = vld [vmem:[%s6468_s5 + $0x130] sm:$0xff] }
 0x339   :  { %4186 = vpow2.f32 %v3202_v47  ;;  %v5561_v47 = vld [vmem:[%s6468_s5 + $0x118] sm:$0xff] }
 0x344   :  { %v4185_v48 = vpop.eup %4184 }
 0x345   :  { %v1511_v43 = vadd.f32 1.0, %v4185_v48  ;;  %v5568_v48 = vld [vmem:[%s6468_s5 + $0x100] sm:$0xff] }
 0x346   :  { %v4187_v7 = vpop.eup %4186 }
 0x347   :  { %4188 = vrcp.f32 %v1511_v43  ;;  %v1512_v5 = vadd.f32 1.0, %v4187_v7  ;;  %v5575_v43 = vld [vmem:[%s6468_s5 + $0xe8] sm:$0xff]  ;;  %v5582_v7 = vld [vmem:[%s6468_s5 + $0xd0] sm:$0xff] }
 0x349   :  { %4190 = vrcp.f32 %v1512_v5  ;;  %v5589_v5 = vld [vmem:[%s6468_s5 + $0xb8] sm:$0xff] }
 0x352   :  { %v1497_v11 = vpop.f32.mrf.mxu0 }
 0x353   :  { %v1518_v33 = vadd.f32 %v5122_v50, %v1497_v11  ;;  %v5596_v11 = vld [vmem:[%s6468_s5 + $0xa0] sm:$0xff] }
 0x354   :  { %v4189_v44 = vpop.eup %4188  ;;  %v3769_v49 = vpop.f32.mrf.mxu0 }
 0x355   :  { %v1519_v0 = vmul.f32 %v4189_v44, %v1518_v33  ;;  %v5603_v33 = vld [vmem:[%s6468_s5 + $0x88] sm:$0xff]  ;;  %v5610_v44 = vld [vmem:[%s6468_s5 + $0x70] sm:$0xff]  ;;  %v5617_v49 = vld [vmem:[%s6468_s5 + $0x58] sm:$0xff] }
 0x356   :  { %v4191_v20 = vpop.eup %4190 }
 0x357   :  { %v1520_v38 = vadd.f32 %v1519_v0, %v5079_v37  ;;  %v1522_v23 = vsub.f32 1.0, %v4191_v20  ;;  %v1524_v18 = vmul.f32 %v4191_v20, %v5248_v17  ;;  %v5536_v37 = vld [vmem:[%s6468_s5 + $0x160] sm:$0xff]  ;;  %v5545_v17 = vld [vmem:[%s6468_s5 + $0x148] sm:$0xff]  ;;  %v5638_v20 = vld [vmem:[%s6468_s5 + $0x10] sm:$0xff] }
 0x358   :  { %v5624_v0 = vld [vmem:[%s6468_s5 + $0x40] sm:$0xff] }
 0x359   :  { %4192 = vtanh.f32 %v1520_v38  ;;  %v5631_v38 = vld [vmem:[%s6468_s5 + $0x28] sm:$0xff] }
 0x366   :  { %v4193_v6 = vpop.eup %4192 }
 0x367   :  { %v1523_v24 = vmul.f32 %v4193_v6, %v1522_v23  ;;  %v5678_v23 = vld [vmem:[#allocation5 + $0x78] sm:$0xff]  ;;  %v5680_v6 = vld [vmem:[#allocation5 + $0x70] sm:$0xff] }
 0x369   :  { %v5524_v40 = vadd.f32 %v1524_v18, %v1523_v24  ;;  %v5684_v24 = vld [vmem:[#allocation5 + $0x68] sm:$0xff]  ;;  %v5690_v18 = vld [vmem:[#allocation5 + $0x60] sm:$0xff] }
 0x36b   :  { %3803 = vmatmul.mubr.f32.vlgmr.msra.gmra.mxu1 %v5524_v40  ;;  %1735 = vmatmul.mubr.f32.vlgmr.msra.gmra.mxu0 %v5524_v40 }
 0x36c   :  { %3806 = vmatpush3.msra.mxu1 %v5529_v45  ;;  %3837 = vmatprep.mubr.msk.f32.mxu1 %vm4317_vm1, %v6622_v32 }
 0x36d   :  { %3807 = vmatprep.subr.mxu1 %v6622_v32  ;;  %3872 = vmatprep.mubr.msk.f32.mxu0 %vm4317_vm1, %v6622_v32 }
 0x36e   :  { %3808 = vmatpush3.msra.mxu1 %v5536_v37  ;;  %3841 = vmatpush3.msra.mxu0 %v5678_v23 }
 0x36f   :  { %3809 = vmatprep.subr.mxu1 %v6622_v32  ;;  %3842 = vmatprep.subr.mxu0 %v6622_v32 }
 0x370   :  { %3810 = vmatpush3.msra.mxu1 %v5545_v17  ;;  %3843 = vmatpush3.msra.mxu0 %v5680_v6 }
 0x371   :  { %3811 = vmatprep.subr.mxu1 %v6622_v32  ;;  %3844 = vmatprep.subr.mxu0 %v6622_v32 }
 0x372   :  { %3812 = vmatpush3.msra.mxu1 %v5554_v27  ;;  %3845 = vmatpush3.msra.mxu0 %v5684_v24 }
 0x373   :  { %3813 = vmatprep.subr.mxu1 %v6622_v32  ;;  %3846 = vmatprep.subr.mxu0 %v6622_v32 }
 0x374   :  { %3814 = vmatpush3.msra.mxu1 %v5561_v47  ;;  %3847 = vmatpush3.msra.mxu0 %v5690_v18 }
 0x375   :  { %3815 = vmatprep.subr.mxu1 %v6622_v32  ;;  %3848 = vmatprep.subr.mxu0 %v6622_v32 }
 0x376   :  { %3816 = vmatpush3.msra.mxu1 %v5568_v48  ;;  %3849 = vmatpush3.msra.mxu0 %v5694_v35 }
 0x377   :  { %3817 = vmatprep.subr.mxu1 %v6622_v32  ;;  %3850 = vmatprep.subr.mxu0 %v6622_v32 }
 0x378   :  { %3818 = vmatpush3.msra.mxu1 %v5575_v43  ;;  %3851 = vmatpush3.msra.mxu0 %v5698_v36 }
 0x379   :  { %3819 = vmatprep.subr.mxu1 %v6622_v32  ;;  %3852 = vmatprep.subr.mxu0 %v6622_v32 }
 0x37a   :  { %3820 = vmatpush3.msra.mxu1 %v5582_v7  ;;  %3853 = vmatpush3.msra.mxu0 %v5702_v41 }
 0x37b   :  { %3821 = vmatprep.subr.mxu1 %v6622_v32  ;;  %3854 = vmatprep.subr.mxu0 %v6622_v32 }
 0x37c   :  { %3822 = vmatpush3.msra.mxu1 %v5589_v5  ;;  %3855 = vmatpush3.msra.mxu0 %v5706_v42 }
 0x37d   :  { %3823 = vmatprep.subr.mxu1 %v6622_v32  ;;  %3856 = vmatprep.subr.mxu0 %v6622_v32 }
 0x37e   :  { %3824 = vmatpush3.msra.mxu1 %v5596_v11  ;;  %3857 = vmatpush3.msra.mxu0 %v5708_v9 }
 0x37f   :  { %3825 = vmatprep.subr.mxu1 %v6622_v32  ;;  %3858 = vmatprep.subr.mxu0 %v6622_v32 }
 0x380   :  { %3826 = vmatpush3.msra.mxu1 %v5603_v33 }
 0x381   :  { %3827 = vmatprep.subr.mxu1 %v6622_v32 }
 0x382   :  { %3828 = vmatpush3.msra.mxu1 %v5610_v44 }
 0x383   :  { %3829 = vmatprep.subr.mxu1 %v6622_v32 }
 0x384   :  { %3830 = vmatpush3.msra.mxu1 %v5617_v49 }
 0x385   :  { %3831 = vmatprep.subr.mxu1 %v6622_v32 }
 0x386   :  { %3832 = vmatpush3.msra.mxu1 %v5624_v0 }
 0x387   :  { %3833 = vmatprep.subr.mxu1 %v6622_v32 }
 0x388   :  { %3834 = vmatpush3.msra.mxu1 %v5631_v38 }
 0x389   :  { %3835 = vmatprep.subr.mxu1 %v6622_v32 }
 0x38a   :  { %3836 = vmatpush3.msra.mxu1 %v5638_v20 }
 0x38b   :  { %3838 = vmatmul.mubr.f32.vlgmr.msra.gmra.mxu1 %v5524_v40  ;;  %1980 = vmatprep.subr.mxu1 %v5324_v52 }
 0x38c   :  { %1981 = vmatpush1.msra.mxu1 %v5329_v53  ;;  %2044 = vmatprep.mubr.f32.mxu1 %v6622_v32 }
 0x38d   :  { %1982 = vmatprep.subr.mxu1 %v5334_v54 }
 0x38e   :  { %1983 = vmatpush1.msra.mxu1 %v5340_v55 }
 0x38f   :  { %1984 = vmatprep.subr.mxu1 %v5346_v56 }
 0x390   :  { %1985 = vmatpush1.msra.mxu1 %v5352_v57 }
 0x391   :  { %1986 = vmatprep.subr.mxu1 %v5360_v58 }
 0x392   :  { %1987 = vmatpush1.msra.mxu1 %v5366_v59 }
 0x393   :  { %1988 = vmatprep.subr.mxu1 %v5372_v60 }
 0x394   :  { %1989 = vmatpush1.msra.mxu1 %v5378_v61 }
 0x395   :  { %1990 = vmatprep.subr.mxu1 %v5384_v62 }
 0x396   :  { %1991 = vmatpush1.msra.mxu1 %v5390_v10 }
 0x397   :  { %1992 = vmatprep.subr.mxu1 %v5396_v13 }
 0x398   :  { %1993 = vmatpush1.msra.mxu1 %v5402_v16 }
 0x399   :  { %1994 = vmatprep.subr.mxu1 %v5408_v19 }
 0x39a   :  { %1995 = vmatpush1.msra.mxu1 %v5413_v22 }
 0x39b   :  { %1996 = vmatprep.subr.mxu1 %v5418_v25 }
 0x39c   :  { %1997 = vmatpush1.msra.mxu1 %v5424_v28 }
 0x39d   :  { %1998 = vmatprep.subr.mxu1 %v5430_v31 }
 0x39e   :  { %1999 = vmatpush1.msra.mxu1 %v5436_v34 }
 0x39f   :  { %2000 = vmatprep.subr.mxu1 %v5442_v30 }
 0x3a0   :  { %2001 = vmatpush1.msra.mxu1 %v5448_v14 }
 0x3a1   :  { %2002 = vmatprep.subr.mxu1 %v5454_v51  ;;  %v6691_v51 = vld [vmem:[#allocation57_spill] sm:$0xff] }
 0x3a2   :  { %2003 = vmatpush1.msra.mxu1 %v5460_v63 }
 0x3a3   :  { %2004 = vmatprep.subr.mxu1 %v5466_v12 }
 0x3a4   :  { %2005 = vmatpush1.msra.mxu1 %v5472_v1  ;;  %v5736_v1 = vld [vmem:[#allocation5] sm:$0xff] }
 0x3a5   :  { %2006 = vmatprep.subr.mxu1 %v5478_v26  ;;  %v5732_v26 = vld [vmem:[#allocation5 + $0x8] sm:$0xff] }
 0x3a6   :  { %2007 = vmatpush1.msra.mxu1 %v5484_v3  ;;  %v5728_v3 = vld [vmem:[#allocation5 + $0x10] sm:$0xff] }
 0x3a7   :  { %2008 = vmatprep.subr.mxu1 %v5490_v39  ;;  %v5724_v39 = vld [vmem:[#allocation5 + $0x18] sm:$0xff] }
 0x3a8   :  { %2009 = vmatpush1.msra.mxu1 %v5496_v2  ;;  %v5720_v2 = vld [vmem:[#allocation5 + $0x20] sm:$0xff] }
 0x3a9   :  { %2010 = vmatprep.subr.mxu1 %v5502_v4  ;;  %v5716_v4 = vld [vmem:[#allocation5 + $0x28] sm:$0xff] }
 0x3aa   :  { %2011 = vmatpush1.msra.mxu1 %v5508_v46  ;;  %v5712_v46 = vld [vmem:[#allocation5 + $0x30] sm:$0xff] }
 0x3ab   :  { %3910 = vmatprep.subr.mxu1 %v6622_v32  ;;  %3859 = vmatpush3.msra.mxu0 %v5712_v46 }
 0x3ac   :  { %3860 = vmatprep.subr.mxu0 %v6622_v32 }
 0x3ad   :  { %3861 = vmatpush3.msra.mxu0 %v5716_v4 }
 0x3ae   :  { %3862 = vmatprep.subr.mxu0 %v6622_v32 }
 0x3af   :  { %3863 = vmatpush3.msra.mxu0 %v5720_v2 }
 0x3b0   :  { %3864 = vmatprep.subr.mxu0 %v6622_v32 }
 0x3b1   :  { %3865 = vmatpush3.msra.mxu0 %v5724_v39 }
 0x3b2   :  { %3866 = vmatprep.subr.mxu0 %v6622_v32 }
 0x3b3   :  { %3867 = vmatpush3.msra.mxu0 %v5728_v3 }
 0x3b4   :  { %3868 = vmatprep.subr.mxu0 %v6622_v32 }
 0x3b5   :  { %3869 = vmatpush3.msra.mxu0 %v5732_v26 }
 0x3b6   :  { %3870 = vmatprep.subr.mxu0 %v6622_v32 }
 0x3b7   :  { %3871 = vmatpush3.msra.mxu0 %v5736_v1 }
 0x3b8   :  { %3875 = vmatprep.subr.mxu0 %v6622_v32 }
 0x42b   :  { %v1608_v12 = vpop.f32.mrf.mxu1  ;;  %v1736_v63 = vpop.f32.mrf.mxu0 }
 0x42c   :  { %v1609_v14 = vadd.f32 %v1608_v12, %v6691_v51  ;;  %v1813_v30 = vadd.f32 %v5081_v8, %v1736_v63 }
 0x42d   :  { %v3804_v34 = vpop.f32.mrf.mxu1  ;;  %v1738_v25 = vpop.f32.mrf.mxu0 }
 0x42e   :  { %v1612_v31 = vadd.f32 %v1609_v14, %v5236_v29  ;;  %v3204_v28 = vmul.f32 -1.442695, %v1813_v30  ;;  %v1814_v22 = vadd.f32 %v5087_v15, %v1738_v25  ;;  %v6708_v25 = vld [vmem:[#allocation14_spill] sm:$0xff] }
 0x430   :  { %3203 = vst [vmem:[%s6474_s11 + $0x10] sm:$0xff] %v1612_v31  ;;  %4194 = vpow2.f32 %v3204_v28  ;;  %v3205_v19 = vmul.f32 -1.442695, %v1814_v22 }
 0x432   :  { %4196 = vpow2.f32 %v3205_v19 }
 0x43d   :  { %v4195_v16 = vpop.eup %4194 }
 0x43e   :  { %v1821_v13 = vadd.f32 1.0, %v4195_v16 }
 0x43f   :  { %v4197_v51 = vpop.eup %4196 }
 0x440   :  { %4198 = vrcp.f32 %v1821_v13  ;;  %v1822_v12 = vadd.f32 1.0, %v4197_v51  ;;  %v6707_v13 = vld [vmem:[#allocation13_spill] sm:$0xff]  ;;  %v6710_v51 = vld [vmem:[#allocation16_spill] sm:$0xff] }
 0x442   :  { %4200 = vrcp.f32 %v1822_v12  ;;  %v6711_v12 = vld [vmem:[#allocation17_spill] sm:$0xff] }
 0x44b   :  { %v1807_v8 = vpop.f32.mrf.mxu1 }
 0x44c   :  { %v1828_v34 = vadd.f32 %v5122_v50, %v1807_v8  ;;  %v6693_v50 = vld [vmem:[#allocation49_spill] sm:$0xff] }
 0x44d   :  { %v4199_v14 = vpop.eup %4198  ;;  %v3839_v30 = vpop.f32.mrf.mxu1 }
 0x44e   :  { %v1829_v63 = vmul.f32 %v4199_v14, %v1828_v34  ;;  %v6712_v14 = vld [vmem:[#allocation58_spill] sm:$0xff] }
 0x44f   :  { %v4201_v28 = vpop.eup %4200 }
 0x450   :  { %v1830_v29 = vadd.f32 %v1829_v63, %v5089_v21  ;;  %v1832_v31 = vsub.f32 1.0, %v4201_v28  ;;  %v1834_v19 = vmul.f32 %v4201_v28, %v5524_v40  ;;  %v6692_v21 = vld [vmem:[#allocation42_spill] sm:$0xff]  ;;  %v6709_v40 = vld [vmem:[#allocation15_spill] sm:$0xff] }
 0x451   :  { %v6713_v63 = vld [vmem:[#allocation63_spill] sm:$0xff] }
 0x452   :  { %4202 = vtanh.f32 %v1830_v29  ;;  %v6694_v29 = vld [vmem:[#allocation43_spill] sm:$0xff] }
 0x45f   :  { %v4203_v15 = vpop.eup %4202 }
 0x460   :  { %v1833_v22 = vmul.f32 %v4203_v15, %v1832_v31  ;;  %v6714_v15 = vld [vmem:[#allocation48_spill] sm:$0xff] }
 0x462   :  { %v5752_v16 = vadd.f32 %v1834_v19, %v1833_v22 }
 0x464   :  { %3873 = vmatmul.mubr.f32.vlgmr.msra.gmra.mxu0 %v5752_v16  ;;  %2045 = vmatmul.mubr.f32.vlgmr.msra.gmra.mxu1 %v5752_v16 }
 0x465   :  { %3876 = vmatpush3.msra.mxu0 %v5529_v45  ;;  %3907 = vmatprep.mubr.msk.f32.mxu0 %vm4317_vm1, %v6622_v32 }
 0x466   :  { %3877 = vmatprep.subr.mxu0 %v6622_v32  ;;  %3911 = vmatpush3.msra.mxu1 %v5678_v23 }
 0x467   :  { %3878 = vmatpush3.msra.mxu0 %v5536_v37  ;;  %3912 = vmatprep.subr.mxu1 %v6622_v32 }
 0x468   :  { %3879 = vmatprep.subr.mxu0 %v6622_v32  ;;  %3913 = vmatpush3.msra.mxu1 %v5680_v6 }
 0x469   :  { %3880 = vmatpush3.msra.mxu0 %v5545_v17  ;;  %3914 = vmatprep.subr.mxu1 %v6622_v32 }
 0x46a   :  { %3881 = vmatprep.subr.mxu0 %v6622_v32  ;;  %3915 = vmatpush3.msra.mxu1 %v5684_v24 }
 0x46b   :  { %3882 = vmatpush3.msra.mxu0 %v5554_v27  ;;  %3916 = vmatprep.subr.mxu1 %v6622_v32 }
 0x46c   :  { %3883 = vmatprep.subr.mxu0 %v6622_v32  ;;  %3917 = vmatpush3.msra.mxu1 %v5690_v18 }
 0x46d   :  { %3884 = vmatpush3.msra.mxu0 %v5561_v47  ;;  %3918 = vmatprep.subr.mxu1 %v6622_v32 }
 0x46e   :  { %3885 = vmatprep.subr.mxu0 %v6622_v32  ;;  %3919 = vmatpush3.msra.mxu1 %v5694_v35 }
 0x46f   :  { %3886 = vmatpush3.msra.mxu0 %v5568_v48  ;;  %3920 = vmatprep.subr.mxu1 %v6622_v32 }
 0x470   :  { %3887 = vmatprep.subr.mxu0 %v6622_v32  ;;  %3921 = vmatpush3.msra.mxu1 %v5698_v36 }
 0x471   :  { %3888 = vmatpush3.msra.mxu0 %v5575_v43  ;;  %3922 = vmatprep.subr.mxu1 %v6622_v32 }
 0x472   :  { %3889 = vmatprep.subr.mxu0 %v6622_v32  ;;  %3923 = vmatpush3.msra.mxu1 %v5702_v41 }
 0x473   :  { %3890 = vmatpush3.msra.mxu0 %v5582_v7  ;;  %3924 = vmatprep.subr.mxu1 %v6622_v32 }
 0x474   :  { %3891 = vmatprep.subr.mxu0 %v6622_v32  ;;  %3925 = vmatpush3.msra.mxu1 %v5706_v42 }
 0x475   :  { %3892 = vmatpush3.msra.mxu0 %v5589_v5  ;;  %3926 = vmatprep.subr.mxu1 %v6622_v32 }
 0x476   :  { %3893 = vmatprep.subr.mxu0 %v6622_v32  ;;  %3927 = vmatpush3.msra.mxu1 %v5708_v9 }
 0x477   :  { %3894 = vmatpush3.msra.mxu0 %v5596_v11  ;;  %3928 = vmatprep.subr.mxu1 %v6622_v32 }
 0x478   :  { %3895 = vmatprep.subr.mxu0 %v6622_v32  ;;  %3929 = vmatpush3.msra.mxu1 %v5712_v46 }
 0x479   :  { %3896 = vmatpush3.msra.mxu0 %v5603_v33  ;;  %3930 = vmatprep.subr.mxu1 %v6622_v32 }
 0x47a   :  { %3897 = vmatprep.subr.mxu0 %v6622_v32  ;;  %3931 = vmatpush3.msra.mxu1 %v5716_v4 }
 0x47b   :  { %3898 = vmatpush3.msra.mxu0 %v5610_v44  ;;  %3932 = vmatprep.subr.mxu1 %v6622_v32 }
 0x47c   :  { %3899 = vmatprep.subr.mxu0 %v6622_v32  ;;  %3933 = vmatpush3.msra.mxu1 %v5720_v2 }
 0x47d   :  { %3900 = vmatpush3.msra.mxu0 %v5617_v49  ;;  %3934 = vmatprep.subr.mxu1 %v6622_v32 }
 0x47e   :  { %3901 = vmatprep.subr.mxu0 %v6622_v32  ;;  %3935 = vmatpush3.msra.mxu1 %v5724_v39 }
 0x47f   :  { %3902 = vmatpush3.msra.mxu0 %v5624_v0  ;;  %3936 = vmatprep.subr.mxu1 %v6622_v32 }
 0x480   :  { %3903 = vmatprep.subr.mxu0 %v6622_v32  ;;  %3937 = vmatpush3.msra.mxu1 %v5728_v3 }
 0x481   :  { %3904 = vmatpush3.msra.mxu0 %v5631_v38  ;;  %3938 = vmatprep.subr.mxu1 %v6622_v32 }
 0x482   :  { %3905 = vmatprep.subr.mxu0 %v6622_v32  ;;  %3939 = vmatpush3.msra.mxu1 %v5732_v26 }
 0x483   :  { %3906 = vmatpush3.msra.mxu0 %v5638_v20  ;;  %3940 = vmatprep.subr.mxu1 %v6622_v32 }
 0x484   :  { %3908 = vmatmul.mubr.f32.vlgmr.msra.gmra.mxu0 %v5752_v16  ;;  %2290 = vmatprep.subr.mxu0 %v5324_v52  ;;  %v6695_v52 = vld [vmem:[#allocation50_spill] sm:$0xff] }
 0x485   :  { %2291 = vmatpush1.msra.mxu0 %v5329_v53  ;;  %3941 = vmatpush3.msra.mxu1 %v5736_v1  ;;  %v6696_v53 = vld [vmem:[#allocation44_spill] sm:$0xff] }
 0x486   :  { %2292 = vmatprep.subr.mxu0 %v5334_v54  ;;  %3942 = vmatprep.mubr.msk.f32.mxu1 %vm4317_vm1, %v6622_v32  ;;  %v6697_v54 = vld [vmem:[#allocation51_spill] sm:$0xff] }
 0x487   :  { %2293 = vmatpush1.msra.mxu0 %v5340_v55  ;;  %2354 = vmatprep.mubr.f32.mxu0 %v6622_v32  ;;  %v6698_v55 = vld [vmem:[#allocation45_spill] sm:$0xff] }
 0x488   :  { %2294 = vmatprep.subr.mxu0 %v5346_v56  ;;  %3945 = vmatprep.subr.mxu1 %v6622_v32  ;;  %v6699_v56 = vld [vmem:[#allocation53_spill] sm:$0xff] }
 0x489   :  { %2295 = vmatpush1.msra.mxu0 %v5352_v57  ;;  %v6700_v57 = vld [vmem:[#allocation46_spill] sm:$0xff] }
 0x48a   :  { %2296 = vmatprep.subr.mxu0 %v5360_v58  ;;  %v6701_v58 = vld [vmem:[#allocation54_spill] sm:$0xff] }
 0x48b   :  { %2297 = vmatpush1.msra.mxu0 %v5366_v59  ;;  %v6702_v59 = vld [vmem:[#allocation47_spill] sm:$0xff] }
 0x48c   :  { %2298 = vmatprep.subr.mxu0 %v5372_v60  ;;  %v6703_v60 = vld [vmem:[#allocation10_spill] sm:$0xff] }
 0x48d   :  { %2299 = vmatpush1.msra.mxu0 %v5378_v61  ;;  %v6704_v61 = vld [vmem:[#allocation11_spill] sm:$0xff] }
 0x48e   :  { %2300 = vmatprep.subr.mxu0 %v5384_v62  ;;  %v6705_v62 = vld [vmem:[#allocation55_spill] sm:$0xff] }
 0x48f   :  { %2301 = vmatpush1.msra.mxu0 %v5390_v10  ;;  %v6706_v10 = vld [vmem:[#allocation12_spill] sm:$0xff] }
 0x490   :  { %2302 = vmatprep.subr.mxu0 %v6692_v21 }
 0x491   :  { %2303 = vmatpush1.msra.mxu0 %v6693_v50  ;;  %v6715_v50 = vld [vmem:[#allocation64_spill] sm:$0xff] }
 0x492   :  { %2304 = vmatprep.subr.mxu0 %v6694_v29 }
 0x493   :  { %2305 = vmatpush1.msra.mxu0 %v6695_v52 }
 0x494   :  { %2306 = vmatprep.subr.mxu0 %v6696_v53 }
 0x495   :  { %2307 = vmatpush1.msra.mxu0 %v6697_v54 }
 0x496   :  { %2308 = vmatprep.subr.mxu0 %v6698_v55 }
 0x497   :  { %2309 = vmatpush1.msra.mxu0 %v6699_v56 }
 0x498   :  { %2310 = vmatprep.subr.mxu0 %v6700_v57 }
 0x499   :  { %2311 = vmatpush1.msra.mxu0 %v6701_v58  ;;  %v5868_v58 = vld [vmem:[%s6472_s9] ss:$0 sm:$0xff] }
 0x49a   :  { %2312 = vmatprep.subr.mxu0 %v6702_v59 }
 0x49b   :  { %2313 = vmatpush1.msra.mxu0 %v6703_v60 }
 0x49c   :  { %2314 = vmatprep.subr.mxu0 %v6704_v61 }
 0x49d   :  { %2315 = vmatpush1.msra.mxu0 %v6705_v62 }
 0x49e   :  { %2316 = vmatprep.subr.mxu0 %v6706_v10  ;;  %v6716_v10 = vld [vmem:[#allocation65_spill] sm:$0xff] }
 0x49f   :  { %2317 = vmatpush1.msra.mxu0 %v6707_v13 }
 0x4a0   :  { %2318 = vmatprep.subr.mxu0 %v6708_v25 }
 0x4a1   :  { %2319 = vmatpush1.msra.mxu0 %v6709_v40 }
 0x4a2   :  { %2320 = vmatprep.subr.mxu0 %v6710_v51 }
 0x4a3   :  { %2321 = vmatpush1.msra.mxu0 %v6711_v12 }
 0x4a4   :  { %3980 = vmatprep.subr.mxu0 %v6622_v32 }
 0x524   :  { %v1918_v8 = vpop.f32.mrf.mxu0  ;;  %v2046_v34 = vpop.f32.mrf.mxu1 }
 0x525   :  { %v1919_v30 = vadd.f32 %v1918_v8, %v6712_v14  ;;  %v2123_v28 = vadd.f32 %v6713_v63, %v2046_v34 }
 0x526   :  { %v3874_v31 = vpop.f32.mrf.mxu0  ;;  %v2048_v21 = vpop.f32.mrf.mxu1 }
 0x527   :  { %v1922_v22 = vadd.f32 %v1919_v30, %v6714_v15  ;;  %v3207_v19 = vmul.f32 -1.442695, %v2123_v28  ;;  %v2124_v29 = vadd.f32 %v6715_v50, %v2048_v21  ;;  %v6717_v30 = vld [vmem:[#allocation59_spill] sm:$0xff]  ;;  %v6718_v28 = vld [vmem:[#allocation66_spill] sm:$0xff] }
 0x529   :  { %3206 = vst [vmem:[%s6474_s11 + $0x18] sm:$0xff] %v1922_v22  ;;  %4204 = vpow2.f32 %v3207_v19  ;;  %v3208_v52 = vmul.f32 -1.442695, %v2124_v29  ;;  %v6719_v29 = vld [vmem:[#allocation67_spill] sm:$0xff] }
 0x52b   :  { %4206 = vpow2.f32 %v3208_v52 }
 0x536   :  { %v4205_v53 = vpop.eup %4204 }
 0x537   :  { %v2131_v54 = vadd.f32 1.0, %v4205_v53 }
 0x538   :  { %v4207_v55 = vpop.eup %4206 }
 0x539   :  { %4208 = vrcp.f32 %v2131_v54  ;;  %v2132_v56 = vadd.f32 1.0, %v4207_v55 }
 0x53b   :  { %4210 = vrcp.f32 %v2132_v56 }
 0x544   :  { %v2117_v57 = vpop.f32.mrf.mxu0 }
 0x545   :  { %v2138_v59 = vadd.f32 %v5868_v58, %v2117_v57 }
 0x546   :  { %v4209_v60 = vpop.eup %4208  ;;  %v3909_v61 = vpop.f32.mrf.mxu0 }
 0x547   :  { %v2139_v62 = vmul.f32 %v4209_v60, %v2138_v59 }
 0x548   :  { %v4211_v25 = vpop.eup %4210 }
 0x549   :  { %v2140_v13 = vadd.f32 %v2139_v62, %v6716_v10  ;;  %v2142_v40 = vsub.f32 1.0, %v4211_v25  ;;  %v2144_v8 = vmul.f32 %v4211_v25, %v5752_v16 }
 0x54b   :  { %4212 = vtanh.f32 %v2140_v13  ;;  %v6720_v13 = vld [vmem:[#allocation68_spill] sm:$0xff] }
 0x558   :  { %v4213_v51 = vpop.eup %4212 }
 0x559   :  { %v2143_v12 = vmul.f32 %v4213_v51, %v2142_v40 }
 0x55b   :  { %v5873_v34 = vadd.f32 %v2144_v8, %v2143_v12 }
 0x55d   :  { %3943 = vmatmul.mubr.f32.vlgmr.msra.gmra.mxu1 %v5873_v34  ;;  %2355 = vmatmul.mubr.f32.vlgmr.msra.gmra.mxu0 %v5873_v34 }
 0x55e   :  { %3946 = vmatpush3.msra.mxu1 %v5529_v45  ;;  %3977 = vmatprep.mubr.msk.f32.mxu1 %vm4317_vm1, %v6622_v32  ;;  %v6021_v45 = vld [vmem:[%s6468_s5 + $0xe0] sm:$0xff] }
 0x55f   :  { %3947 = vmatprep.subr.mxu1 %v6622_v32  ;;  %3981 = vmatpush3.msra.mxu0 %v5678_v23  ;;  %v6115_v23 = vld [vmem:[%s6468_s5 + $0x20] sm:$0xff] }
 0x560   :  { %3948 = vmatpush3.msra.mxu1 %v5536_v37  ;;  %3982 = vmatprep.subr.mxu0 %v6622_v32  ;;  %v6027_v37 = vld [vmem:[%s6468_s5 + $0xd8] sm:$0xff] }
 0x561   :  { %3949 = vmatprep.subr.mxu1 %v6622_v32  ;;  %3983 = vmatpush3.msra.mxu0 %v5680_v6  ;;  %v6121_v6 = vld [vmem:[%s6468_s5 + $0x18] sm:$0xff] }
 0x562   :  { %3950 = vmatpush3.msra.mxu1 %v5545_v17  ;;  %3984 = vmatprep.subr.mxu0 %v6622_v32  ;;  %v6033_v17 = vld [vmem:[%s6468_s5 + $0xc8] sm:$0xff] }
 0x563   :  { %3951 = vmatprep.subr.mxu1 %v6622_v32  ;;  %3985 = vmatpush3.msra.mxu0 %v5684_v24  ;;  %v6127_v24 = vld [vmem:[%s6468_s5 + $0x8] sm:$0xff] }
 0x564   :  { %3952 = vmatpush3.msra.mxu1 %v5554_v27  ;;  %3986 = vmatprep.subr.mxu0 %v6622_v32  ;;  %v6038_v27 = vld [vmem:[%s6468_s5 + $0xc0] sm:$0xff] }
 0x565   :  { %3953 = vmatprep.subr.mxu1 %v6622_v32  ;;  %3987 = vmatpush3.msra.mxu0 %v5690_v18  ;;  %v6133_v18 = vld [vmem:[%s6468_s5] sm:$0xff] }
 0x566   :  { %3954 = vmatpush3.msra.mxu1 %v5561_v47  ;;  %3988 = vmatprep.subr.mxu0 %v6622_v32  ;;  %v6043_v47 = vld [vmem:[%s6468_s5 + $0xb0] sm:$0xff] }
 0x567   :  { %3955 = vmatprep.subr.mxu1 %v6622_v32  ;;  %3989 = vmatpush3.msra.mxu0 %v5694_v35  ;;  %v5971_v35 = vld [vmem:[%s6468_s5 + $0x140] sm:$0xff] }
 0x568   :  { %3956 = vmatpush3.msra.mxu1 %v5568_v48  ;;  %3990 = vmatprep.subr.mxu0 %v6622_v32  ;;  %v6049_v48 = vld [vmem:[%s6468_s5 + $0xa8] sm:$0xff] }
 0x569   :  { %3957 = vmatprep.subr.mxu1 %v6622_v32  ;;  %3991 = vmatpush3.msra.mxu0 %v5698_v36  ;;  %v5965_v36 = vld [vmem:[%s6468_s5 + $0x150] sm:$0xff] }
 0x56a   :  { %3958 = vmatpush3.msra.mxu1 %v5575_v43  ;;  %3992 = vmatprep.subr.mxu0 %v6622_v32  ;;  %v6055_v43 = vld [vmem:[%s6468_s5 + $0x98] sm:$0xff] }
 0x56b   :  { %3959 = vmatprep.subr.mxu1 %v6622_v32  ;;  %3993 = vmatpush3.msra.mxu0 %v5702_v41  ;;  %v5959_v41 = vld [vmem:[%s6468_s5 + $0x158] sm:$0xff] }
 0x56c   :  { %3960 = vmatpush3.msra.mxu1 %v5582_v7  ;;  %3994 = vmatprep.subr.mxu0 %v6622_v32  ;;  %v6061_v7 = vld [vmem:[%s6468_s5 + $0x90] sm:$0xff] }
 0x56d   :  { %3961 = vmatprep.subr.mxu1 %v6622_v32  ;;  %3995 = vmatpush3.msra.mxu0 %v5706_v42  ;;  %v5954_v42 = vld [vmem:[%s6468_s5 + $0x168] sm:$0xff] }
 0x56e   :  { %3962 = vmatpush3.msra.mxu1 %v5589_v5  ;;  %3996 = vmatprep.subr.mxu0 %v6622_v32  ;;  %v6067_v5 = vld [vmem:[%s6468_s5 + $0x80] sm:$0xff] }
 0x56f   :  { %3963 = vmatprep.subr.mxu1 %v6622_v32  ;;  %3997 = vmatpush3.msra.mxu0 %v5708_v9  ;;  %v5949_v9 = vld [vmem:[%s6468_s5 + $0x170] sm:$0xff] }
 0x570   :  { %3964 = vmatpush3.msra.mxu1 %v5596_v11  ;;  %3998 = vmatprep.subr.mxu0 %v6622_v32  ;;  %v6073_v11 = vld [vmem:[%s6468_s5 + $0x78] sm:$0xff] }
 0x571   :  { %3965 = vmatprep.subr.mxu1 %v6622_v32  ;;  %3999 = vmatpush3.msra.mxu0 %v5712_v46  ;;  %v6015_v46 = vld [vmem:[%s6468_s5 + $0xf0] sm:$0xff] }
 0x572   :  { %3966 = vmatpush3.msra.mxu1 %v5603_v33  ;;  %4000 = vmatprep.subr.mxu0 %v6622_v32  ;;  %v6079_v33 = vld [vmem:[%s6468_s5 + $0x68] sm:$0xff] }
 0x573   :  { %3967 = vmatprep.subr.mxu1 %v6622_v32  ;;  %4001 = vmatpush3.msra.mxu0 %v5716_v4  ;;  %v6009_v4 = vld [vmem:[%s6468_s5 + $0xf8] sm:$0xff] }
 0x574   :  { %3968 = vmatpush3.msra.mxu1 %v5610_v44  ;;  %4002 = vmatprep.subr.mxu0 %v6622_v32  ;;  %v6085_v44 = vld [vmem:[%s6468_s5 + $0x60] sm:$0xff] }
 0x575   :  { %3969 = vmatprep.subr.mxu1 %v6622_v32  ;;  %4003 = vmatpush3.msra.mxu0 %v5720_v2  ;;  %v6003_v2 = vld [vmem:[%s6468_s5 + $0x108] sm:$0xff] }
 0x576   :  { %3970 = vmatpush3.msra.mxu1 %v5617_v49  ;;  %4004 = vmatprep.subr.mxu0 %v6622_v32  ;;  %v6091_v49 = vld [vmem:[%s6468_s5 + $0x50] sm:$0xff] }
 0x577   :  { %3971 = vmatprep.subr.mxu1 %v6622_v32  ;;  %4005 = vmatpush3.msra.mxu0 %v5724_v39  ;;  %v5997_v39 = vld [vmem:[%s6468_s5 + $0x110] sm:$0xff] }
 0x578   :  { %3972 = vmatpush3.msra.mxu1 %v5624_v0  ;;  %4006 = vmatprep.subr.mxu0 %v6622_v32  ;;  %v6097_v0 = vld [vmem:[%s6468_s5 + $0x48] sm:$0xff] }
 0x579   :  { %3973 = vmatprep.subr.mxu1 %v6622_v32  ;;  %4007 = vmatpush3.msra.mxu0 %v5728_v3  ;;  %v5991_v3 = vld [vmem:[%s6468_s5 + $0x120] sm:$0xff] }
 0x57a   :  { %3974 = vmatpush3.msra.mxu1 %v5631_v38  ;;  %4008 = vmatprep.subr.mxu0 %v6622_v32  ;;  %v6103_v38 = vld [vmem:[%s6468_s5 + $0x38] sm:$0xff] }
 0x57b   :  { %3975 = vmatprep.subr.mxu1 %v6622_v32  ;;  %4009 = vmatpush3.msra.mxu0 %v5732_v26  ;;  %v5985_v26 = vld [vmem:[%s6468_s5 + $0x128] sm:$0xff] }
 0x57c   :  { %3976 = vmatpush3.msra.mxu1 %v5638_v20  ;;  %4010 = vmatprep.subr.mxu0 %v6622_v32  ;;  %v6109_v20 = vld [vmem:[%s6468_s5 + $0x30] sm:$0xff] }
 0x57d   :  { %3978 = vmatmul.mubr.f32.vlgmr.msra.gmra.mxu1 %v5873_v34  ;;  %4011 = vmatpush3.msra.mxu0 %v5736_v1  ;;  %v5977_v1 = vld [vmem:[%s6468_s5 + $0x138] sm:$0xff] }
 0x57e   :  { %4012 = vmatprep.mubr.msk.f32.mxu0 %vm4317_vm1, %v6622_v32  ;;  %2664 = vmatprep.mubr.f32.mxu1 %v6622_v32 }
 0x57f   :  { %4015 = vmatprep.subr.mxu0 %v6622_v32  ;;  %2600 = vmatprep.subr.mxu1 %v5949_v9 }
 0x580   :  { %2601 = vmatpush1.msra.mxu1 %v5954_v42 }
 0x581   :  { %2602 = vmatprep.subr.mxu1 %v5959_v41 }
 0x582   :  { %2603 = vmatpush1.msra.mxu1 %v5965_v36 }
 0x583   :  { %2604 = vmatprep.subr.mxu1 %v5971_v35 }
 0x584   :  { %2605 = vmatpush1.msra.mxu1 %v5977_v1 }
 0x585   :  { %2606 = vmatprep.subr.mxu1 %v5985_v26 }
 0x586   :  { %2607 = vmatpush1.msra.mxu1 %v5991_v3 }
 0x587   :  { %2608 = vmatprep.subr.mxu1 %v5997_v39 }
 0x588   :  { %2609 = vmatpush1.msra.mxu1 %v6003_v2 }
 0x589   :  { %2610 = vmatprep.subr.mxu1 %v6009_v4 }
 0x58a   :  { %2611 = vmatpush1.msra.mxu1 %v6015_v46 }
 0x58b   :  { %2612 = vmatprep.subr.mxu1 %v6021_v45 }
 0x58c   :  { %2613 = vmatpush1.msra.mxu1 %v6027_v37 }
 0x58d   :  { %2614 = vmatprep.subr.mxu1 %v6033_v17 }
 0x58e   :  { %2615 = vmatpush1.msra.mxu1 %v6038_v27 }
 0x58f   :  { %2616 = vmatprep.subr.mxu1 %v6043_v47 }
 0x590   :  { %2617 = vmatpush1.msra.mxu1 %v6049_v48 }
 0x591   :  { %2618 = vmatprep.subr.mxu1 %v6055_v43 }
 0x592   :  { %2619 = vmatpush1.msra.mxu1 %v6061_v7 }
 0x593   :  { %2620 = vmatprep.subr.mxu1 %v6067_v5 }
 0x594   :  { %2621 = vmatpush1.msra.mxu1 %v6073_v11 }
 0x595   :  { %2622 = vmatprep.subr.mxu1 %v6079_v33 }
 0x596   :  { %2623 = vmatpush1.msra.mxu1 %v6085_v44 }
 0x597   :  { %2624 = vmatprep.subr.mxu1 %v6091_v49 }
 0x598   :  { %2625 = vmatpush1.msra.mxu1 %v6097_v0 }
 0x599   :  { %2626 = vmatprep.subr.mxu1 %v6103_v38 }
 0x59a   :  { %2627 = vmatpush1.msra.mxu1 %v6109_v20 }
 0x59b   :  { %2628 = vmatprep.subr.mxu1 %v6115_v23 }
 0x59c   :  { %2629 = vmatpush1.msra.mxu1 %v6121_v6 }
 0x59d   :  { %2630 = vmatprep.subr.mxu1 %v6127_v24 }
 0x59e   :  { %2631 = vmatpush1.msra.mxu1 %v6133_v18 }
 0x59f   :  { %4050 = vmatprep.subr.mxu1 %v6622_v32 }
 0x61d   :  { %v2228_v16 = vpop.f32.mrf.mxu1  ;;  %v2356_v14 = vpop.f32.mrf.mxu0 }
 0x61e   :  { %v2229_v63 = vadd.f32 %v2228_v16, %v6717_v30  ;;  %v2433_v31 = vadd.f32 %v6718_v28, %v2356_v14  ;;  %v6154_v30 = vld [vmem:[%s6468_s5 + $0x178] sm:$0xff]  ;;  %v6179_v28 = vld [vmem:[%s6468_s5 + $0x130] sm:$0xff] }
 0x61f   :  { %v3944_v22 = vpop.f32.mrf.mxu1  ;;  %v2358_v50 = vpop.f32.mrf.mxu0 }
 0x620   :  { %v2232_v19 = vadd.f32 %v2229_v63, %v6714_v15  ;;  %v3210_v21 = vmul.f32 -1.442695, %v2433_v31  ;;  %v2434_v52 = vadd.f32 %v6719_v29, %v2358_v50  ;;  %v6161_v63 = vld [vmem:[%s6468_s5 + $0x160] sm:$0xff]  ;;  %v6186_v31 = vld [vmem:[%s6468_s5 + $0x118] sm:$0xff] }
 0x621   :  { %v6193_v22 = vld [vmem:[%s6468_s5 + $0x100] sm:$0xff]  ;;  %v6214_v50 = vld [vmem:[%s6468_s5 + $0xb8] sm:$0xff] }
 0x622   :  { %3209 = vst [vmem:[%s6474_s11 + $0x20] sm:$0xff] %v2232_v19  ;;  %4214 = vpow2.f32 %v3210_v21  ;;  %v3211_v53 = vmul.f32 -1.442695, %v2434_v52  ;;  %v6200_v19 = vld [vmem:[%s6468_s5 + $0xe8] sm:$0xff]  ;;  %v6207_v21 = vld [vmem:[%s6468_s5 + $0xd0] sm:$0xff]  ;;  %v6221_v29 = vld [vmem:[%s6468_s5 + $0xa0] sm:$0xff] }
 0x623   :  { %v6228_v52 = vld [vmem:[%s6468_s5 + $0x88] sm:$0xff] }
 0x624   :  { %4216 = vpow2.f32 %v3211_v53  ;;  %v6235_v53 = vld [vmem:[%s6468_s5 + $0x70] sm:$0xff] }
 0x62f   :  { %v4215_v54 = vpop.eup %4214 }
 0x630   :  { %v2441_v55 = vadd.f32 1.0, %v4215_v54  ;;  %v6242_v54 = vld [vmem:[%s6468_s5 + $0x58] sm:$0xff] }
 0x631   :  { %v4217_v56 = vpop.eup %4216 }
 0x632   :  { %4218 = vrcp.f32 %v2441_v55  ;;  %v2442_v57 = vadd.f32 1.0, %v4217_v56  ;;  %v6249_v55 = vld [vmem:[%s6468_s5 + $0x40] sm:$0xff]  ;;  %v6256_v56 = vld [vmem:[%s6468_s5 + $0x28] sm:$0xff] }
 0x634   :  { %4220 = vrcp.f32 %v2442_v57  ;;  %v6263_v57 = vld [vmem:[%s6468_s5 + $0x10] sm:$0xff] }
 0x63d   :  { %v2427_v59 = vpop.f32.mrf.mxu1 }
 0x63e   :  { %v2448_v60 = vadd.f32 %v5868_v58, %v2427_v59 }
 0x63f   :  { %v4219_v61 = vpop.eup %4218  ;;  %v3979_v62 = vpop.f32.mrf.mxu1 }
 0x640   :  { %v2449_v10 = vmul.f32 %v4219_v61, %v2448_v60 }
 0x641   :  { %v4221_v40 = vpop.eup %4220 }
 0x642   :  { %v2450_v25 = vadd.f32 %v2449_v10, %v6720_v13  ;;  %v2452_v51 = vsub.f32 1.0, %v4221_v40  ;;  %v2454_v16 = vmul.f32 %v4221_v40, %v5873_v34  ;;  %v6170_v34 = vld [vmem:[%s6468_s5 + $0x148] sm:$0xff] }
 0x644   :  { %4222 = vtanh.f32 %v2450_v25  ;;  %v6724_v25 = vld [vmem:[#allocation71_spill] sm:$0xff] }
 0x651   :  { %v4223_v12 = vpop.eup %4222 }
 0x652   :  { %v2453_v8 = vmul.f32 %v4223_v12, %v2452_v51 }
 0x654   :  { %v6149_v14 = vadd.f32 %v2454_v16, %v2453_v8 }
 0x656   :  { %4013 = vmatmul.mubr.f32.vlgmr.msra.gmra.mxu0 %v6149_v14  ;;  %2665 = vmatmul.mubr.f32.vlgmr.msra.gmra.mxu1 %v6149_v14 }
 0x657   :  { %4016 = vmatpush3.msra.mxu0 %v6154_v30  ;;  %4047 = vmatprep.mubr.msk.f32.mxu0 %vm4317_vm1, %v6622_v32 }
 0x658   :  { %4017 = vmatprep.subr.mxu0 %v6622_v32  ;;  %4082 = vmatprep.mubr.msk.f32.mxu1 %vm4317_vm1, %v6622_v32 }
 0x659   :  { %4018 = vmatpush3.msra.mxu0 %v6161_v63 }
 0x65a   :  { %4019 = vmatprep.subr.mxu0 %v6622_v32 }
 0x65b   :  { %4020 = vmatpush3.msra.mxu0 %v6170_v34 }
 0x65c   :  { %4021 = vmatprep.subr.mxu0 %v6622_v32 }
 0x65d   :  { %4022 = vmatpush3.msra.mxu0 %v6179_v28 }
 0x65e   :  { %4023 = vmatprep.subr.mxu0 %v6622_v32 }
 0x65f   :  { %4024 = vmatpush3.msra.mxu0 %v6186_v31 }
 0x660   :  { %4025 = vmatprep.subr.mxu0 %v6622_v32 }
 0x661   :  { %4026 = vmatpush3.msra.mxu0 %v6193_v22 }
 0x662   :  { %4027 = vmatprep.subr.mxu0 %v6622_v32 }
 0x663   :  { %4028 = vmatpush3.msra.mxu0 %v6200_v19 }
 0x664   :  { %4029 = vmatprep.subr.mxu0 %v6622_v32 }
 0x665   :  { %4030 = vmatpush3.msra.mxu0 %v6207_v21 }
 0x666   :  { %4031 = vmatprep.subr.mxu0 %v6622_v32 }
 0x667   :  { %4032 = vmatpush3.msra.mxu0 %v6214_v50 }
 0x668   :  { %4033 = vmatprep.subr.mxu0 %v6622_v32 }
 0x669   :  { %4034 = vmatpush3.msra.mxu0 %v6221_v29 }
 0x66a   :  { %4035 = vmatprep.subr.mxu0 %v6622_v32 }
 0x66b   :  { %4036 = vmatpush3.msra.mxu0 %v6228_v52 }
 0x66c   :  { %4037 = vmatprep.subr.mxu0 %v6622_v32 }
 0x66d   :  { %4038 = vmatpush3.msra.mxu0 %v6235_v53 }
 0x66e   :  { %4039 = vmatprep.subr.mxu0 %v6622_v32 }
 0x66f   :  { %4040 = vmatpush3.msra.mxu0 %v6242_v54 }
 0x670   :  { %4041 = vmatprep.subr.mxu0 %v6622_v32 }
 0x671   :  { %4042 = vmatpush3.msra.mxu0 %v6249_v55 }
 0x672   :  { %4043 = vmatprep.subr.mxu0 %v6622_v32 }
 0x673   :  { %4044 = vmatpush3.msra.mxu0 %v6256_v56 }
 0x674   :  { %4045 = vmatprep.subr.mxu0 %v6622_v32 }
 0x675   :  { %4046 = vmatpush3.msra.mxu0 %v6263_v57 }
 0x676   :  { %4048 = vmatmul.mubr.f32.vlgmr.msra.gmra.mxu0 %v6149_v14  ;;  %2910 = vmatprep.subr.mxu0 %v5949_v9  ;;  %v6303_v9 = vld [vmem:[#allocation5 + $0x78] sm:$0xff] }
 0x677   :  { %2911 = vmatpush1.msra.mxu0 %v5954_v42  ;;  %2974 = vmatprep.mubr.f32.mxu0 %v6622_v32  ;;  %v6305_v42 = vld [vmem:[#allocation5 + $0x70] sm:$0xff] }
 0x678   :  { %2912 = vmatprep.subr.mxu0 %v5959_v41  ;;  %4051 = vmatpush3.msra.mxu1 %v6303_v9  ;;  %v6309_v41 = vld [vmem:[#allocation5 + $0x68] sm:$0xff] }
 0x679   :  { %2913 = vmatpush1.msra.mxu0 %v5965_v36  ;;  %4052 = vmatprep.subr.mxu1 %v6622_v32  ;;  %v6315_v36 = vld [vmem:[#allocation5 + $0x60] sm:$0xff] }
 0x67a   :  { %2914 = vmatprep.subr.mxu0 %v5971_v35  ;;  %4053 = vmatpush3.msra.mxu1 %v6305_v42  ;;  %v6319_v35 = vld [vmem:[#allocation5 + $0x58] sm:$0xff] }
 0x67b   :  { %2915 = vmatpush1.msra.mxu0 %v5977_v1  ;;  %4054 = vmatprep.subr.mxu1 %v6622_v32  ;;  %v6323_v1 = vld [vmem:[#allocation5 + $0x50] sm:$0xff] }
 0x67c   :  { %2916 = vmatprep.subr.mxu0 %v5985_v26  ;;  %4055 = vmatpush3.msra.mxu1 %v6309_v41  ;;  %v6327_v26 = vld [vmem:[#allocation5 + $0x48] sm:$0xff] }
 0x67d   :  { %2917 = vmatpush1.msra.mxu0 %v5991_v3  ;;  %4056 = vmatprep.subr.mxu1 %v6622_v32  ;;  %v6330_v3 = vld [vmem:[#allocation5 + $0x40] sm:$0xff] }
 0x67e   :  { %2918 = vmatprep.subr.mxu0 %v5997_v39  ;;  %4057 = vmatpush3.msra.mxu1 %v6315_v36  ;;  %v6333_v39 = vld [vmem:[#allocation5 + $0x38] sm:$0xff] }
 0x67f   :  { %2919 = vmatpush1.msra.mxu0 %v6003_v2  ;;  %4058 = vmatprep.subr.mxu1 %v6622_v32  ;;  %v6337_v2 = vld [vmem:[#allocation5 + $0x30] sm:$0xff] }
 0x680   :  { %2920 = vmatprep.subr.mxu0 %v6009_v4  ;;  %4059 = vmatpush3.msra.mxu1 %v6319_v35  ;;  %v6341_v4 = vld [vmem:[#allocation5 + $0x28] sm:$0xff] }
 0x681   :  { %2921 = vmatpush1.msra.mxu0 %v6015_v46  ;;  %4060 = vmatprep.subr.mxu1 %v6622_v32  ;;  %v6345_v46 = vld [vmem:[#allocation5 + $0x20] sm:$0xff] }
 0x682   :  { %2922 = vmatprep.subr.mxu0 %v6021_v45  ;;  %4061 = vmatpush3.msra.mxu1 %v6323_v1  ;;  %v6349_v45 = vld [vmem:[#allocation5 + $0x18] sm:$0xff] }
 0x683   :  { %2923 = vmatpush1.msra.mxu0 %v6027_v37  ;;  %4062 = vmatprep.subr.mxu1 %v6622_v32  ;;  %v6353_v37 = vld [vmem:[#allocation5 + $0x10] sm:$0xff] }
 0x684   :  { %2924 = vmatprep.subr.mxu0 %v6033_v17  ;;  %4063 = vmatpush3.msra.mxu1 %v6327_v26  ;;  %v6357_v17 = vld [vmem:[#allocation5 + $0x8] sm:$0xff] }
 0x685   :  { %2925 = vmatpush1.msra.mxu0 %v6038_v27  ;;  %4064 = vmatprep.subr.mxu1 %v6622_v32  ;;  %v6361_v27 = vld [vmem:[#allocation5] sm:$0xff] }
 0x686   :  { %2926 = vmatprep.subr.mxu0 %v6043_v47  ;;  %4065 = vmatpush3.msra.mxu1 %v6330_v3 }
 0x687   :  { %2927 = vmatpush1.msra.mxu0 %v6049_v48  ;;  %4066 = vmatprep.subr.mxu1 %v6622_v32 }
 0x688   :  { %2928 = vmatprep.subr.mxu0 %v6055_v43  ;;  %4067 = vmatpush3.msra.mxu1 %v6333_v39  ;;  %v6721_v43 = vld [vmem:[#allocation60_spill] sm:$0xff] }
 0x689   :  { %2929 = vmatpush1.msra.mxu0 %v6061_v7  ;;  %4068 = vmatprep.subr.mxu1 %v6622_v32 }
 0x68a   :  { %2930 = vmatprep.subr.mxu0 %v6067_v5  ;;  %4069 = vmatpush3.msra.mxu1 %v6337_v2  ;;  %v6722_v5 = vld [vmem:[#allocation69_spill] sm:$0xff] }
 0x68b   :  { %2931 = vmatpush1.msra.mxu0 %v6073_v11  ;;  %4070 = vmatprep.subr.mxu1 %v6622_v32 }
 0x68c   :  { %2932 = vmatprep.subr.mxu0 %v6079_v33  ;;  %4071 = vmatpush3.msra.mxu1 %v6341_v4 }
 0x68d   :  { %2933 = vmatpush1.msra.mxu0 %v6085_v44  ;;  %4072 = vmatprep.subr.mxu1 %v6622_v32 }
 0x68e   :  { %2934 = vmatprep.subr.mxu0 %v6091_v49  ;;  %4073 = vmatpush3.msra.mxu1 %v6345_v46 }
 0x68f   :  { %2935 = vmatpush1.msra.mxu0 %v6097_v0  ;;  %4074 = vmatprep.subr.mxu1 %v6622_v32 }
 0x690   :  { %2936 = vmatprep.subr.mxu0 %v6103_v38  ;;  %4075 = vmatpush3.msra.mxu1 %v6349_v45  ;;  %v6723_v38 = vld [vmem:[#allocation70_spill] sm:$0xff] }
 0x691   :  { %2937 = vmatpush1.msra.mxu0 %v6109_v20  ;;  %4076 = vmatprep.subr.mxu1 %v6622_v32 }
 0x692   :  { %2938 = vmatprep.subr.mxu0 %v6115_v23  ;;  %4077 = vmatpush3.msra.mxu1 %v6353_v37 }
 0x693   :  { %2939 = vmatpush1.msra.mxu0 %v6121_v6  ;;  %4078 = vmatprep.subr.mxu1 %v6622_v32 }
 0x694   :  { %2940 = vmatprep.subr.mxu0 %v6127_v24  ;;  %4079 = vmatpush3.msra.mxu1 %v6357_v17 }
 0x695   :  { %2941 = vmatpush1.msra.mxu0 %v6133_v18  ;;  %4080 = vmatprep.subr.mxu1 %v6622_v32 }
 0x696   :  { %4120 = vmatprep.subr.mxu0 %v6622_v32  ;;  %4081 = vmatpush3.msra.mxu1 %v6361_v27 }
 0x697   :  { %4085 = vmatprep.subr.mxu1 %v6622_v32 }
 0x716   :  { %v2538_v47 = vpop.f32.mrf.mxu0  ;;  %v2666_v48 = vpop.f32.mrf.mxu1 }
 0x717   :  { %v2539_v7 = vadd.f32 %v2538_v47, %v6721_v43  ;;  %v2743_v11 = vadd.f32 %v6722_v5, %v2666_v48 }
 0x718   :  { %v4014_v33 = vpop.f32.mrf.mxu0  ;;  %v2668_v0 = vpop.f32.mrf.mxu1 }
 0x719   :  { %v2542_v44 = vadd.f32 %v2539_v7, %v6714_v15  ;;  %v3213_v49 = vmul.f32 -1.442695, %v2743_v11  ;;  %v2744_v20 = vadd.f32 %v6723_v38, %v2668_v0 }
 0x71b   :  { %3212 = vst [vmem:[%s6474_s11 + $0x28] sm:$0xff] %v2542_v44  ;;  %4224 = vpow2.f32 %v3213_v49  ;;  %v3214_v23 = vmul.f32 -1.442695, %v2744_v20 }
 0x71d   :  { %4226 = vpow2.f32 %v3214_v23 }
 0x728   :  { %v4225_v6 = vpop.eup %4224 }
 0x729   :  { %v2751_v24 = vadd.f32 1.0, %v4225_v6 }
 0x72a   :  { %v4227_v18 = vpop.eup %4226 }
 0x72b   :  { %4228 = vrcp.f32 %v2751_v24  ;;  %v2752_v59 = vadd.f32 1.0, %v4227_v18 }
 0x72d   :  { %4230 = vrcp.f32 %v2752_v59 }
 0x736   :  { %v2737_v60 = vpop.f32.mrf.mxu0 }
 0x737   :  { %v2758_v61 = vadd.f32 %v5868_v58, %v2737_v60 }
 0x738   :  { %v4229_v62 = vpop.eup %4228  ;;  %v4049_v10 = vpop.f32.mrf.mxu0 }
 0x739   :  { %v2759_v13 = vmul.f32 %v4229_v62, %v2758_v61 }
 0x73a   :  { %v4231_v51 = vpop.eup %4230 }
 0x73b   :  { %v2760_v40 = vadd.f32 %v2759_v13, %v6724_v25  ;;  %v2762_v12 = vsub.f32 1.0, %v4231_v51  ;;  %v2764_v47 = vmul.f32 %v4231_v51, %v6149_v14 }
 0x73d   :  { %4232 = vtanh.f32 %v2760_v40 }
 0x74a   :  { %v4233_v8 = vpop.eup %4232 }
 0x74b   :  { %v2763_v16 = vmul.f32 %v4233_v8, %v2762_v12 }
 0x74d   :  { %v6377_v48 = vadd.f32 %v2764_v47, %v2763_v16 }
 0x74f   :  { %4083 = vmatmul.mubr.f32.vlgmr.msra.gmra.mxu1 %v6377_v48  ;;  %2975 = vmatmul.mubr.f32.vlgmr.msra.gmra.mxu0 %v6377_v48 }
 0x750   :  { %4086 = vmatpush3.msra.mxu1 %v6154_v30  ;;  %4117 = vmatprep.mubr.msk.f32.mxu1 %vm4317_vm1, %v6622_v32 }
 0x751   :  { %4087 = vmatprep.subr.mxu1 %v6622_v32  ;;  %4121 = vmatpush3.msra.mxu0 %v6303_v9 }
 0x752   :  { %4088 = vmatpush3.msra.mxu1 %v6161_v63  ;;  %4122 = vmatprep.subr.mxu0 %v6622_v32  ;;  %v6725_v63 = vld [vmem:[#allocation61_spill] sm:$0xff] }
 0x753   :  { %4089 = vmatprep.subr.mxu1 %v6622_v32  ;;  %4123 = vmatpush3.msra.mxu0 %v6305_v42 }
 0x754   :  { %4090 = vmatpush3.msra.mxu1 %v6170_v34  ;;  %4124 = vmatprep.subr.mxu0 %v6622_v32 }
 0x755   :  { %4091 = vmatprep.subr.mxu1 %v6622_v32  ;;  %4125 = vmatpush3.msra.mxu0 %v6309_v41 }
 0x756   :  { %4092 = vmatpush3.msra.mxu1 %v6179_v28  ;;  %4126 = vmatprep.subr.mxu0 %v6622_v32  ;;  %v6726_v28 = vld [vmem:[#allocation72_spill] sm:$0xff] }
 0x757   :  { %4093 = vmatprep.subr.mxu1 %v6622_v32  ;;  %4127 = vmatpush3.msra.mxu0 %v6315_v36 }
 0x758   :  { %4094 = vmatpush3.msra.mxu1 %v6186_v31  ;;  %4128 = vmatprep.subr.mxu0 %v6622_v32 }
 0x759   :  { %4095 = vmatprep.subr.mxu1 %v6622_v32  ;;  %4129 = vmatpush3.msra.mxu0 %v6319_v35  ;;  %v6728_v35 = vld [vmem:[#allocation74_spill] sm:$0xff] }
 0x75a   :  { %4096 = vmatpush3.msra.mxu1 %v6193_v22  ;;  %4130 = vmatprep.subr.mxu0 %v6622_v32 }
 0x75b   :  { %4097 = vmatprep.subr.mxu1 %v6622_v32  ;;  %4131 = vmatpush3.msra.mxu0 %v6323_v1 }
 0x75c   :  { %4098 = vmatpush3.msra.mxu1 %v6200_v19  ;;  %4132 = vmatprep.subr.mxu0 %v6622_v32 }
 0x75d   :  { %4099 = vmatprep.subr.mxu1 %v6622_v32  ;;  %4133 = vmatpush3.msra.mxu0 %v6327_v26 }
 0x75e   :  { %4100 = vmatpush3.msra.mxu1 %v6207_v21  ;;  %4134 = vmatprep.subr.mxu0 %v6622_v32 }
 0x75f   :  { %4101 = vmatprep.subr.mxu1 %v6622_v32  ;;  %4135 = vmatpush3.msra.mxu0 %v6330_v3 }
 0x760   :  { %4102 = vmatpush3.msra.mxu1 %v6214_v50  ;;  %4136 = vmatprep.subr.mxu0 %v6622_v32 }
 0x761   :  { %4103 = vmatprep.subr.mxu1 %v6622_v32  ;;  %4137 = vmatpush3.msra.mxu0 %v6333_v39 }
 0x762   :  { %4104 = vmatpush3.msra.mxu1 %v6221_v29  ;;  %4138 = vmatprep.subr.mxu0 %v6622_v32  ;;  %v6727_v29 = vld [vmem:[#allocation73_spill] sm:$0xff] }
 0x763   :  { %4105 = vmatprep.subr.mxu1 %v6622_v32  ;;  %4139 = vmatpush3.msra.mxu0 %v6337_v2 }
 0x764   :  { %4106 = vmatpush3.msra.mxu1 %v6228_v52  ;;  %4140 = vmatprep.subr.mxu0 %v6622_v32 }
 0x765   :  { %4107 = vmatprep.subr.mxu1 %v6622_v32  ;;  %4141 = vmatpush3.msra.mxu0 %v6341_v4 }
 0x766   :  { %4108 = vmatpush3.msra.mxu1 %v6235_v53  ;;  %4142 = vmatprep.subr.mxu0 %v6622_v32 }
 0x767   :  { %4109 = vmatprep.subr.mxu1 %v6622_v32  ;;  %4143 = vmatpush3.msra.mxu0 %v6345_v46 }
 0x768   :  { %4110 = vmatpush3.msra.mxu1 %v6242_v54  ;;  %4144 = vmatprep.subr.mxu0 %v6622_v32 }
 0x769   :  { %4111 = vmatprep.subr.mxu1 %v6622_v32  ;;  %4145 = vmatpush3.msra.mxu0 %v6349_v45 }
 0x76a   :  { %4112 = vmatpush3.msra.mxu1 %v6249_v55  ;;  %4146 = vmatprep.subr.mxu0 %v6622_v32 }
 0x76b   :  { %4113 = vmatprep.subr.mxu1 %v6622_v32  ;;  %4147 = vmatpush3.msra.mxu0 %v6353_v37  ;;  %v6729_v37 = vld [vmem:[#allocation62_spill] sm:$0xff] }
 0x76c   :  { %4114 = vmatpush3.msra.mxu1 %v6256_v56  ;;  %4148 = vmatprep.subr.mxu0 %v6622_v32 }
 0x76d   :  { %4115 = vmatprep.subr.mxu1 %v6622_v32  ;;  %4149 = vmatpush3.msra.mxu0 %v6357_v17 }
 0x76e   :  { %4116 = vmatpush3.msra.mxu1 %v6263_v57  ;;  %4150 = vmatprep.subr.mxu0 %v6622_v32 }
 0x76f   :  { %4118 = vmatmul.mubr.f32.vlgmr.msra.gmra.mxu1 %v6377_v48  ;;  %4151 = vmatpush3.msra.mxu0 %v6361_v27 }
 0x770   :  { %4152 = vmatprep.mubr.msk.f32.mxu0 %vm4317_vm1, %v6622_v32 }
 0x80f   :  { %v2848_v14 = vpop.f32.mrf.mxu1  ;;  %v2976_v30 = vpop.f32.mrf.mxu0 }
 0x810   :  { %v2849_v34 = vadd.f32 %v2848_v14, %v6725_v63  ;;  %v3053_v31 = vadd.f32 %v6726_v28, %v2976_v30 }
 0x811   :  { %v4084_v22 = vpop.f32.mrf.mxu1  ;;  %v2978_v50 = vpop.f32.mrf.mxu0 }
 0x812   :  { %v2852_v19 = vadd.f32 %v2849_v34, %v6714_v15  ;;  %v3216_v21 = vmul.f32 -1.442695, %v3053_v31  ;;  %v3054_v52 = vadd.f32 %v6727_v29, %v2978_v50 }
 0x814   :  { %3215 = vst [vmem:[%s6474_s11 + $0x30] sm:$0xff] %v2852_v19  ;;  %4234 = vpow2.f32 %v3216_v21  ;;  %v3217_v53 = vmul.f32 -1.442695, %v3054_v52 }
 0x816   :  { %4236 = vpow2.f32 %v3217_v53 }
 0x821   :  { %v4235_v32 = vpop.eup %4234 }
 0x822   :  { %v3061_v54 = vadd.f32 1.0, %v4235_v32 }
 0x823   :  { %v4237_v55 = vpop.eup %4236 }
 0x824   :  { %4238 = vrcp.f32 %v3061_v54  ;;  %v3062_v56 = vadd.f32 1.0, %v4237_v55 }
 0x826   :  { %4240 = vrcp.f32 %v3062_v56 }
 0x82f   :  { %v3047_v57 = vpop.f32.mrf.mxu1 }
 0x830   :  { %v3068_v9 = vadd.f32 %v5868_v58, %v3047_v57 }
 0x831   :  { %v4239_v42 = vpop.eup %4238  ;;  %v4119_v41 = vpop.f32.mrf.mxu1 }
 0x832   :  { %v3069_v36 = vmul.f32 %v4239_v42, %v3068_v9 }
 0x833   :  { %v4241_v26 = vpop.eup %4240 }
 0x834   :  { %v3070_v1 = vadd.f32 %v3069_v36, %v6728_v35  ;;  %v3072_v3 = vsub.f32 1.0, %v4241_v26  ;;  %v3074_v4 = vmul.f32 %v4241_v26, %v6377_v48 }
 0x836   :  { %4242 = vtanh.f32 %v3070_v1 }
 0x843   :  { %v4243_v39 = vpop.eup %4242 }
 0x844   :  { %v3073_v2 = vmul.f32 %v4243_v39, %v3072_v3 }
 0x846   :  { %v3075_v46 = vadd.f32 %v3074_v4, %v3073_v2 }
 0x848   :  { %4153 = vmatmul.mubr.f32.vlgmr.msra.gmra.mxu0 %v3075_v46 }
 0x908   :  { %v3158_v45 = vpop.f32.mrf.mxu0 }
 0x909   :  { %v3159_v17 = vadd.f32 %v3158_v45, %v6729_v37 }
 0x90a   :  { %v4154_v27 = vpop.f32.mrf.mxu0 }
 0x90b   :  { %v3162_v58 = vadd.f32 %v3159_v17, %v6714_v15 }
 0x90d   :  { %3218 = vst [vmem:[%s6474_s11 + $0x38] sm:$0xff] %v3162_v58 }
 0x90e   :  { %3169 = vsyncpa [#allocation4], 1 }
 0x90f   :  { %3170 = vsyncpa [#allocation6], 1 }

</bundles_post_ra>
